<compile_context>
chip_gen: v5e
topology: v5e:2x2
jax: 0.10.0
libtpu: 0.0.40
codegen_flags: <defaults>
</compile_context>

<pallas_src>
import functools

import jax
import jax.numpy as jnp
from jax.experimental import pallas as pl
from jax.experimental.pallas import tpu as pltpu

NUM_CLASSES = 4
HIDDEN = 16
IGNORE = 255

# Pixels per grid step along the lane axis.  64K pixels keeps the ~0.35 us per-step
# pipeline overhead well under the per-step DMA/compute time while staying far below
# v7x's 64 MiB VMEM (I/O buffers + compute temporaries ~< 20 MiB).
MAX_TILE = 64 * 1024
VMEM_LIMIT_BYTES = 48 * 1024 * 1024

NORM_MEAN = jnp.array([0.485, 0.456, 0.406], dtype=jnp.float32)
NORM_STD = jnp.array([0.229, 0.224, 0.225], dtype=jnp.float32)


# ---------------------------------------------------------------------------
# shared in-kernel pieces (class-major: classes on sublanes, pixels on lanes)
# ---------------------------------------------------------------------------
def _net_logits(x, w1_ref, b1_ref, w2_ref, b2_ref):
    """x: (3, T) bf16 pixels -> (NUM_CLASSES, T) f32 logits (normalization pre-folded)."""
    h = jnp.dot(w1_ref[...], x, preferred_element_type=jnp.float32) + b1_ref[...]
    h = jnp.maximum(h, 0.0).astype(jnp.bfloat16)          # ReLU; bf16 operand for MXU
    return jnp.dot(w2_ref[...], h, preferred_element_type=jnp.float32) + b2_ref[...]


def _softmax(z):
    m = jnp.max(z, axis=0, keepdims=True)
    e = jnp.exp(z - m)
    return e / jnp.sum(e, axis=0, keepdims=True), m


def _entropy(p):
    return -jnp.sum(p * jnp.log(p + 1e-10), axis=0, keepdims=True)


def _first_argmax(z, m):
    # torch.max picks the first maximal index; logits are exact f32 so z == m is safe.
    ids = jax.lax.broadcasted_iota(jnp.int32, z.shape, 0)
    return jnp.min(jnp.where(z == m, ids, jnp.int32(z.shape[0])), axis=0, keepdims=True)


def _log_sum_exp(z):
    m = jnp.max(z, axis=0, keepdims=True)
    return jnp.log(jnp.sum(jnp.exp(z - m), axis=0, keepdims=True)) + m


def _picked_logit(z, t):
    ids = jax.lax.broadcasted_iota(jnp.int32, z.shape, 0)
    return jnp.sum(jnp.where(ids == t, z, 0.0), axis=0, keepdims=True)


def _accumulate_loss(loss, valid, acc_ref):
    """Grid-resident (8,128) accumulator: row 0 = loss sum, row 1 = valid count."""
    loss_sum = jnp.sum(loss, axis=1, keepdims=True)        # (1, 1)
    valid_sum = jnp.sum(valid, axis=1, keepdims=True)      # (1, 1)
    rows = jax.lax.broadcasted_iota(jnp.int32, acc_ref.shape, 0)
    contrib = (jnp.where(rows == 0, loss_sum, 0.0)
               + jnp.where(rows == 1, valid_sum, 0.0))

    @pl.when(pl.program_id(1) == 0)
    def _():
        acc_ref[...] = jnp.zeros_like(acc_ref)

    acc_ref[...] += contrib


# ---------------------------------------------------------------------------
# Kernel 1: teacher net + softmax + entropy (fused; entropy only output)
# ---------------------------------------------------------------------------
def teacher_entropy_kernel(x_ref, w1_ref, b1_ref, w2_ref, b2_ref, ent_ref):
    z = _net_logits(x_ref[...], w1_ref, b1_ref, w2_ref, b2_ref)       # (C, T) f32
    p, _ = _softmax(z)
    ent_ref[...] = _entropy(p)


# ---------------------------------------------------------------------------
# Kernel 2: online net + supervised cross-entropy (ignore=255), accumulated in-kernel
# ---------------------------------------------------------------------------
def labeled_ce_kernel(x_ref, t_ref, w1_ref, b1_ref, w2_ref, b2_ref, acc_ref):
    z = _net_logits(x_ref[...], w1_ref, b1_ref, w2_ref, b2_ref)       # (C, T)
    t = t_ref[...]                                                    # (1, T) int32
    valid = (t != IGNORE).astype(jnp.float32)
    loss = (_log_sum_exp(z) - _picked_logit(z, t)) * valid
    _accumulate_loss(loss, valid, acc_ref)


# ---------------------------------------------------------------------------
# Kernel 3: teacher argmax/entropy recomputed in-kernel + online pseudo-label CE
#           (pixels with entropy >= thresh or padded pixels are dropped)
# ---------------------------------------------------------------------------
def pseudo_ce_kernel(thresh_ref, x_ref,
                     tw1_ref, tb1_ref, tw2_ref, tb2_ref,
                     ow1_ref, ob1_ref, ow2_ref, ob2_ref,
                     acc_ref, *, n_real, g1):
    x = x_ref[...]                                                    # read once, reuse
    # teacher branch (no grad): pseudo-label + entropy, never materialized in HBM
    z_t = _net_logits(x, tw1_ref, tb1_ref, tw2_ref, tb2_ref)
    p, m = _softmax(z_t)
    ent = _entropy(p)
    label = _first_argmax(z_t, m)
    # keep = real (non-padded) pixel AND entropy below the 80th-percentile threshold
    tile = x.shape[1]
    t_idx = pl.program_id(0) * g1 + pl.program_id(1)
    col = jax.lax.broadcasted_iota(jnp.int32, (1, tile), 1) + t_idx * tile
    keep = jnp.logical_and(col < n_real, ent < thresh_ref[0, 0])
    valid = keep.astype(jnp.float32)
    # online branch: cross-entropy against the pseudo-label on kept pixels
    z_o = _net_logits(x, ow1_ref, ob1_ref, ow2_ref, ob2_ref)
    loss = (_log_sum_exp(z_o) - _picked_logit(z_o, label)) * valid
    _accumulate_loss(loss, valid, acc_ref)


# ---------------------------------------------------------------------------
# pallas_call wrappers
# ---------------------------------------------------------------------------
def _weight_specs(params, grid_ndim):
    if grid_ndim == 1:
        return [pl.BlockSpec(p.shape, lambda i: (0, 0)) for p in params]
    return [pl.BlockSpec(p.shape, lambda i, j: (0, 0)) for p in params]


def _split_grid(nt):
    """(parallel, arbitrary) split; 2-way outer axis so v7x megacore splits the grid."""
    if nt >= 2 and nt % 2 == 0:
        return 2, nt // 2
    return 1, nt


def _unpack_acc(acc):
    # row 0 (per core group) = loss sum, row 1 = valid count (all lanes identical)
    return jnp.sum(acc[0::8, 0]), jnp.sum(acc[1::8, 0])


def teacher_entropy(x, params, tile):
    c_in, n = x.shape
    nt = n // tile
    return pl.pallas_call(
        teacher_entropy_kernel,
        out_shape=jax.ShapeDtypeStruct((1, n), jnp.float32),
        grid=(nt,),
        in_specs=[pl.BlockSpec((c_in, tile), lambda i: (0, i))] + _weight_specs(params, 1),
        out_specs=pl.BlockSpec((1, tile), lambda i: (0, i)),
        compiler_params=pltpu.CompilerParams(
            dimension_semantics=("parallel",),
            vmem_limit_bytes=VMEM_LIMIT_BYTES),
    )(x, *params)


def labeled_ce(x, target, params, tile):
    c_in, n = x.shape
    g0, g1 = _split_grid(n // tile)
    acc = pl.pallas_call(
        labeled_ce_kernel,
        out_shape=jax.ShapeDtypeStruct((g0 * 8, 128), jnp.float32),
        grid=(g0, g1),
        in_specs=[pl.BlockSpec((c_in, tile), lambda i, j: (0, i * g1 + j)),
                  pl.BlockSpec((1, tile), lambda i, j: (0, i * g1 + j))]
                 + _weight_specs(params, 2),
        out_specs=pl.BlockSpec((8, 128), lambda i, j: (i, 0)),
        compiler_params=pltpu.CompilerParams(
            dimension_semantics=("parallel", "arbitrary"),
            vmem_limit_bytes=VMEM_LIMIT_BYTES),
    )(x, target, *params)
    return _unpack_acc(acc)


def unlabeled_pseudo_ce(x, thresh, teacher_params, online_params, tile, n_real):
    c_in, n = x.shape
    g0, g1 = _split_grid(n // tile)
    thresh2d = jnp.reshape(thresh, (1, 1)).astype(jnp.float32)
    kernel = functools.partial(pseudo_ce_kernel, n_real=n_real, g1=g1)
    acc = pl.pallas_call(
        kernel,
        out_shape=jax.ShapeDtypeStruct((g0 * 8, 128), jnp.float32),
        grid=(g0, g1),
        in_specs=[pl.BlockSpec(memory_space=pltpu.MemorySpace.SMEM),
                  pl.BlockSpec((c_in, tile), lambda i, j: (0, i * g1 + j))]
                 + _weight_specs(teacher_params, 2) + _weight_specs(online_params, 2),
        out_specs=pl.BlockSpec((8, 128), lambda i, j: (i, 0)),
        compiler_params=pltpu.CompilerParams(
            dimension_semantics=("parallel", "arbitrary"),
            vmem_limit_bytes=VMEM_LIMIT_BYTES),
    )(thresh2d, x, *teacher_params, *online_params)
    return _unpack_acc(acc)


# ---------------------------------------------------------------------------
# Plain-JAX glue
# ---------------------------------------------------------------------------
def pad_pixels(n):
    return pl.cdiv(n, 1024) * 1024


def choose_tile(n_pad):
    """Largest lane tile that divides n_pad and fits MAX_TILE; prefer an even grid."""
    m = n_pad // 1024
    divisors = [d for d in range(1, m + 1) if m % d == 0 and 1024 * d <= MAX_TILE]
    best = max(divisors)
    even = [d for d in divisors if (m // d) % 2 == 0]
    if even and 2 * max(even) >= best:      # don't sacrifice >2x tile size for an even grid
        best = max(even)
    return 1024 * best


def to_class_major_padded(x, n_pad):
    b, c, h, w = x.shape
    n = b * h * w
    flat = jnp.transpose(x, (1, 0, 2, 3)).reshape(c, n).astype(jnp.float32)
    if n_pad != n:
        flat = jnp.pad(flat, ((0, 0), (0, n_pad - n)))
    return flat.astype(jnp.bfloat16)        # halve HBM read; matmuls accumulate in f32


def flatten_targets_padded(target, n_pad):
    t = target.reshape(1, -1).astype(jnp.int32)
    if n_pad != t.shape[1]:
        t = jnp.pad(t, ((0, 0), (0, n_pad - t.shape[1])), constant_values=IGNORE)
    return t


def fold_normalization(params):
    """Fold (x - mean) / std into the first 1x1-conv layer; bf16 weights, f32 biases."""
    w1, b1, w2, b2 = params                 # w1 (H,3), b1 (H,1), w2 (C,H), b2 (C,1)
    inv_std = (1.0 / NORM_STD).reshape(1, 3)
    mean_over_std = (NORM_MEAN / NORM_STD).reshape(3, 1)
    w1f = (w1 * inv_std).astype(jnp.bfloat16)
    b1f = (b1 - jnp.dot(w1, mean_over_std)).astype(jnp.float32)
    return (w1f, b1f, w2.astype(jnp.bfloat16), b2.astype(jnp.float32))


def mean_teacher_forward_train(online_params, teacher_params, image, target,
                               image_u, ema_decay=0.99):
    b, _, h, w = image.shape
    bu, _, hu, wu = image_u.shape
    n_l, n_u = b * h * w, bu * hu * wu
    npad_l, npad_u = pad_pixels(n_l), pad_pixels(n_u)
    tile_l, tile_u = choose_tile(npad_l), choose_tile(npad_u)

    online_f = fold_normalization(online_params)
    teacher_f = fold_normalization(teacher_params)

    x_l = to_class_major_padded(image, npad_l)            # (3, Nl_pad) bf16
    x_u = to_class_major_padded(image_u, npad_u)          # (3, Nu_pad) bf16
    tgt = flatten_targets_padded(target, npad_l)          # (1, Nl_pad) int32

    # ---- forward_pseudo_label (teacher, no grad): only entropy is materialized ----
    # The argmax pseudo-label is never 255, so the percentile mask is just the
    # (static) padding mask; pseudo-labels are recomputed inside pseudo_ce_kernel.
    # TODO(synk): 50%-probability cutmix of (image_u, label_u, entropy_u) skipped.
    entropy_u = teacher_entropy(x_u, teacher_f, tile_u)    # (1, Nu_pad) f32

    # ---- supervised loss: CrossEntropyLoss(ignore_index=255), reduced in-kernel ----
    # TODO(synk): strong augmentation replaced by plain normalize (folded into w1/b1).
    loss_sum, valid_sum = labeled_ce(x_l, tgt, online_f, tile_l)
    sup_loss = loss_sum / jnp.maximum(valid_sum, 1.0)

    # ---- pseudo_segmentation_loss(percent=80) ----
    thresh = jnp.percentile(entropy_u[0, :n_u], 80.0)      # exact np.percentile semantics
    ploss_sum, pvalid_sum = unlabeled_pseudo_ce(x_u, thresh, teacher_f, online_f,
                                                tile_u, n_u)
    n_valid = jnp.maximum(pvalid_sum, 1.0)
    weight = (bu * hu * wu) / n_valid                      # matches reference (total/valid)
    pseudo_loss = weight * ploss_sum / n_valid             # * mean CE over valid pixels

    # ---- EMA update of teacher params (side effect in the PyTorch module) ----
    new_teacher = jax.tree_util.tree_map(
        lambda t_, o_: ema_decay * t_ + (1.0 - ema_decay) * o_,
        teacher_params, online_params)

    return dict(seg_loss=sup_loss, reg_loss=pseudo_loss), new_teacher


def init_net_params(key, c_in=3, hidden=HIDDEN, num_classes=NUM_CLASSES):
    """Class-major 1x1-conv params: w1 (H,3), b1 (H,1), w2 (C,H), b2 (C,1)."""
    k1, k2 = jax.random.split(key)
    w1 = jax.random.normal(k1, (hidden, c_in), jnp.float32) * 0.1
    b1 = jnp.zeros((hidden, 1), jnp.float32)
    w2 = jax.random.normal(k2, (num_classes, hidden), jnp.float32) * 0.1
    b2 = jnp.zeros((num_classes, 1), jnp.float32)
    return (w1, b1, w2, b2)


if __name__ == "__main__":
    key = jax.random.PRNGKey(0)
    k_img, k_imgu, k_tgt, k_ign, k_par = jax.random.split(key, 5)

    B, C, H, W = 2, 3, 16, 16
    image = jax.random.uniform(k_img, (B, C, H, W), jnp.float32)
    image_u = jax.random.uniform(k_imgu, (B, C, H, W), jnp.float32)
    target = jax.random.randint(k_tgt, (B, H, W), 0, NUM_CLASSES)
    ignore = jax.random.uniform(k_ign, (B, H, W)) < 0.1
    target = jnp.where(ignore, IGNORE, target).astype(jnp.int32)

    online_params = init_net_params(k_par)
    # target_net initialized as a copy of online_net (as in __init__)
    teacher_params = jax.tree_util.tree_map(lambda p: p, online_params)

    fwd = jax.jit(mean_teacher_forward_train, static_argnames=("ema_decay",))
    losses, new_teacher = fwd(online_params, teacher_params, image, target,
                              image_u, ema_decay=0.99)

    jax.block_until_ready(losses["seg_loss"])
    jax.block_until_ready(losses["reg_loss"])
    jax.block_until_ready(new_teacher)

    assert jnp.isfinite(losses["seg_loss"]) and jnp.isfinite(losses["reg_loss"])
    print("KERNEL_OK")
</pallas_src>

<mosaic_0001>
module attributes {stable_mosaic.version = 11 : i64} {
  func.func @teacher_entropy_kernel(%arg0: i32, %arg1: memref<3x1024xbf16, #tpu.memory_space<vmem>>, %arg2: memref<16x3xbf16, #tpu.memory_space<vmem>>, %arg3: memref<16x1xf32, #tpu.memory_space<vmem>>, %arg4: memref<4x16xbf16, #tpu.memory_space<vmem>>, %arg5: memref<4x1xf32, #tpu.memory_space<vmem>>, %arg6: memref<1x1024xf32, #tpu.memory_space<vmem>>) attributes {dimension_semantics = [#tpu.dimension_semantics<parallel>], iteration_bounds = array<i64: 1>, scalar_prefetch = 0 : i64, scratch_operands = 0 : i64, tpu.core_type = #tpu.core_type<tc>, window_params = [{transform_indices = @transform_0, window_bounds = array<i64: 3, 1024>}, {pipeline_mode = #tpu.pipeline_mode<synchronous>, transform_indices = @transform_1, window_bounds = array<i64: 16, 3>}, {pipeline_mode = #tpu.pipeline_mode<synchronous>, transform_indices = @transform_2, window_bounds = array<i64: 16, 1>}, {pipeline_mode = #tpu.pipeline_mode<synchronous>, transform_indices = @transform_3, window_bounds = array<i64: 4, 16>}, {pipeline_mode = #tpu.pipeline_mode<synchronous>, transform_indices = @transform_4, window_bounds = array<i64: 4, 1>}, {transform_indices = @transform_5, window_bounds = array<i64: 1, 1024>}]} {
    %c0 = arith.constant 0 : index
    %c0_0 = arith.constant 0 : index
    %0 = vector.load %arg1[%c0, %c0_0] : memref<3x1024xbf16, #tpu.memory_space<vmem>>, vector<3x1024xbf16>
    %c0_1 = arith.constant 0 : index
    %c0_2 = arith.constant 0 : index
    %1 = vector.load %arg2[%c0_1, %c0_2] : memref<16x3xbf16, #tpu.memory_space<vmem>>, vector<16x3xbf16>
    %cst = arith.constant dense<0.000000e+00> : vector<16x1024xf32>
    %2 = tpu.matmul %1, %0, %cst {dimension_numbers = #tpu.dot_dimension_numbers<[1], [0], [0], [1], [0, 0, 1, 1], [], []>} : vector<16x3xbf16>, vector<3x1024xbf16>, vector<16x1024xf32> -> vector<16x1024xf32>
    %c0_3 = arith.constant 0 : index
    %c0_4 = arith.constant 0 : index
    %3 = vector.load %arg3[%c0_3, %c0_4] : memref<16x1xf32, #tpu.memory_space<vmem>>, vector<16x1xf32>
    %4 = vector.broadcast %3 : vector<16x1xf32> to vector<16x1024xf32>
    %5 = arith.addf %2, %4 : vector<16x1024xf32>
    %cst_5 = arith.constant 0.000000e+00 : f32
    %6 = vector.broadcast %cst_5 : f32 to vector<16x1024xf32>
    %7 = arith.maximumf %5, %6 : vector<16x1024xf32>
    %8 = arith.truncf %7 : vector<16x1024xf32> to vector<16x1024xbf16>
    %c0_6 = arith.constant 0 : index
    %c0_7 = arith.constant 0 : index
    %9 = vector.load %arg4[%c0_6, %c0_7] : memref<4x16xbf16, #tpu.memory_space<vmem>>, vector<4x16xbf16>
    %cst_8 = arith.constant dense<0.000000e+00> : vector<4x1024xf32>
    %10 = tpu.matmul %9, %8, %cst_8 {dimension_numbers = #tpu.dot_dimension_numbers<[1], [0], [0], [1], [0, 0, 1, 1], [], []>} : vector<4x16xbf16>, vector<16x1024xbf16>, vector<4x1024xf32> -> vector<4x1024xf32>
    %c0_9 = arith.constant 0 : index
    %c0_10 = arith.constant 0 : index
    %11 = vector.load %arg5[%c0_9, %c0_10] : memref<4x1xf32, #tpu.memory_space<vmem>>, vector<4x1xf32>
    %12 = vector.broadcast %11 : vector<4x1xf32> to vector<4x1024xf32>
    %13 = arith.addf %10, %12 : vector<4x1024xf32>
    %cst_11 = arith.constant dense<0xFF800000> : vector<1024xf32>
    %14 = vector.multi_reduction <maximumf>, %13, %cst_11 [0] : vector<4x1024xf32> to vector<1024xf32>
    %15 = vector.shape_cast %14 : vector<1024xf32> to vector<1x1024xf32>
    %16 = vector.broadcast %15 : vector<1x1024xf32> to vector<4x1024xf32>
    %17 = arith.subf %13, %16 : vector<4x1024xf32>
    %18 = math.exp %17 : vector<4x1024xf32>
    %cst_12 = arith.constant dense<0.000000e+00> : vector<1024xf32>
    %19 = vector.multi_reduction <add>, %18, %cst_12 [0] : vector<4x1024xf32> to vector<1024xf32>
    %20 = vector.shape_cast %19 : vector<1024xf32> to vector<1x1024xf32>
    %21 = vector.broadcast %20 : vector<1x1024xf32> to vector<4x1024xf32>
    %22 = arith.divf %18, %21 : vector<4x1024xf32>
    %cst_13 = arith.constant 1.000000e-10 : f32
    %23 = vector.broadcast %cst_13 : f32 to vector<4x1024xf32>
    %24 = arith.addf %22, %23 : vector<4x1024xf32>
    %25 = math.log %24 : vector<4x1024xf32>
    %26 = arith.mulf %22, %25 : vector<4x1024xf32>
    %cst_14 = arith.constant dense<0.000000e+00> : vector<1024xf32>
    %27 = vector.multi_reduction <add>, %26, %cst_14 [0] : vector<4x1024xf32> to vector<1024xf32>
    %28 = vector.shape_cast %27 : vector<1024xf32> to vector<1x1024xf32>
    %cst_15 = arith.constant 0.000000e+00 : f32
    %29 = vector.broadcast %cst_15 : f32 to vector<1x1024xf32>
    %30 = arith.subf %29, %28 : vector<1x1024xf32>
    %c0_16 = arith.constant 0 : index
    %c0_17 = arith.constant 0 : index
    %31 = vector.load %arg6[%c0_16, %c0_17] : memref<1x1024xf32, #tpu.memory_space<vmem>>, vector<1x1024xf32>
    tpu.vector_store %arg6[%c0_16, %c0_17], %30 {strides = array<i32>} : memref<1x1024xf32, #tpu.memory_space<vmem>>, vector<1x1024xf32>,
    return
  }
  func.func @transform_0(%arg0: i32) -> (i32, i32) {
    %c0_i32 = arith.constant 0 : i32
    %c0_i32_0 = arith.constant 0 : i32
    return %c0_i32, %arg0 : i32, i32
  }
  func.func @transform_1(%arg0: i32) -> (i32, i32) {
    %c0_i32 = arith.constant 0 : i32
    %c0_i32_0 = arith.constant 0 : i32
    %c0_i32_1 = arith.constant 0 : i32
    return %c0_i32, %c0_i32_0 : i32, i32
  }
  func.func @transform_2(%arg0: i32) -> (i32, i32) {
    %c0_i32 = arith.constant 0 : i32
    %c0_i32_0 = arith.constant 0 : i32
    %c0_i32_1 = arith.constant 0 : i32
    return %c0_i32, %c0_i32_0 : i32, i32
  }
  func.func @transform_3(%arg0: i32) -> (i32, i32) {
    %c0_i32 = arith.constant 0 : i32
    %c0_i32_0 = arith.constant 0 : i32
    %c0_i32_1 = arith.constant 0 : i32
    return %c0_i32, %c0_i32_0 : i32, i32
  }
  func.func @transform_4(%arg0: i32) -> (i32, i32) {
    %c0_i32 = arith.constant 0 : i32
    %c0_i32_0 = arith.constant 0 : i32
    %c0_i32_1 = arith.constant 0 : i32
    return %c0_i32, %c0_i32_0 : i32, i32
  }
  func.func @transform_5(%arg0: i32) -> (i32, i32) {
    %c0_i32 = arith.constant 0 : i32
    %c0_i32_0 = arith.constant 0 : i32
    return %c0_i32, %arg0 : i32, i32
  }
}

module attributes {stable_mosaic.version = 11 : i64} {
  func.func @pseudo_ce_kernel(%arg0: i32, %arg1: i32, %arg2: memref<1x1xf32, #tpu.memory_space<smem>>, %arg3: memref<3x1024xbf16, #tpu.memory_space<vmem>>, %arg4: memref<16x3xbf16, #tpu.memory_space<vmem>>, %arg5: memref<16x1xf32, #tpu.memory_space<vmem>>, %arg6: memref<4x16xbf16, #tpu.memory_space<vmem>>, %arg7: memref<4x1xf32, #tpu.memory_space<vmem>>, %arg8: memref<16x3xbf16, #tpu.memory_space<vmem>>, %arg9: memref<16x1xf32, #tpu.memory_space<vmem>>, %arg10: memref<4x16xbf16, #tpu.memory_space<vmem>>, %arg11: memref<4x1xf32, #tpu.memory_space<vmem>>, %arg12: memref<8x128xf32, #tpu.memory_space<vmem>>) attributes {dimension_semantics = [#tpu.dimension_semantics<parallel>, #tpu.dimension_semantics<arbitrary>], iteration_bounds = array<i64: 1, 1>, scalar_prefetch = 0 : i64, scratch_operands = 0 : i64, tpu.core_type = #tpu.core_type<tc>, window_params = [{transform_indices = @transform_0, window_bounds = array<i64: 1, 1>}, {transform_indices = @transform_1, window_bounds = array<i64: 3, 1024>}, {pipeline_mode = #tpu.pipeline_mode<synchronous>, transform_indices = @transform_2, window_bounds = array<i64: 16, 3>}, {pipeline_mode = #tpu.pipeline_mode<synchronous>, transform_indices = @transform_3, window_bounds = array<i64: 16, 1>}, {pipeline_mode = #tpu.pipeline_mode<synchronous>, transform_indices = @transform_4, window_bounds = array<i64: 4, 16>}, {pipeline_mode = #tpu.pipeline_mode<synchronous>, transform_indices = @transform_5, window_bounds = array<i64: 4, 1>}, {pipeline_mode = #tpu.pipeline_mode<synchronous>, transform_indices = @transform_6, window_bounds = array<i64: 16, 3>}, {pipeline_mode = #tpu.pipeline_mode<synchronous>, transform_indices = @transform_7, window_bounds = array<i64: 16, 1>}, {pipeline_mode = #tpu.pipeline_mode<synchronous>, transform_indices = @transform_8, window_bounds = array<i64: 4, 16>}, {pipeline_mode = #tpu.pipeline_mode<synchronous>, transform_indices = @transform_9, window_bounds = array<i64: 4, 1>}, {transform_indices = @transform_10, window_bounds = array<i64: 8, 128>}]} {
    %c0 = arith.constant 0 : index
    %c0_0 = arith.constant 0 : index
    %0 = vector.load %arg3[%c0, %c0_0] : memref<3x1024xbf16, #tpu.memory_space<vmem>>, vector<3x1024xbf16>
    %c0_1 = arith.constant 0 : index
    %c0_2 = arith.constant 0 : index
    %1 = vector.load %arg4[%c0_1, %c0_2] : memref<16x3xbf16, #tpu.memory_space<vmem>>, vector<16x3xbf16>
    %cst = arith.constant dense<0.000000e+00> : vector<16x1024xf32>
    %2 = tpu.matmul %1, %0, %cst {dimension_numbers = #tpu.dot_dimension_numbers<[1], [0], [0], [1], [0, 0, 1, 1], [], []>} : vector<16x3xbf16>, vector<3x1024xbf16>, vector<16x1024xf32> -> vector<16x1024xf32>
    %c0_3 = arith.constant 0 : index
    %c0_4 = arith.constant 0 : index
    %3 = vector.load %arg5[%c0_3, %c0_4] : memref<16x1xf32, #tpu.memory_space<vmem>>, vector<16x1xf32>
    %4 = vector.broadcast %3 : vector<16x1xf32> to vector<16x1024xf32>
    %5 = arith.addf %2, %4 : vector<16x1024xf32>
    %cst_5 = arith.constant 0.000000e+00 : f32
    %6 = vector.broadcast %cst_5 : f32 to vector<16x1024xf32>
    %7 = arith.maximumf %5, %6 : vector<16x1024xf32>
    %8 = arith.truncf %7 : vector<16x1024xf32> to vector<16x1024xbf16>
    %c0_6 = arith.constant 0 : index
    %c0_7 = arith.constant 0 : index
    %9 = vector.load %arg6[%c0_6, %c0_7] : memref<4x16xbf16, #tpu.memory_space<vmem>>, vector<4x16xbf16>
    %cst_8 = arith.constant dense<0.000000e+00> : vector<4x1024xf32>
    %10 = tpu.matmul %9, %8, %cst_8 {dimension_numbers = #tpu.dot_dimension_numbers<[1], [0], [0], [1], [0, 0, 1, 1], [], []>} : vector<4x16xbf16>, vector<16x1024xbf16>, vector<4x1024xf32> -> vector<4x1024xf32>
    %c0_9 = arith.constant 0 : index
    %c0_10 = arith.constant 0 : index
    %11 = vector.load %arg7[%c0_9, %c0_10] : memref<4x1xf32, #tpu.memory_space<vmem>>, vector<4x1xf32>
    %12 = vector.broadcast %11 : vector<4x1xf32> to vector<4x1024xf32>
    %13 = arith.addf %10, %12 : vector<4x1024xf32>
    %cst_11 = arith.constant dense<0xFF800000> : vector<1024xf32>
    %14 = vector.multi_reduction <maximumf>, %13, %cst_11 [0] : vector<4x1024xf32> to vector<1024xf32>
    %15 = vector.shape_cast %14 : vector<1024xf32> to vector<1x1024xf32>
    %16 = vector.broadcast %15 : vector<1x1024xf32> to vector<4x1024xf32>
    %17 = arith.subf %13, %16 : vector<4x1024xf32>
    %18 = math.exp %17 : vector<4x1024xf32>
    %cst_12 = arith.constant dense<0.000000e+00> : vector<1024xf32>
    %19 = vector.multi_reduction <add>, %18, %cst_12 [0] : vector<4x1024xf32> to vector<1024xf32>
    %20 = vector.shape_cast %19 : vector<1024xf32> to vector<1x1024xf32>
    %21 = vector.broadcast %20 : vector<1x1024xf32> to vector<4x1024xf32>
    %22 = arith.divf %18, %21 : vector<4x1024xf32>
    %cst_13 = arith.constant 1.000000e-10 : f32
    %23 = vector.broadcast %cst_13 : f32 to vector<4x1024xf32>
    %24 = arith.addf %22, %23 : vector<4x1024xf32>
    %25 = math.log %24 : vector<4x1024xf32>
    %26 = arith.mulf %22, %25 : vector<4x1024xf32>
    %cst_14 = arith.constant dense<0.000000e+00> : vector<1024xf32>
    %27 = vector.multi_reduction <add>, %26, %cst_14 [0] : vector<4x1024xf32> to vector<1024xf32>
    %28 = vector.shape_cast %27 : vector<1024xf32> to vector<1x1024xf32>
    %cst_15 = arith.constant 0.000000e+00 : f32
    %29 = vector.broadcast %cst_15 : f32 to vector<1x1024xf32>
    %30 = arith.subf %29, %28 : vector<1x1024xf32>
    %31 = tpu.iota {dimensions = array<i32: 0>} : vector<4x1024xi32>
    %32 = vector.broadcast %15 : vector<1x1024xf32> to vector<4x1024xf32>
    %33 = arith.cmpf oeq, %13, %32 : vector<4x1024xf32>
    %c4_i32 = arith.constant 4 : i32
    %34 = vector.broadcast %c4_i32 : i32 to vector<4x1024xi32>
    %35 = arith.select %33, %31, %34 : vector<4x1024xi1>, vector<4x1024xi32>
    %cst_16 = arith.constant dense<2147483647> : vector<1024xi32>
    %36 = vector.multi_reduction <minsi>, %35, %cst_16 [0] : vector<4x1024xi32> to vector<1024xi32>
    %37 = vector.shape_cast %36 : vector<1024xi32> to vector<1x1024xi32>
    %c1_i32 = arith.constant 1 : i32
    %38 = arith.muli %arg0, %c1_i32 : i32
    %39 = arith.addi %38, %arg1 : i32
    %40 = tpu.iota {dimensions = array<i32: 1>} : vector<1x1024xi32>
    %c1024_i32 = arith.constant 1024 : i32
    %41 = arith.muli %39, %c1024_i32 : i32
    %42 = vector.broadcast %41 : i32 to vector<1x1024xi32>
    %43 = arith.addi %40, %42 : vector<1x1024xi32>
    %c512_i32 = arith.constant 512 : i32
    %44 = vector.broadcast %c512_i32 : i32 to vector<1x1024xi32>
    %45 = arith.cmpi slt, %43, %44 : vector<1x1024xi32>
    %c0_17 = arith.constant 0 : index
    %c0_18 = arith.constant 0 : index
    %46 = memref.load %arg2[%c0_17, %c0_18] : memref<1x1xf32, #tpu.memory_space<smem>>
    %47 = vector.broadcast %46 : f32 to vector<1x1024xf32>
    %48 = arith.cmpf olt, %30, %47 : vector<1x1024xf32>
    %49 = arith.andi %45, %48 : vector<1x1024xi1>
    %50 = arith.extui %49 : vector<1x1024xi1> to vector<1x1024xi32>
    %51 = arith.sitofp %50 : vector<1x1024xi32> to vector<1x1024xf32>
    %c0_19 = arith.constant 0 : index
    %c0_20 = arith.constant 0 : index
    %52 = vector.load %arg8[%c0_19, %c0_20] : memref<16x3xbf16, #tpu.memory_space<vmem>>, vector<16x3xbf16>
    %cst_21 = arith.constant dense<0.000000e+00> : vector<16x1024xf32>
    %53 = tpu.matmul %52, %0, %cst_21 {dimension_numbers = #tpu.dot_dimension_numbers<[1], [0], [0], [1], [0, 0, 1, 1], [], []>} : vector<16x3xbf16>, vector<3x1024xbf16>, vector<16x1024xf32> -> vector<16x1024xf32>
    %c0_22 = arith.constant 0 : index
    %c0_23 = arith.constant 0 : index
    %54 = vector.load %arg9[%c0_22, %c0_23] : memref<16x1xf32, #tpu.memory_space<vmem>>, vector<16x1xf32>
    %55 = vector.broadcast %54 : vector<16x1xf32> to vector<16x1024xf32>
    %56 = arith.addf %53, %55 : vector<16x1024xf32>
    %cst_24 = arith.constant 0.000000e+00 : f32
    %57 = vector.broadcast %cst_24 : f32 to vector<16x1024xf32>
    %58 = arith.maximumf %56, %57 : vector<16x1024xf32>
    %59 = arith.truncf %58 : vector<16x1024xf32> to vector<16x1024xbf16>
    %c0_25 = arith.constant 0 : index
    %c0_26 = arith.constant 0 : index
    %60 = vector.load %arg10[%c0_25, %c0_26] : memref<4x16xbf16, #tpu.memory_space<vmem>>, vector<4x16xbf16>
    %cst_27 = arith.constant dense<0.000000e+00> : vector<4x1024xf32>
    %61 = tpu.matmul %60, %59, %cst_27 {dimension_numbers = #tpu.dot_dimension_numbers<[1], [0], [0], [1], [0, 0, 1, 1], [], []>} : vector<4x16xbf16>, vector<16x1024xbf16>, vector<4x1024xf32> -> vector<4x1024xf32>
    %c0_28 = arith.constant 0 : index
    %c0_29 = arith.constant 0 : index
    %62 = vector.load %arg11[%c0_28, %c0_29] : memref<4x1xf32, #tpu.memory_space<vmem>>, vector<4x1xf32>
    %63 = vector.broadcast %62 : vector<4x1xf32> to vector<4x1024xf32>
    %64 = arith.addf %61, %63 : vector<4x1024xf32>
    %cst_30 = arith.constant dense<0xFF800000> : vector<1024xf32>
    %65 = vector.multi_reduction <maximumf>, %64, %cst_30 [0] : vector<4x1024xf32> to vector<1024xf32>
    %66 = vector.shape_cast %65 : vector<1024xf32> to vector<1x1024xf32>
    %67 = vector.broadcast %66 : vector<1x1024xf32> to vector<4x1024xf32>
    %68 = arith.subf %64, %67 : vector<4x1024xf32>
    %69 = math.exp %68 : vector<4x1024xf32>
    %cst_31 = arith.constant dense<0.000000e+00> : vector<1024xf32>
    %70 = vector.multi_reduction <add>, %69, %cst_31 [0] : vector<4x1024xf32> to vector<1024xf32>
    %71 = vector.shape_cast %70 : vector<1024xf32> to vector<1x1024xf32>
    %72 = math.log %71 : vector<1x1024xf32>
    %73 = arith.addf %72, %66 : vector<1x1024xf32>
    %74 = tpu.iota {dimensions = array<i32: 0>} : vector<4x1024xi32>
    %75 = vector.broadcast %37 : vector<1x1024xi32> to vector<4x1024xi32>
    %76 = arith.cmpi eq, %74, %75 : vector<4x1024xi32>
    %cst_32 = arith.constant 0.000000e+00 : f32
    %77 = vector.broadcast %cst_32 : f32 to vector<4x1024xf32>
    %78 = arith.select %76, %64, %77 : vector<4x1024xi1>, vector<4x1024xf32>
    %cst_33 = arith.constant dense<0.000000e+00> : vector<1024xf32>
    %79 = vector.multi_reduction <add>, %78, %cst_33 [0] : vector<4x1024xf32> to vector<1024xf32>
    %80 = vector.shape_cast %79 : vector<1024xf32> to vector<1x1024xf32>
    %81 = arith.subf %73, %80 : vector<1x1024xf32>
    %82 = arith.mulf %81, %51 : vector<1x1024xf32>
    %cst_34 = arith.constant dense<0.000000e+00> : vector<1xf32>
    %83 = vector.multi_reduction <add>, %82, %cst_34 [1] : vector<1x1024xf32> to vector<1xf32>
    %84 = vector.shape_cast %83 : vector<1xf32> to vector<1x1xf32>
    %cst_35 = arith.constant dense<0.000000e+00> : vector<1xf32>
    %85 = vector.multi_reduction <add>, %51, %cst_35 [1] : vector<1x1024xf32> to vector<1xf32>
    %86 = vector.shape_cast %85 : vector<1xf32> to vector<1x1xf32>
    %87 = tpu.iota {dimensions = array<i32: 0>} : vector<8x128xi32>
    %c0_i32 = arith.constant 0 : i32
    %88 = vector.broadcast %c0_i32 : i32 to vector<8x128xi32>
    %89 = arith.cmpi eq, %87, %88 : vector<8x128xi32>
    %cst_36 = arith.constant 0.000000e+00 : f32
    %90 = vector.shape_cast %84 : vector<1x1xf32> to vector<1x1xf32>
    %91 = vector.broadcast %90 : vector<1x1xf32> to vector<8x128xf32>
    %92 = vector.broadcast %cst_36 : f32 to vector<8x128xf32>
    %93 = arith.select %89, %91, %92 : vector<8x128xi1>, vector<8x128xf32>
    %c1_i32_37 = arith.constant 1 : i32
    %94 = vector.broadcast %c1_i32_37 : i32 to vector<8x128xi32>
    %95 = arith.cmpi eq, %87, %94 : vector<8x128xi32>
    %cst_38 = arith.constant 0.000000e+00 : f32
    %96 = vector.shape_cast %86 : vector<1x1xf32> to vector<1x1xf32>
    %97 = vector.broadcast %96 : vector<1x1xf32> to vector<8x128xf32>
    %98 = vector.broadcast %cst_38 : f32 to vector<8x128xf32>
    %99 = arith.select %95, %97, %98 : vector<8x128xi1>, vector<8x128xf32>
    %100 = arith.addf %93, %99 : vector<8x128xf32>
    %c0_i32_39 = arith.constant 0 : i32
    %101 = arith.cmpi eq, %arg1, %c0_i32_39 : i32
    %102 = arith.extui %101 : i1 to i32
    %c0_i32_40 = arith.constant 0 : i32
    %103 = arith.cmpi ne, %102, %c0_i32_40 : i32
    scf.if %103 {
      %cst_45 = arith.constant 0.000000e+00 : f32
      %107 = vector.broadcast %cst_45 : f32 to vector<8x128xf32>
      %c0_46 = arith.constant 0 : index
      %c0_47 = arith.constant 0 : index
      %108 = vector.load %arg12[%c0_46, %c0_47] : memref<8x128xf32, #tpu.memory_space<vmem>>, vector<8x128xf32>
      tpu.vector_store %arg12[%c0_46, %c0_47], %107 {strides = array<i32>} : memref<8x128xf32, #tpu.memory_space<vmem>>, vector<8x128xf32>,
    } else {
    }
    %c0_41 = arith.constant 0 : index
    %c0_42 = arith.constant 0 : index
    %104 = vector.load %arg12[%c0_41, %c0_42] : memref<8x128xf32, #tpu.memory_space<vmem>>, vector<8x128xf32>
    %105 = arith.addf %104, %100 : vector<8x128xf32>
    %c0_43 = arith.constant 0 : index
    %c0_44 = arith.constant 0 : index
    %106 = vector.load %arg12[%c0_43, %c0_44] : memref<8x128xf32, #tpu.memory_space<vmem>>, vector<8x128xf32>
    tpu.vector_store %arg12[%c0_43, %c0_44], %105 {strides = array<i32>} : memref<8x128xf32, #tpu.memory_space<vmem>>, vector<8x128xf32>,
    return
  }
  func.func @transform_0(%arg0: i32, %arg1: i32) -> (i32, i32) {
    %c0_i32 = arith.constant 0 : i32
    %c0_i32_0 = arith.constant 0 : i32
    %c0_i32_1 = arith.constant 0 : i32
    return %c0_i32, %c0_i32_0 : i32, i32
  }
  func.func @transform_1(%arg0: i32, %arg1: i32) -> (i32, i32) {
    %c1_i32 = arith.constant 1 : i32
    %0 = arith.muli %arg0, %c1_i32 : i32
    %1 = arith.addi %0, %arg1 : i32
    %c0_i32 = arith.constant 0 : i32
    %c0_i32_0 = arith.constant 0 : i32
    return %c0_i32, %1 : i32, i32
  }
  func.func @transform_2(%arg0: i32, %arg1: i32) -> (i32, i32) {
    %c0_i32 = arith.constant 0 : i32
    %c0_i32_0 = arith.constant 0 : i32
    %c0_i32_1 = arith.constant 0 : i32
    return %c0_i32, %c0_i32_0 : i32, i32
  }
  func.func @transform_3(%arg0: i32, %arg1: i32) -> (i32, i32) {
    %c0_i32 = arith.constant 0 : i32
    %c0_i32_0 = arith.constant 0 : i32
    %c0_i32_1 = arith.constant 0 : i32
    return %c0_i32, %c0_i32_0 : i32, i32
  }
  func.func @transform_4(%arg0: i32, %arg1: i32) -> (i32, i32) {
    %c0_i32 = arith.constant 0 : i32
    %c0_i32_0 = arith.constant 0 : i32
    %c0_i32_1 = arith.constant 0 : i32
    return %c0_i32, %c0_i32_0 : i32, i32
  }
  func.func @transform_5(%arg0: i32, %arg1: i32) -> (i32, i32) {
    %c0_i32 = arith.constant 0 : i32
    %c0_i32_0 = arith.constant 0 : i32
    %c0_i32_1 = arith.constant 0 : i32
    return %c0_i32, %c0_i32_0 : i32, i32
  }
  func.func @transform_6(%arg0: i32, %arg1: i32) -> (i32, i32) {
    %c0_i32 = arith.constant 0 : i32
    %c0_i32_0 = arith.constant 0 : i32
    %c0_i32_1 = arith.constant 0 : i32
    return %c0_i32, %c0_i32_0 : i32, i32
  }
  func.func @transform_7(%arg0: i32, %arg1: i32) -> (i32, i32) {
    %c0_i32 = arith.constant 0 : i32
    %c0_i32_0 = arith.constant 0 : i32
    %c0_i32_1 = arith.constant 0 : i32
    return %c0_i32, %c0_i32_0 : i32, i32
  }
  func.func @transform_8(%arg0: i32, %arg1: i32) -> (i32, i32) {
    %c0_i32 = arith.constant 0 : i32
    %c0_i32_0 = arith.constant 0 : i32
    %c0_i32_1 = arith.constant 0 : i32
    return %c0_i32, %c0_i32_0 : i32, i32
  }
  func.func @transform_9(%arg0: i32, %arg1: i32) -> (i32, i32) {
    %c0_i32 = arith.constant 0 : i32
    %c0_i32_0 = arith.constant 0 : i32
    %c0_i32_1 = arith.constant 0 : i32
    return %c0_i32, %c0_i32_0 : i32, i32
  }
  func.func @transform_10(%arg0: i32, %arg1: i32) -> (i32, i32) {
    %c0_i32 = arith.constant 0 : i32
    %c0_i32_0 = arith.constant 0 : i32
    return %arg0, %c0_i32 : i32, i32
  }
}

module attributes {stable_mosaic.version = 11 : i64} {
  func.func @labeled_ce_kernel(%arg0: i32, %arg1: i32, %arg2: memref<3x1024xbf16, #tpu.memory_space<vmem>>, %arg3: memref<1x1024xi32, #tpu.memory_space<vmem>>, %arg4: memref<16x3xbf16, #tpu.memory_space<vmem>>, %arg5: memref<16x1xf32, #tpu.memory_space<vmem>>, %arg6: memref<4x16xbf16, #tpu.memory_space<vmem>>, %arg7: memref<4x1xf32, #tpu.memory_space<vmem>>, %arg8: memref<8x128xf32, #tpu.memory_space<vmem>>) attributes {dimension_semantics = [#tpu.dimension_semantics<parallel>, #tpu.dimension_semantics<arbitrary>], iteration_bounds = array<i64: 1, 1>, scalar_prefetch = 0 : i64, scratch_operands = 0 : i64, tpu.core_type = #tpu.core_type<tc>, window_params = [{transform_indices = @transform_0, window_bounds = array<i64: 3, 1024>}, {transform_indices = @transform_1, window_bounds = array<i64: 1, 1024>}, {pipeline_mode = #tpu.pipeline_mode<synchronous>, transform_indices = @transform_2, window_bounds = array<i64: 16, 3>}, {pipeline_mode = #tpu.pipeline_mode<synchronous>, transform_indices = @transform_3, window_bounds = array<i64: 16, 1>}, {pipeline_mode = #tpu.pipeline_mode<synchronous>, transform_indices = @transform_4, window_bounds = array<i64: 4, 16>}, {pipeline_mode = #tpu.pipeline_mode<synchronous>, transform_indices = @transform_5, window_bounds = array<i64: 4, 1>}, {transform_indices = @transform_6, window_bounds = array<i64: 8, 128>}]} {
    %c0 = arith.constant 0 : index
    %c0_0 = arith.constant 0 : index
    %0 = vector.load %arg2[%c0, %c0_0] : memref<3x1024xbf16, #tpu.memory_space<vmem>>, vector<3x1024xbf16>
    %c0_1 = arith.constant 0 : index
    %c0_2 = arith.constant 0 : index
    %1 = vector.load %arg4[%c0_1, %c0_2] : memref<16x3xbf16, #tpu.memory_space<vmem>>, vector<16x3xbf16>
    %cst = arith.constant dense<0.000000e+00> : vector<16x1024xf32>
    %2 = tpu.matmul %1, %0, %cst {dimension_numbers = #tpu.dot_dimension_numbers<[1], [0], [0], [1], [0, 0, 1, 1], [], []>} : vector<16x3xbf16>, vector<3x1024xbf16>, vector<16x1024xf32> -> vector<16x1024xf32>
    %c0_3 = arith.constant 0 : index
    %c0_4 = arith.constant 0 : index
    %3 = vector.load %arg5[%c0_3, %c0_4] : memref<16x1xf32, #tpu.memory_space<vmem>>, vector<16x1xf32>
    %4 = vector.broadcast %3 : vector<16x1xf32> to vector<16x1024xf32>
    %5 = arith.addf %2, %4 : vector<16x1024xf32>
    %cst_5 = arith.constant 0.000000e+00 : f32
    %6 = vector.broadcast %cst_5 : f32 to vector<16x1024xf32>
    %7 = arith.maximumf %5, %6 : vector<16x1024xf32>
    %8 = arith.truncf %7 : vector<16x1024xf32> to vector<16x1024xbf16>
    %c0_6 = arith.constant 0 : index
    %c0_7 = arith.constant 0 : index
    %9 = vector.load %arg6[%c0_6, %c0_7] : memref<4x16xbf16, #tpu.memory_space<vmem>>, vector<4x16xbf16>
    %cst_8 = arith.constant dense<0.000000e+00> : vector<4x1024xf32>
    %10 = tpu.matmul %9, %8, %cst_8 {dimension_numbers = #tpu.dot_dimension_numbers<[1], [0], [0], [1], [0, 0, 1, 1], [], []>} : vector<4x16xbf16>, vector<16x1024xbf16>, vector<4x1024xf32> -> vector<4x1024xf32>
    %c0_9 = arith.constant 0 : index
    %c0_10 = arith.constant 0 : index
    %11 = vector.load %arg7[%c0_9, %c0_10] : memref<4x1xf32, #tpu.memory_space<vmem>>, vector<4x1xf32>
    %12 = vector.broadcast %11 : vector<4x1xf32> to vector<4x1024xf32>
    %13 = arith.addf %10, %12 : vector<4x1024xf32>
    %c0_11 = arith.constant 0 : index
    %c0_12 = arith.constant 0 : index
    %14 = vector.load %arg3[%c0_11, %c0_12] : memref<1x1024xi32, #tpu.memory_space<vmem>>, vector<1x1024xi32>
    %c255_i32 = arith.constant 255 : i32
    %15 = vector.broadcast %c255_i32 : i32 to vector<1x1024xi32>
    %16 = arith.cmpi ne, %14, %15 : vector<1x1024xi32>
    %17 = arith.extui %16 : vector<1x1024xi1> to vector<1x1024xi32>
    %18 = arith.sitofp %17 : vector<1x1024xi32> to vector<1x1024xf32>
    %cst_13 = arith.constant dense<0xFF800000> : vector<1024xf32>
    %19 = vector.multi_reduction <maximumf>, %13, %cst_13 [0] : vector<4x1024xf32> to vector<1024xf32>
    %20 = vector.shape_cast %19 : vector<1024xf32> to vector<1x1024xf32>
    %21 = vector.broadcast %20 : vector<1x1024xf32> to vector<4x1024xf32>
    %22 = arith.subf %13, %21 : vector<4x1024xf32>
    %23 = math.exp %22 : vector<4x1024xf32>
    %cst_14 = arith.constant dense<0.000000e+00> : vector<1024xf32>
    %24 = vector.multi_reduction <add>, %23, %cst_14 [0] : vector<4x1024xf32> to vector<1024xf32>
    %25 = vector.shape_cast %24 : vector<1024xf32> to vector<1x1024xf32>
    %26 = math.log %25 : vector<1x1024xf32>
    %27 = arith.addf %26, %20 : vector<1x1024xf32>
    %28 = tpu.iota {dimensions = array<i32: 0>} : vector<4x1024xi32>
    %29 = vector.broadcast %14 : vector<1x1024xi32> to vector<4x1024xi32>
    %30 = arith.cmpi eq, %28, %29 : vector<4x1024xi32>
    %cst_15 = arith.constant 0.000000e+00 : f32
    %31 = vector.broadcast %cst_15 : f32 to vector<4x1024xf32>
    %32 = arith.select %30, %13, %31 : vector<4x1024xi1>, vector<4x1024xf32>
    %cst_16 = arith.constant dense<0.000000e+00> : vector<1024xf32>
    %33 = vector.multi_reduction <add>, %32, %cst_16 [0] : vector<4x1024xf32> to vector<1024xf32>
    %34 = vector.shape_cast %33 : vector<1024xf32> to vector<1x1024xf32>
    %35 = arith.subf %27, %34 : vector<1x1024xf32>
    %36 = arith.mulf %35, %18 : vector<1x1024xf32>
    %cst_17 = arith.constant dense<0.000000e+00> : vector<1xf32>
    %37 = vector.multi_reduction <add>, %36, %cst_17 [1] : vector<1x1024xf32> to vector<1xf32>
    %38 = vector.shape_cast %37 : vector<1xf32> to vector<1x1xf32>
    %cst_18 = arith.constant dense<0.000000e+00> : vector<1xf32>
    %39 = vector.multi_reduction <add>, %18, %cst_18 [1] : vector<1x1024xf32> to vector<1xf32>
    %40 = vector.shape_cast %39 : vector<1xf32> to vector<1x1xf32>
    %41 = tpu.iota {dimensions = array<i32: 0>} : vector<8x128xi32>
    %c0_i32 = arith.constant 0 : i32
    %42 = vector.broadcast %c0_i32 : i32 to vector<8x128xi32>
    %43 = arith.cmpi eq, %41, %42 : vector<8x128xi32>
    %cst_19 = arith.constant 0.000000e+00 : f32
    %44 = vector.shape_cast %38 : vector<1x1xf32> to vector<1x1xf32>
    %45 = vector.broadcast %44 : vector<1x1xf32> to vector<8x128xf32>
    %46 = vector.broadcast %cst_19 : f32 to vector<8x128xf32>
    %47 = arith.select %43, %45, %46 : vector<8x128xi1>, vector<8x128xf32>
    %c1_i32 = arith.constant 1 : i32
    %48 = vector.broadcast %c1_i32 : i32 to vector<8x128xi32>
    %49 = arith.cmpi eq, %41, %48 : vector<8x128xi32>
    %cst_20 = arith.constant 0.000000e+00 : f32
    %50 = vector.shape_cast %40 : vector<1x1xf32> to vector<1x1xf32>
    %51 = vector.broadcast %50 : vector<1x1xf32> to vector<8x128xf32>
    %52 = vector.broadcast %cst_20 : f32 to vector<8x128xf32>
    %53 = arith.select %49, %51, %52 : vector<8x128xi1>, vector<8x128xf32>
    %54 = arith.addf %47, %53 : vector<8x128xf32>
    %c0_i32_21 = arith.constant 0 : i32
    %55 = arith.cmpi eq, %arg1, %c0_i32_21 : i32
    %56 = arith.extui %55 : i1 to i32
    %c0_i32_22 = arith.constant 0 : i32
    %57 = arith.cmpi ne, %56, %c0_i32_22 : i32
    scf.if %57 {
      %cst_27 = arith.constant 0.000000e+00 : f32
      %61 = vector.broadcast %cst_27 : f32 to vector<8x128xf32>
      %c0_28 = arith.constant 0 : index
      %c0_29 = arith.constant 0 : index
      %62 = vector.load %arg8[%c0_28, %c0_29] : memref<8x128xf32, #tpu.memory_space<vmem>>, vector<8x128xf32>
      tpu.vector_store %arg8[%c0_28, %c0_29], %61 {strides = array<i32>} : memref<8x128xf32, #tpu.memory_space<vmem>>, vector<8x128xf32>,
    } else {
    }
    %c0_23 = arith.constant 0 : index
    %c0_24 = arith.constant 0 : index
    %58 = vector.load %arg8[%c0_23, %c0_24] : memref<8x128xf32, #tpu.memory_space<vmem>>, vector<8x128xf32>
    %59 = arith.addf %58, %54 : vector<8x128xf32>
    %c0_25 = arith.constant 0 : index
    %c0_26 = arith.constant 0 : index
    %60 = vector.load %arg8[%c0_25, %c0_26] : memref<8x128xf32, #tpu.memory_space<vmem>>, vector<8x128xf32>
    tpu.vector_store %arg8[%c0_25, %c0_26], %59 {strides = array<i32>} : memref<8x128xf32, #tpu.memory_space<vmem>>, vector<8x128xf32>,
    return
  }
  func.func @transform_0(%arg0: i32, %arg1: i32) -> (i32, i32) {
    %c1_i32 = arith.constant 1 : i32
    %0 = arith.muli %arg0, %c1_i32 : i32
    %1 = arith.addi %0, %arg1 : i32
    %c0_i32 = arith.constant 0 : i32
    %c0_i32_0 = arith.constant 0 : i32
    return %c0_i32, %1 : i32, i32
  }
  func.func @transform_1(%arg0: i32, %arg1: i32) -> (i32, i32) {
    %c1_i32 = arith.constant 1 : i32
    %0 = arith.muli %arg0, %c1_i32 : i32
    %1 = arith.addi %0, %arg1 : i32
    %c0_i32 = arith.constant 0 : i32
    %c0_i32_0 = arith.constant 0 : i32
    return %c0_i32, %1 : i32, i32
  }
  func.func @transform_2(%arg0: i32, %arg1: i32) -> (i32, i32) {
    %c0_i32 = arith.constant 0 : i32
    %c0_i32_0 = arith.constant 0 : i32
    %c0_i32_1 = arith.constant 0 : i32
    return %c0_i32, %c0_i32_0 : i32, i32
  }
  func.func @transform_3(%arg0: i32, %arg1: i32) -> (i32, i32) {
    %c0_i32 = arith.constant 0 : i32
    %c0_i32_0 = arith.constant 0 : i32
    %c0_i32_1 = arith.constant 0 : i32
    return %c0_i32, %c0_i32_0 : i32, i32
  }
  func.func @transform_4(%arg0: i32, %arg1: i32) -> (i32, i32) {
    %c0_i32 = arith.constant 0 : i32
    %c0_i32_0 = arith.constant 0 : i32
    %c0_i32_1 = arith.constant 0 : i32
    return %c0_i32, %c0_i32_0 : i32, i32
  }
  func.func @transform_5(%arg0: i32, %arg1: i32) -> (i32, i32) {
    %c0_i32 = arith.constant 0 : i32
    %c0_i32_0 = arith.constant 0 : i32
    %c0_i32_1 = arith.constant 0 : i32
    return %c0_i32, %c0_i32_0 : i32, i32
  }
  func.func @transform_6(%arg0: i32, %arg1: i32) -> (i32, i32) {
    %c0_i32 = arith.constant 0 : i32
    %c0_i32_0 = arith.constant 0 : i32
    return %arg0, %c0_i32 : i32, i32
  }
}

</mosaic_0001>

<bundles_post_ra>
// kernel: mean_teacher_forward_train.3
= control target key start
LH: loop header
LB: loop body
LE: loop exit
PB: predicated region body
PF: predicated region fallthrough
CT: control target
= control target key end

     0   :  { %vm59_vm0 = vcmask 1040384   ;;  %v788_v2 = vmov 0   ;;  %vm60_vm1 = vcmask 1041408   ;;  %v789_v4 = vmov 65535   ;;  %s1059_s0 = inlined_call_operand.vmem [shape: bf16[3,1024], index: 0, kind: input, shape index: {}]   ;;  %s1060_s2 = inlined_call_operand.vmem [shape: f32[16,1], index: 2, kind: input, shape index: {}]   ;;  %s1061_s1 = inlined_call_operand.vmem [shape: bf16[16,3], index: 1, kind: input, shape index: {}]   ;;  %s1062_s4 = inlined_call_operand.vmem [shape: f32[4,1], index: 4, kind: input, shape index: {}]   ;;  %s1063_s3 = inlined_call_operand.vmem [shape: bf16[4,16], index: 3, kind: input, shape index: {}]   ;;  %s1064_s5 = inlined_call_operand.vmem [shape: f32[1,1024], index: 5, kind: output, shape index: {}]  }
   0x1   :  { %v21_v0 = vld [vmem:[%s1059_s0] sm:$0xff]  ;;  %738 = vset.pattern.permute.xlu0 %v788_v2  ;;  %v22_v3 = vld [vmem:[%s1059_s0 + $0x8] sm:$0xff]  ;;  %739 = vset.pattern.permute.xlu1 %v788_v2  ;;  %v61_v5 = vsel %vm59_vm0, 4294967295, %v789_v4  ;;  %vm55_vm2 = vcmask 23552   ;;  %vm222_vm3 = vcmask 130048   ;;  %vm330_vm4 = vcmask 1043456  }
   0x2   :  { %v25_v1 = vld [vmem:[%s1060_s2] sm:$0xff]  ;;  %43 = vst [vmem:[#allocation1] ss:$4 sm:$0xff] %v21_v0  ;;  %v62_v6 = vsel %vm60_vm1, %v61_v5, 0  ;;  %v26_v7 = vld [vmem:[%s1060_s2 + $0x8] sm:$0xff] }
   0x3   :  { %29 = vperm.xlu0 %738, %v25_v1   ;;  %46 = vst [vmem:[#allocation1 + $0x20] ss:$4 sm:$0xff] %v22_v3  ;;  %v735_v10 = vld [vmem:[%s1061_s1] sm:$0xff] }
   0x4   :  { %v216_v26 = vld [vmem:[%s1062_s4] sm:$0xf] }
   0x5   :  { %219 = vperm.xlu1 %739, %v216_v26   ;;  %v215_v48 = vld [vmem:[%s1063_s3] sm:$0x3] }
   0x9   :  { %v47_v8 = vld.sshfl [vmem:[#allocation1] sm:$0xff pattern:$0x73625140]  ;;  %v48_v9 = vld.sshfl [vmem:[#allocation1 + $0x8] sm:$0xff pattern:$0x73625140] }
   0xa   :  { %v63_v11 = vand.u32 %v62_v6, %v47_v8  ;;  %v65_v12 = vand.u32 %v62_v6, %v48_v9  ;;  %v49_v13 = vld.sshfl [vmem:[#allocation1 + $0x10] sm:$0xff pattern:$0x73625140]  ;;  %v50_v14 = vld.sshfl [vmem:[#allocation1 + $0x18] sm:$0xff pattern:$0x73625140] }
   0xb   :  { %v67_v15 = vand.u32 %v62_v6, %v49_v13  ;;  %v69_v16 = vand.u32 %v62_v6, %v50_v14  ;;  %v51_v17 = vld.sshfl [vmem:[#allocation1 + $0x20] sm:$0xff pattern:$0x73625140]  ;;  %v52_v18 = vld.sshfl [vmem:[#allocation1 + $0x28] sm:$0xff pattern:$0x73625140]  ;;  %34 = vperm.xlu0 %738, %v26_v7  }
   0xc   :  { %86 = vmatpush.bf16.msra.mxu0 %v63_v11  ;;  %100 = vmatpush.bf16.msra.mxu1 %v65_v12  ;;  %v71_v19 = vand.u32 %v62_v6, %v51_v17  ;;  %v73_v20 = vand.u32 %v62_v6, %v52_v18  ;;  %v53_v21 = vld.sshfl [vmem:[#allocation1 + $0x30] sm:$0xff pattern:$0x73625140]  ;;  %v54_v22 = vld.sshfl [vmem:[#allocation1 + $0x38] sm:$0xff pattern:$0x73625140] }
   0xd   :  { %114 = vmatpush.bf16.msra.mxu2 %v67_v15  ;;  %128 = vmatpush.bf16.msra.mxu3 %v69_v16  ;;  %v75_v23 = vand.u32 %v62_v6, %v53_v21  ;;  %v77_v24 = vand.u32 %v62_v6, %v54_v22 }
   0xf   :  { %719 = vmatmul.msk.bf16.vlgmr.msra.gmra.mxu0 %vm55_vm2, %v735_v10  ;;  %720 = vmatmul.msk.bf16.vlgmr.msra.gmra.mxu1 %vm55_vm2, %v735_v10 }
  0x10   :  { %142 = vmatpush.bf16.msrb.mxu0 %v71_v19  ;;  %156 = vmatpush.bf16.msrb.mxu1 %v73_v20 }
  0x11   :  { %721 = vmatmul.msk.bf16.vlgmr.msra.gmra.mxu2 %vm55_vm2, %v735_v10  ;;  %722 = vmatmul.msk.bf16.vlgmr.msra.gmra.mxu3 %vm55_vm2, %v735_v10 }
  0x12   :  { %170 = vmatpush.bf16.msrb.mxu2 %v75_v23  ;;  %184 = vmatpush.bf16.msrb.mxu3 %v77_v24 }
  0x1f   :  { %723 = vmatmul.msk.bf16.vlgmr.msrb.gmra.mxu0 %vm55_vm2, %v735_v10  ;;  %724 = vmatmul.msk.bf16.vlgmr.msrb.gmra.mxu1 %vm55_vm2, %v735_v10 }
  0x21   :  { %725 = vmatmul.msk.bf16.vlgmr.msrb.gmra.mxu2 %vm55_vm2, %v735_v10  ;;  %726 = vmatmul.msk.bf16.vlgmr.msrb.gmra.mxu3 %vm55_vm2, %v735_v10 }
  0x75   :  { %v30_v25 = vpop.permute.xlu0 %29 }
  0x77   :  { %v859_v21 = vpop.permute.xlu1 %219 }
  0x7d   :  { %v35_v29 = vpop.permute.xlu0 %34 }
  0x8c   :  { %v88_v27 = vpop.f32.mrf.mxu0  ;;  %v102_v28 = vpop.f32.mrf.mxu1 }
  0x8d   :  { %v89_v30 = vadd.f32 %v88_v27, %v30_v25  ;;  %v103_v31 = vadd.f32 %v102_v28, %v30_v25 }
  0x8f   :  { %v191_v38 = vmax.f32 %v89_v30, 0.0  ;;  %v192_v39 = vmax.f32 %v103_v31, 0.0 }
  0x94   :  { %v116_v32 = vpop.f32.mrf.mxu2  ;;  %v130_v33 = vpop.f32.mrf.mxu3 }
  0x95   :  { %v90_v34 = vpop.f32.mrf.mxu0  ;;  %v104_v35 = vpop.f32.mrf.mxu1  ;;  %v117_v44 = vadd.f32 %v116_v32, %v30_v25  ;;  %v131_v45 = vadd.f32 %v130_v33, %v30_v25 }
  0x96   :  { %v91_v36 = vadd.f32 %v90_v34, %v35_v29  ;;  %v105_v37 = vadd.f32 %v104_v35, %v35_v29 }
  0x97   :  { %v193_v53 = vmax.f32 %v117_v44, 0.0  ;;  %v194_v54 = vmax.f32 %v131_v45, 0.0 }
  0x98   :  { %v199_v40 = vmax.f32 %v91_v36, 0.0  ;;  %v200_v41 = vmax.f32 %v105_v37, 0.0 }
  0x9a   :  { %v207_v42 = vpack.c.bf16 %v199_v40, %v191_v38  ;;  %v208_v43 = vpack.c.bf16 %v200_v41, %v192_v39 }
  0x9c   :  { %v118_v46 = vpop.f32.mrf.mxu2  ;;  %v132_v47 = vpop.f32.mrf.mxu3  ;;  %233 = vmatpush.bf16.msra.mxu0 %v207_v42  ;;  %246 = vmatpush.bf16.msra.mxu1 %v208_v43 }
  0x9d   :  { %v119_v49 = vadd.f32 %v118_v46, %v35_v29  ;;  %v133_v50 = vadd.f32 %v132_v47, %v35_v29  ;;  %v144_v51 = vpop.f32.mrf.mxu0  ;;  %v158_v52 = vpop.f32.mrf.mxu1 }
  0x9e   :  { %v145_v59 = vadd.f32 %v144_v51, %v30_v25  ;;  %v159_v60 = vadd.f32 %v158_v52, %v30_v25 }
  0x9f   :  { %v201_v55 = vmax.f32 %v119_v49, 0.0  ;;  %v202_v56 = vmax.f32 %v133_v50, 0.0  ;;  %727 = vmatmul.msk.bf16.vlgmr.msra.gmra.mxu0 %vm222_vm3, %v215_v48  ;;  %728 = vmatmul.msk.bf16.vlgmr.msra.gmra.mxu1 %vm222_vm3, %v215_v48 }
  0xa0   :  { %v195_v3 = vmax.f32 %v145_v59, 0.0  ;;  %v196_v4 = vmax.f32 %v159_v60, 0.0 }
  0xa1   :  { %v209_v57 = vpack.c.bf16 %v201_v55, %v193_v53  ;;  %v210_v58 = vpack.c.bf16 %v202_v56, %v194_v54 }
  0xa3   :  { %259 = vmatpush.bf16.msra.mxu2 %v209_v57  ;;  %272 = vmatpush.bf16.msra.mxu3 %v210_v58 }
  0xa4   :  { %v172_v61 = vpop.f32.mrf.mxu2  ;;  %v186_v62 = vpop.f32.mrf.mxu3 }
  0xa5   :  { %v146_v63 = vpop.f32.mrf.mxu0  ;;  %v160_v0 = vpop.f32.mrf.mxu1  ;;  %v173_v9 = vadd.f32 %v172_v61, %v30_v25  ;;  %v187_v10 = vadd.f32 %v186_v62, %v30_v25 }
  0xa6   :  { %v147_v1 = vadd.f32 %v146_v63, %v35_v29  ;;  %v161_v2 = vadd.f32 %v160_v0, %v35_v29  ;;  %729 = vmatmul.msk.bf16.vlgmr.msra.gmra.mxu2 %vm222_vm3, %v215_v48  ;;  %730 = vmatmul.msk.bf16.vlgmr.msra.gmra.mxu3 %vm222_vm3, %v215_v48 }
  0xa7   :  { %v197_v15 = vmax.f32 %v173_v9, 0.0  ;;  %v198_v16 = vmax.f32 %v187_v10, 0.0 }
  0xa8   :  { %v203_v5 = vmax.f32 %v147_v1, 0.0  ;;  %v204_v6 = vmax.f32 %v161_v2, 0.0 }
  0xaa   :  { %v211_v7 = vpack.c.bf16 %v203_v5, %v195_v3  ;;  %v212_v8 = vpack.c.bf16 %v204_v6, %v196_v4 }
  0xac   :  { %v174_v11 = vpop.f32.mrf.mxu2  ;;  %v188_v12 = vpop.f32.mrf.mxu3  ;;  %285 = vmatpush.bf16.msrb.mxu0 %v211_v7  ;;  %298 = vmatpush.bf16.msrb.mxu1 %v212_v8 }
  0xad   :  { %v175_v13 = vadd.f32 %v174_v11, %v35_v29  ;;  %v189_v14 = vadd.f32 %v188_v12, %v35_v29 }
  0xaf   :  { %v205_v17 = vmax.f32 %v175_v13, 0.0  ;;  %v206_v18 = vmax.f32 %v189_v14, 0.0  ;;  %731 = vmatmul.msk.bf16.vlgmr.msrb.gmra.mxu0 %vm222_vm3, %v215_v48  ;;  %732 = vmatmul.msk.bf16.vlgmr.msrb.gmra.mxu1 %vm222_vm3, %v215_v48 }
  0xb1   :  { %v213_v19 = vpack.c.bf16 %v205_v17, %v197_v15  ;;  %v214_v20 = vpack.c.bf16 %v206_v18, %v198_v16 }
  0xb3   :  { %311 = vmatpush.bf16.msrb.mxu2 %v213_v19  ;;  %324 = vmatpush.bf16.msrb.mxu3 %v214_v20 }
  0xb6   :  { %733 = vmatmul.msk.bf16.vlgmr.msrb.gmra.mxu2 %vm222_vm3, %v215_v48  ;;  %734 = vmatmul.msk.bf16.vlgmr.msrb.gmra.mxu3 %vm222_vm3, %v215_v48 }
 0x11c   :  { %v235_v22 = vpop.f32.mrf.mxu0  ;;  %v248_v23 = vpop.f32.mrf.mxu1 }
 0x11d   :  { %v236_v24 = vadd.f32 %v235_v22, %v859_v21  ;;  %v249_v25 = vadd.f32 %v248_v23, %v859_v21 }
 0x11f   :  { %v331_v26 = vsel %vm330_vm4, %v236_v24, -inf  ;;  %v338_v27 = vsel %vm330_vm4, %v249_v25, -inf }
 0x120   :  { %v332_v28 = vrot.slane %v331_v26, 4  ;;  %v339_v29 = vrot.slane %v338_v27, 4 }
 0x122   :  { %v333_v30 = vmax.f32 %v331_v26, %v332_v28  ;;  %v340_v31 = vmax.f32 %v338_v27, %v339_v29 }
 0x124   :  { %v334_v32 = vrot.slane %v333_v30, 2  ;;  %v341_v33 = vrot.slane %v340_v31, 2  ;;  %v237_v34 = vpop.f32.mrf.mxu0  ;;  %v250_v35 = vpop.f32.mrf.mxu1 }
 0x126   :  { %v335_v36 = vmax.f32 %v333_v30, %v334_v32  ;;  %v342_v37 = vmax.f32 %v340_v31, %v341_v33 }
 0x128   :  { %v336_v38 = vrot.slane %v335_v36, 1  ;;  %v343_v39 = vrot.slane %v342_v37, 1 }
 0x129   :  { %v261_v40 = vpop.f32.mrf.mxu2  ;;  %v274_v41 = vpop.f32.mrf.mxu3 }
 0x12a   :  { %v337_v42 = vmax.f32 %v335_v36, %v336_v38  ;;  %v344_v43 = vmax.f32 %v342_v37, %v343_v39  ;;  %v262_v44 = vadd.f32 %v261_v40, %v859_v21  ;;  %v275_v45 = vadd.f32 %v274_v41, %v859_v21 }
 0x12c   :  { %v387_v46 = vsub.f32 %v236_v24, %v337_v42  ;;  %v388_v47 = vsub.f32 %v249_v25, %v344_v43  ;;  %v345_v48 = vsel %vm330_vm4, %v262_v44, -inf  ;;  %v352_v49 = vsel %vm330_vm4, %v275_v45, -inf  ;;  %v287_v50 = vpop.f32.mrf.mxu0  ;;  %v300_v51 = vpop.f32.mrf.mxu1 }
 0x12d   :  { %v346_v52 = vrot.slane %v345_v48, 4  ;;  %v353_v53 = vrot.slane %v352_v49, 4  ;;  %v288_v54 = vadd.f32 %v287_v50, %v859_v21  ;;  %v301_v55 = vadd.f32 %v300_v51, %v859_v21 }
 0x12e   :  { %v395_v56 = vmul.f32 1.442695, %v387_v46  ;;  %v397_v57 = vmul.f32 1.442695, %v388_v47 }
 0x12f   :  { %v347_v58 = vmax.f32 %v345_v48, %v346_v52  ;;  %v354_v59 = vmax.f32 %v352_v49, %v353_v53  ;;  %v359_v60 = vsel %vm330_vm4, %v288_v54, -inf  ;;  %v366_v61 = vsel %vm330_vm4, %v301_v55, -inf }
 0x130   :  { %740 = vpow2.f32 %v395_v56  ;;  %v360_v62 = vrot.slane %v359_v60, 4  ;;  %v367_v63 = vrot.slane %v366_v61, 4 }
 0x131   :  { %742 = vpow2.f32 %v397_v57  ;;  %v348_v0 = vrot.slane %v347_v58, 2  ;;  %v355_v1 = vrot.slane %v354_v59, 2  ;;  %v263_v2 = vpop.f32.mrf.mxu2  ;;  %v276_v3 = vpop.f32.mrf.mxu3 }
 0x132   :  { %v361_v4 = vmax.f32 %v359_v60, %v360_v62  ;;  %v368_v5 = vmax.f32 %v366_v61, %v367_v63 }
 0x133   :  { %v349_v6 = vmax.f32 %v347_v58, %v348_v0  ;;  %v356_v7 = vmax.f32 %v354_v59, %v355_v1 }
 0x134   :  { %v362_v8 = vrot.slane %v361_v4, 2  ;;  %v369_v9 = vrot.slane %v368_v5, 2  ;;  %v289_v10 = vpop.f32.mrf.mxu0  ;;  %v302_v11 = vpop.f32.mrf.mxu1 }
 0x135   :  { %v350_v12 = vrot.slane %v349_v6, 1  ;;  %v357_v13 = vrot.slane %v356_v7, 1 }
 0x136   :  { %v873_v14 = vpop.eup %740  ;;  %v363_v15 = vmax.f32 %v361_v4, %v362_v8  ;;  %v370_v16 = vmax.f32 %v368_v5, %v369_v9 }
 0x137   :  { %v875_v17 = vpop.eup %742  ;;  %v411_v18 = vsel %vm330_vm4, %v873_v14, 0.0  ;;  %v351_v19 = vmax.f32 %v349_v6, %v350_v12  ;;  %v358_v20 = vmax.f32 %v356_v7, %v357_v13 }
 0x138   :  { %v412_v22 = vrot.slane %v411_v18, 4  ;;  %v418_v23 = vsel %vm330_vm4, %v875_v17, 0.0  ;;  %v364_v24 = vrot.slane %v363_v15, 1  ;;  %v371_v25 = vrot.slane %v370_v16, 1 }
 0x139   :  { %v419_v26 = vrot.slane %v418_v23, 4  ;;  %v389_v27 = vsub.f32 %v262_v44, %v351_v19  ;;  %v390_v28 = vsub.f32 %v275_v45, %v358_v20  ;;  %v313_v29 = vpop.f32.mrf.mxu2  ;;  %v326_v30 = vpop.f32.mrf.mxu3 }
 0x13a   :  { %v413_v31 = vadd.f32 %v412_v22, %v411_v18  ;;  %v365_v32 = vmax.f32 %v363_v15, %v364_v24  ;;  %v372_v33 = vmax.f32 %v370_v16, %v371_v25  ;;  %v882_v34 = vadd.f32 %v313_v29, %v859_v21 }
 0x13b   :  { %v420_v35 = vadd.f32 %v419_v26, %v418_v23  ;;  %v399_v36 = vmul.f32 1.442695, %v389_v27  ;;  %v401_v37 = vmul.f32 1.442695, %v390_v28  ;;  %v885_v38 = vadd.f32 %v326_v30, %v859_v21 }
 0x13c   :  { %v414_v39 = vrot.slane %v413_v31, 2  ;;  %v391_v40 = vsub.f32 %v288_v54, %v365_v32  ;;  %v392_v41 = vsub.f32 %v301_v55, %v372_v33  ;;  %v373_v42 = vsel %vm330_vm4, %v882_v34, -inf }
 0x13d   :  { %v421_v43 = vrot.slane %v420_v35, 2  ;;  %744 = vpow2.f32 %v399_v36  ;;  %v374_v44 = vrot.slane %v373_v42, 4  ;;  %v380_v45 = vsel %vm330_vm4, %v885_v38, -inf }
 0x13e   :  { %v415_v46 = vadd.f32 %v414_v39, %v413_v31  ;;  %746 = vpow2.f32 %v401_v37  ;;  %v403_v47 = vmul.f32 1.442695, %v391_v40  ;;  %v405_v48 = vmul.f32 1.442695, %v392_v41 }
 0x13f   :  { %v422_v49 = vadd.f32 %v421_v43, %v420_v35  ;;  %v375_v50 = vmax.f32 %v373_v42, %v374_v44  ;;  %v381_v21 = vrot.slane %v380_v45, 4 }
 0x140   :  { %v416_v51 = vrot.slane %v415_v46, 1  ;;  %748 = vpow2.f32 %v403_v47 }
 0x141   :  { %v423_v52 = vrot.slane %v422_v49, 1  ;;  %750 = vpow2.f32 %v405_v48  ;;  %v376_v53 = vrot.slane %v375_v50, 2  ;;  %v382_v54 = vmax.f32 %v380_v45, %v381_v21  ;;  %v315_v55 = vpop.f32.mrf.mxu2  ;;  %v328_v56 = vpop.f32.mrf.mxu3 }
 0x142   :  { %v893_v58 = vadd.f32 %v416_v51, %v415_v46 }
 0x143   :  { %v891_v57 = vpop.eup %744  ;;  %v895_v59 = vadd.f32 %v423_v52, %v422_v49  ;;  %v377_v61 = vmax.f32 %v375_v50, %v376_v53  ;;  %v383_v62 = vrot.slane %v382_v54, 2 }
 0x144   :  { %v897_v60 = vpop.eup %746  ;;  %v425_v0 = vsel %vm330_vm4, %v891_v57, 0.0  ;;  %vm472_vm5 = vweird.f32 %v893_v58  ;;  %v476_v52 = vand.u32 2147483647, %v893_v58  ;;  %v478_v53 = vand.u32 2147483648, %v893_v58 }
 0x145   :  { %752 = vrcp.f32 %v895_v59  ;;  %v432_v1 = vsel %vm330_vm4, %v897_v60, 0.0  ;;  %v426_v3 = vrot.slane %v425_v0, 4  ;;  %v378_v7 = vrot.slane %v377_v61, 1 }
 0x146   :  { %v900_v63 = vpop.eup %748  ;;  %754 = vrcp.f32 %v893_v58  ;;  %v433_v4 = vrot.slane %v432_v1, 4  ;;  %v384_v8 = vmax.f32 %v382_v54, %v383_v62  ;;  %v491_v47 = vand.u32 2147483647, %v895_v59 }
 0x147   :  { %v906_v2 = vpop.eup %750  ;;  %v439_v5 = vsel %vm330_vm4, %v900_v63, 0.0  ;;  %v427_v9 = vadd.f32 %v426_v3, %v425_v0  ;;  %v379_v13 = vmax.f32 %v377_v61, %v378_v7  ;;  %v493_v49 = vand.u32 2147483648, %v895_v59 }
 0x148   :  { %v446_v6 = vsel %vm330_vm4, %v906_v2, 0.0  ;;  %v434_v10 = vadd.f32 %v433_v4, %v432_v1  ;;  %v440_v11 = vrot.slane %v439_v5, 4  ;;  %v385_v15 = vrot.slane %v384_v8, 1 }
 0x149   :  { %v447_v12 = vrot.slane %v446_v6, 4  ;;  %v428_v18 = vrot.slane %v427_v9, 2  ;;  %v393_v26 = vsub.f32 %v882_v34, %v379_v13  ;;  %vm487_vm7 = vweird.f32 %v895_v59 }
 0x14a   :  { %v435_v19 = vrot.slane %v434_v10, 2  ;;  %v441_v20 = vadd.f32 %v440_v11, %v439_v5  ;;  %v386_v30 = vmax.f32 %v384_v8, %v385_v15  ;;  %vm948_vm8 = vcmp.eq.f32.partialorder %v491_v47, 8.507059e+37 }
 0x14b   :  { %v913_v16 = vpop.eup %752  ;;  %v448_v22 = vadd.f32 %v447_v12, %v446_v6  ;;  %v429_v24 = vadd.f32 %v428_v18, %v427_v9  ;;  %v407_v33 = vmul.f32 1.442695, %v393_v26  ;;  %v494_v1 = vor.u32 1.1754944e-38, %v493_v49 }
 0x14c   :  { %v915_v23 = vpop.eup %754  ;;  %v436_v25 = vadd.f32 %v435_v19, %v434_v10  ;;  %v483_v27 = vmul.f32 %v913_v16, %v895_v59  ;;  %v442_v28 = vrot.slane %v441_v20, 2  ;;  %v394_v37 = vsub.f32 %v885_v38, %v386_v30 }
 0x14d   :  { %v449_v29 = vrot.slane %v448_v22, 2  ;;  %v430_v31 = vrot.slane %v429_v24, 1  ;;  %v468_v39 = vmul.f32 %v915_v23, %v893_v58  ;;  %756 = vpow2.f32 %v407_v33 }
 0x14e   :  { %v437_v32 = vrot.slane %v436_v25, 1  ;;  %v443_v35 = vadd.f32 %v442_v28, %v441_v20  ;;  %v484_v34 = vsub.f32 1.0, %v483_v27  ;;  %v409_v43 = vmul.f32 1.442695, %v394_v37 }
 0x14f   :  { %v450_v36 = vadd.f32 %v449_v29, %v448_v22  ;;  %v923_v40 = vadd.f32 %v430_v31, %v429_v24  ;;  %v469_v45 = vsub.f32 1.0, %v468_v39  ;;  %vm488_vm6 = vweird.f32 %v913_v16 }
 0x150   :  { %v925_v41 = vadd.f32 %v437_v32, %v436_v25  ;;  %v444_v42 = vrot.slane %v443_v35, 1  ;;  %v485_v46 = vmul.f32 %v913_v16, %v484_v34  ;;  %vm473_vm9 = vweird.f32 %v915_v23  ;;  %vm961_vm10 = vmor %vm487_vm7, %vm488_vm6 }
 0x151   :  { %758 = vrcp.f32 %v923_v40  ;;  %v451_v44 = vrot.slane %v450_v36, 1  ;;  %v470_v51 = vmul.f32 %v915_v23, %v469_v45  ;;  %v506_v6 = vand.u32 2147483647, %v923_v40  ;;  %vm976_vm13 = vmor %vm472_vm5, %vm473_vm9 }
 0x152   :  { %760 = vrcp.f32 %v925_v41  ;;  %v933_v48 = vadd.f32 %v444_v42, %v443_v35  ;;  %v486_v55 = vadd.f32 %v913_v16, %v485_v46  ;;  %v508_v12 = vand.u32 2147483648, %v923_v40 }
 0x153   :  { %v930_v38 = vpop.eup %756  ;;  %762 = vpow2.f32 %v409_v43  ;;  %v936_v50 = vadd.f32 %v451_v44, %v450_v36  ;;  %v959_v5 = vadd.f32 %v915_v23, %v470_v51  ;;  %vm502_vm14 = vweird.f32 %v923_v40 }
 0x154   :  { %v453_v61 = vsel %vm330_vm4, %v930_v38, 0.0  ;;  %764 = vrcp.f32 %v933_v48  ;;  %v490_v9 = vsel %vm961_vm10, %v913_v16, %v486_v55  ;;  %v523_v16 = vand.u32 2147483648, %v925_v41 }
 0x155   :  { %766 = vrcp.f32 %v936_v50  ;;  %v454_v8 = vrot.slane %v453_v61, 4  ;;  %v495_v24 = vsel %vm948_vm8, %v494_v1, %v490_v9  ;;  %vm517_vm2 = vweird.f32 %v925_v41 }
 0x156   :  { %v521_v27 = vand.u32 2147483647, %v925_v41  ;;  %v475_v29 = vsel %vm976_vm13, %v915_v23, %v959_v5  ;;  %vm507_vm3 = vcmp.eq.f32.partialorder %v506_v6, 8.507059e+37  ;;  %v509_v33 = vor.u32 1.1754944e-38, %v508_v12 }
 0x157   :  { %v759_v21 = vpop.eup %758  ;;  %v455_v15 = vadd.f32 %v454_v8, %v453_v61  ;;  %v538_v36 = vand.u32 2147483648, %v933_v48  ;;  %v1006_v23 = vmul.f32 %v875_v17, %v495_v24  ;;  %v524_v39 = vor.u32 1.1754944e-38, %v523_v16 }
 0x158   :  { %v761_v54 = vpop.eup %760  ;;  %v498_v56 = vmul.f32 %v759_v21, %v923_v40  ;;  %vm503_vm11 = vweird.f32 %v759_v21  ;;  %vm1008_vm6 = vcmp.eq.f32.partialorder %v476_v52, 8.507059e+37  ;;  %vm522_vm7 = vcmp.eq.f32.partialorder %v521_v27, 8.507059e+37 }
 0x159   :  { %v513_v0 = vmul.f32 %v761_v54, %v925_v41  ;;  %v956_v4 = vpop.eup %762  ;;  %vm518_vm12 = vweird.f32 %v761_v54  ;;  %vm984_vm15 = vmor %vm502_vm14, %vm503_vm11  ;;  %v456_v37 = vrot.slane %v455_v15, 2  ;;  %vm532_vm8 = vweird.f32 %v933_v48 }
 0x15a   :  { %v499_v3 = vsub.f32 1.0, %v498_v56  ;;  %v460_v11 = vsel %vm330_vm4, %v956_v4, 0.0  ;;  %v765_v22 = vpop.eup %764  ;;  %vm997_vm5 = vmor %vm517_vm2, %vm518_vm12  ;;  %v536_v46 = vand.u32 2147483647, %v933_v48  ;;  %v539_v17 = vor.u32 1.1754944e-38, %v538_v36 }
 0x15b   :  { %v514_v7 = vsub.f32 1.0, %v513_v0  ;;  %v461_v20 = vrot.slane %v460_v11, 4  ;;  %v767_v28 = vpop.eup %766  ;;  %v528_v32 = vmul.f32 %v765_v22, %v933_v48  ;;  %vm533_vm9 = vweird.f32 %v765_v22 }
 0x15c   :  { %v500_v10 = vmul.f32 %v759_v21, %v499_v3  ;;  %v543_v43 = vmul.f32 %v767_v28, %v936_v50  ;;  %v551_v49 = vand.u32 2147483647, %v936_v50  ;;  %vm534_vm10 = vmor %vm532_vm8, %vm533_vm9  ;;  %vm548_vm11 = vweird.f32 %v767_v28 }
 0x15d   :  { %v515_v13 = vmul.f32 %v761_v54, %v514_v7  ;;  %v529_v40 = vsub.f32 1.0, %v528_v32  ;;  %v462_v41 = vadd.f32 %v461_v20, %v460_v11  ;;  %v588_v0 = vadd.f32 1e-10, %v1006_v23 }
 0x15e   :  { %v501_v19 = vadd.f32 %v759_v21, %v500_v10  ;;  %v544_v47 = vsub.f32 1.0, %v543_v43  ;;  %vm537_vm12 = vcmp.eq.f32.partialorder %v536_v46, 8.507059e+37  ;;  %vm547_vm13 = vweird.f32 %v936_v50 }
 0x15f   :  { %v516_v26 = vadd.f32 %v761_v54, %v515_v13  ;;  %v530_v45 = vmul.f32 %v765_v22, %v529_v40  ;;  %v463_v55 = vrot.slane %v462_v41, 2  ;;  %vm549_vm14 = vmor %vm547_vm13, %vm548_vm11  ;;  %vm699_vm11 = vcmask 1042434  }
 0x160   :  { %v505_v30 = vsel %vm984_vm15, %v759_v21, %v501_v19  ;;  %v457_v21 = vadd.f32 %v456_v37, %v455_v15  ;;  %v545_v61 = vmul.f32 %v767_v28, %v544_v47  ;;  %vm552_vm15 = vcmp.eq.f32.partialorder %v551_v49, 8.507059e+37 }
 0x161   :  { %v520_v35 = vsel %vm997_vm5, %v761_v54, %v516_v26  ;;  %v510_v42 = vsel %vm507_vm3, %v509_v33, %v505_v30  ;;  %v531_v52 = vadd.f32 %v765_v22, %v530_v45  ;;  %v553_v54 = vand.u32 2147483648, %v936_v50 }
 0x162   :  { %v525_v44 = vsel %vm522_vm7, %v524_v39, %v520_v35  ;;  %v1017_v51 = vmul.f32 %v891_v57, %v510_v42  ;;  %v458_v62 = vrot.slane %v457_v21, 1  ;;  %v464_v3 = vadd.f32 %v463_v55, %v462_v41 }
 0x163   :  { %v1021_v56 = vmul.f32 %v897_v60, %v525_v44  ;;  %v535_v1 = vsel %vm534_vm10, %v765_v22, %v531_v52  ;;  %v546_v5 = vadd.f32 %v767_v28, %v545_v61  ;;  %v479_v60 = vor.u32 1.1754944e-38, %v478_v53 }
 0x164   :  { %v540_v57 = vsel %vm537_vm12, %v539_v17, %v535_v1  ;;  %v459_v59 = vadd.f32 %v458_v62, %v457_v21  ;;  %v589_v6 = vadd.f32 1e-10, %v1017_v51  ;;  %v554_v7 = vor.u32 1.1754944e-38, %v553_v54 }
 0x165   :  { %v541_v48 = vmul.f32 %v900_v63, %v540_v57  ;;  %v590_v8 = vadd.f32 1e-10, %v1021_v56  ;;  %v550_v9 = vsel %vm549_vm14, %v767_v28, %v546_v5  ;;  %v480_v10 = vsel %vm1008_vm6, %v479_v60, %v475_v29 }
 0x166   :  { %768 = vrcp.f32 %v459_v59  ;;  %v555_v50 = vsel %vm552_vm15, %v554_v7, %v550_v9  ;;  %v465_v12 = vrot.slane %v464_v3, 1  ;;  %v1036_v53 = vmul.f32 %v873_v14, %v480_v10 }
 0x167   :  { %v591_v11 = vadd.f32 1e-10, %v541_v48  ;;  %770 = vlog2.f32 %v588_v0  ;;  %v556_v58 = vmul.f32 %v906_v2, %v555_v50  ;;  %v568_v25 = vand.u32 2147483648, %v459_v59 }
 0x168   :  { %772 = vlog2.f32 %v589_v6  ;;  %v466_v13 = vadd.f32 %v465_v12, %v464_v3  ;;  %v587_v16 = vadd.f32 1e-10, %v1036_v53  ;;  %v566_v14 = vand.u32 2147483647, %v459_v59 }
 0x169   :  { %774 = vlog2.f32 %v590_v8  ;;  %v592_v63 = vadd.f32 1e-10, %v556_v58  ;;  %vm562_vm3 = vweird.f32 %v459_v59  ;;  %v569_v33 = vor.u32 1.1754944e-38, %v568_v25 }
 0x16a   :  { %776 = vlog2.f32 %v591_v11  ;;  %vm567_vm6 = vcmp.eq.f32.partialorder %v566_v14, 8.507059e+37  ;;  %v583_v49 = vand.u32 2147483648, %v466_v13  ;;  %v581_v52 = vand.u32 2147483647, %v466_v13 }
 0x16b   :  { %778 = vlog2.f32 %v592_v63  ;;  %vm577_vm8 = vweird.f32 %v466_v13  ;;  %vm702_vm12 = vcmask 1044484   ;;  %vm704_vm13 = vcmask 1046534  }
 0x16c   :  { %v769_v15 = vpop.eup %768  ;;  %780 = vrcp.f32 %v466_v13  ;;  %v584_v62 = vor.u32 1.1754944e-38, %v583_v49  ;;  %vm582_vm10 = vcmp.eq.f32.partialorder %v581_v52, 8.507059e+37  ;;  %vm706_vm14 = vcmask 1045508  }
 0x16d   :  { %v558_v18 = vmul.f32 %v769_v15, %v459_v59  ;;  %v771_v19 = vpop.eup %770  ;;  %vm563_vm2 = vweird.f32 %v769_v15  ;;  %782 = vlog2.f32 %v587_v16 }
 0x16e   :  { %v773_v20 = vpop.eup %772  ;;  %v598_v32 = vmul.f32 0.6931472, %v771_v19  ;;  %vm564_vm5 = vmor %vm562_vm3, %vm563_vm2 }
 0x16f   :  { %v559_v22 = vsub.f32 1.0, %v558_v18  ;;  %v775_v24 = vpop.eup %774  ;;  %v600_v28 = vmul.f32 0.6931472, %v773_v20 }
 0x170   :  { %v777_v2 = vpop.eup %776  ;;  %v602_v29 = vmul.f32 0.6931472, %v775_v24  ;;  %v612_v44 = vmul.f32 %v598_v32, %v1006_v23 }
 0x171   :  { %v560_v26 = vmul.f32 %v769_v15, %v559_v22  ;;  %v779_v27 = vpop.eup %778  ;;  %v604_v35 = vmul.f32 0.6931472, %v777_v2  ;;  %v613_v41 = vmul.f32 %v600_v28, %v1017_v51 }
 0x172   :  { %v781_v31 = vpop.eup %780  ;;  %v606_v36 = vmul.f32 0.6931472, %v779_v27  ;;  %v614_v34 = vmul.f32 %v602_v29, %v1021_v56  ;;  %v626_v56 = vsel %vm330_vm4, %v612_v44, 0.0 }
 0x173   :  { %v561_v30 = vadd.f32 %v769_v15, %v560_v26  ;;  %v573_v40 = vmul.f32 %v781_v31, %v466_v13  ;;  %v783_v43 = vpop.eup %782  ;;  %v615_v46 = vmul.f32 %v604_v35, %v541_v48  ;;  %vm578_vm7 = vweird.f32 %v781_v31 }
 0x174   :  { %v616_v17 = vmul.f32 %v606_v36, %v556_v58  ;;  %v596_v54 = vmul.f32 0.6931472, %v783_v43  ;;  %v633_v55 = vsel %vm330_vm4, %v613_v41, 0.0  ;;  %v640_v51 = vsel %vm330_vm4, %v614_v34, 0.0  ;;  %vm579_vm9 = vmor %vm577_vm8, %vm578_vm7 }
 0x175   :  { %v565_v37 = vsel %vm564_vm5, %v769_v15, %v561_v30  ;;  %v574_v45 = vsub.f32 1.0, %v573_v40  ;;  %v647_v23 = vsel %vm330_vm4, %v615_v46, 0.0  ;;  %v634_v0 = vrot.slane %v633_v55, 4 }
 0x176   :  { %v570_v39 = vsel %vm567_vm6, %v569_v33, %v565_v37  ;;  %v654_v61 = vsel %vm330_vm4, %v616_v17, 0.0  ;;  %v641_v1 = vrot.slane %v640_v51, 4  ;;  %v611_v57 = vmul.f32 %v596_v54, %v1036_v53 }
 0x177   :  { %v571_v42 = vmul.f32 %v930_v38, %v570_v39  ;;  %v575_v21 = vmul.f32 %v781_v31, %v574_v45  ;;  %v627_v5 = vrot.slane %v626_v56, 4  ;;  %v648_v60 = vrot.slane %v647_v23, 4 }
 0x178   :  { %v655_v6 = vrot.slane %v654_v61, 4  ;;  %v635_v8 = vadd.f32 %v634_v0, %v633_v55  ;;  %v642_v9 = vadd.f32 %v641_v1, %v640_v51  ;;  %v619_v50 = vsel %vm330_vm4, %v611_v57, 0.0 }
 0x179   :  { %v593_v47 = vadd.f32 1e-10, %v571_v42  ;;  %v576_v38 = vadd.f32 %v781_v31, %v575_v21  ;;  %v628_v12 = vadd.f32 %v627_v5, %v626_v56  ;;  %v649_v58 = vadd.f32 %v648_v60, %v647_v23 }
 0x17a   :  { %v656_v63 = vadd.f32 %v655_v6, %v654_v61  ;;  %v620_v15 = vrot.slane %v619_v50, 4  ;;  %v636_v53 = vrot.slane %v635_v8, 2  ;;  %v643_v18 = vrot.slane %v642_v9, 2 }
 0x17b   :  { %784 = vlog2.f32 %v593_v47  ;;  %v580_v3 = vsel %vm579_vm9, %v781_v31, %v576_v38  ;;  %v629_v16 = vrot.slane %v628_v12, 2 }
 0x17c   :  { %v585_v59 = vsel %vm582_vm10, %v584_v62, %v580_v3  ;;  %v657_v22 = vrot.slane %v656_v63, 2  ;;  %v621_v2 = vadd.f32 %v620_v15, %v619_v50  ;;  %v637_v26 = vadd.f32 %v636_v53, %v635_v8 }
 0x17d   :  { %v586_v48 = vmul.f32 %v956_v4, %v585_v59  ;;  %v650_v4 = vrot.slane %v649_v58, 2  ;;  %v644_v14 = vadd.f32 %v643_v18, %v642_v9  ;;  %v630_v27 = vadd.f32 %v629_v16, %v628_v12 }
 0x17e   :  { %v658_v31 = vadd.f32 %v657_v22, %v656_v63  ;;  %v622_v35 = vrot.slane %v621_v2, 2  ;;  %v638_v36 = vrot.slane %v637_v26, 1 }
 0x17f   :  { %v594_v11 = vadd.f32 1e-10, %v586_v48  ;;  %v651_v30 = vadd.f32 %v650_v4, %v649_v58  ;;  %v645_v37 = vrot.slane %v644_v14, 1  ;;  %v631_v39 = vrot.slane %v630_v27, 1 }
 0x180   :  { %v659_v34 = vrot.slane %v658_v31, 1  ;;  %v623_v44 = vadd.f32 %v622_v35, %v621_v2  ;;  %v639_v45 = vadd.f32 %v638_v36, %v637_v26 }
 0x181   :  { %v785_v7 = vpop.eup %784  ;;  %786 = vlog2.f32 %v594_v11  ;;  %v652_v41 = vrot.slane %v651_v30, 1  ;;  %v646_v46 = vadd.f32 %v645_v37, %v644_v14  ;;  %v632_v47 = vadd.f32 %v631_v39, %v630_v27 }
 0x182   :  { %v608_v10 = vmul.f32 0.6931472, %v785_v7  ;;  %v660_v21 = vadd.f32 %v659_v34, %v658_v31  ;;  %v624_v55 = vrot.slane %v623_v44, 1  ;;  %v677_v51 = vsub.f32 0.0, %v639_v45 }
 0x183   :  { %v653_v49 = vadd.f32 %v652_v41, %v651_v30  ;;  %v678_v56 = vsub.f32 0.0, %v646_v46  ;;  %v676_v23 = vsub.f32 0.0, %v632_v47 }
 0x184   :  { %v617_v13 = vmul.f32 %v608_v10, %v571_v42  ;;  %v680_v62 = vsub.f32 0.0, %v660_v21  ;;  %v625_v3 = vadd.f32 %v624_v55, %v623_v44  ;;  %v692_v57 = vrot.slane %v677_v51, 6 }
 0x185   :  { %v679_v61 = vsub.f32 0.0, %v653_v49  ;;  %v693_v5 = vrot.slane %v678_v56, 5  ;;  %v691_v60 = vrot.slane %v676_v23, 7 }
 0x186   :  { %v661_v19 = vsel %vm330_vm4, %v617_v13, 0.0  ;;  %v675_v9 = vsub.f32 0.0, %v625_v3 }
 0x187   :  { %v662_v20 = vrot.slane %v661_v19, 4  ;;  %v787_v25 = vpop.eup %786  ;;  %v694_v6 = vrot.slane %v679_v61, 4  ;;  %v700_v10 = vsel %vm699_vm11, %v692_v57, %v693_v5 }
 0x188   :  { %v610_v29 = vmul.f32 0.6931472, %v787_v25  ;;  %v698_v50 = vsel %vm59_vm0, %v675_v9, %v691_v60 }
 0x189   :  { %v663_v24 = vadd.f32 %v662_v20, %v661_v19  ;;  %v701_v63 = vsel %vm60_vm1, %v698_v50, %v700_v10 }
 0x18a   :  { %v618_v33 = vmul.f32 %v610_v29, %v586_v48  ;;  %v695_v48 = vrot.slane %v680_v62, 3 }
 0x18b   :  { %v664_v28 = vrot.slane %v663_v24, 2 }
 0x18c   :  { %v668_v40 = vsel %vm330_vm4, %v618_v33, 0.0  ;;  %v703_v12 = vsel %vm702_vm12, %v694_v6, %v695_v48 }
 0x18d   :  { %v665_v32 = vadd.f32 %v664_v28, %v663_v24  ;;  %v669_v43 = vrot.slane %v668_v40, 4 }
 0x18f   :  { %v666_v42 = vrot.slane %v665_v32, 1  ;;  %v670_v17 = vadd.f32 %v669_v43, %v668_v40 }
 0x191   :  { %v667_v52 = vadd.f32 %v666_v42, %v665_v32  ;;  %v671_v54 = vrot.slane %v670_v17, 2 }
 0x193   :  { %v672_v38 = vadd.f32 %v671_v54, %v670_v17  ;;  %v681_v0 = vsub.f32 0.0, %v667_v52 }
 0x195   :  { %v673_v1 = vrot.slane %v672_v38, 1  ;;  %v696_v7 = vrot.slane %v681_v0, 2 }
 0x197   :  { %v674_v59 = vadd.f32 %v673_v1, %v672_v38 }
 0x199   :  { %v682_v8 = vsub.f32 0.0, %v674_v59 }
 0x19b   :  { %v697_v11 = vrot.slane %v682_v8, 1 }
 0x19d   :  { %v705_v58 = vsel %vm704_vm13, %v696_v7, %v697_v11 }
 0x19e   :  { %v707_v13 = vsel %vm706_vm14, %v703_v12, %v705_v58 }
 0x19f   :  { %v708_v15 = vsel %vm330_vm4, %v701_v63, %v707_v13 }
 0x1a0   :  { %710 = vst [vmem:[%s1064_s5] sm:$0xff] %v708_v15 }

// kernel: mean_teacher_forward_train.4
= control target key start
LH: loop header
LB: loop body
LE: loop exit
PB: predicated region body
PF: predicated region fallthrough
CT: control target
= control target key end

     0   :  { %vm103_vm0 = vcmask 1040384   ;;  %v775_v2 = vmov 0   ;;  %vm104_vm1 = vcmask 1041408   ;;  %v776_v4 = vmov 65535   ;;  %s1089_s0 = inlined_call_operand.vmem [shape: bf16[3,1024], index: 0, kind: input, shape index: {}]   ;;  %s1090_s3 = inlined_call_operand.vmem [shape: f32[16,1], index: 3, kind: input, shape index: {}]   ;;  %s1091_s2 = inlined_call_operand.vmem [shape: bf16[16,3], index: 2, kind: input, shape index: {}]   ;;  %s1092_s5 = inlined_call_operand.vmem [shape: f32[4,1], index: 5, kind: input, shape index: {}]   ;;  %s1093_s4 = inlined_call_operand.vmem [shape: bf16[4,16], index: 4, kind: input, shape index: {}]   ;;  %s1094_s1 = inlined_call_operand.vmem [shape: s32[1,1024], index: 1, kind: input, shape index: {}]   ;;  %s1095_s6 = inlined_call_operand.vmem [shape: f32[8,128], index: 6, kind: output, shape index: {}]  }
   0x1   :  { %v65_v0 = vld [vmem:[%s1089_s0] sm:$0xff]  ;;  %741 = vset.pattern.permute.xlu0 %v775_v2  ;;  %v66_v3 = vld [vmem:[%s1089_s0 + $0x8] sm:$0xff]  ;;  %742 = vset.pattern.permute.xlu1 %v775_v2  ;;  %v105_v5 = vsel %vm103_vm0, 4294967295, %v776_v4  ;;  %vm99_vm2 = vcmask 23552   ;;  %vm266_vm3 = vcmask 130048   ;;  %vm378_vm4 = vcmask 1043456  }
   0x2   :  { %v69_v1 = vld [vmem:[%s1090_s3] sm:$0xff]  ;;  %87 = vst [vmem:[#allocation1] ss:$4 sm:$0xff] %v65_v0  ;;  %v106_v6 = vsel %vm104_vm1, %v105_v5, 0  ;;  %v70_v7 = vld [vmem:[%s1090_s3 + $0x8] sm:$0xff] }
   0x3   :  { %73 = vperm.xlu0 %741, %v69_v1   ;;  %90 = vst [vmem:[#allocation1 + $0x20] ss:$4 sm:$0xff] %v66_v3  ;;  %v737_v10 = vld [vmem:[%s1091_s2] sm:$0xff] }
   0x4   :  { %v260_v26 = vld [vmem:[%s1092_s5] sm:$0xf] }
   0x5   :  { %263 = vperm.xlu1 %742, %v260_v26   ;;  %v259_v48 = vld [vmem:[%s1093_s4] sm:$0x3] }
   0x9   :  { %v91_v8 = vld.sshfl [vmem:[#allocation1] sm:$0xff pattern:$0x73625140]  ;;  %v92_v9 = vld.sshfl [vmem:[#allocation1 + $0x8] sm:$0xff pattern:$0x73625140] }
   0xa   :  { %v107_v11 = vand.u32 %v106_v6, %v91_v8  ;;  %v109_v12 = vand.u32 %v106_v6, %v92_v9  ;;  %v93_v13 = vld.sshfl [vmem:[#allocation1 + $0x10] sm:$0xff pattern:$0x73625140]  ;;  %v94_v14 = vld.sshfl [vmem:[#allocation1 + $0x18] sm:$0xff pattern:$0x73625140] }
   0xb   :  { %v111_v15 = vand.u32 %v106_v6, %v93_v13  ;;  %v113_v16 = vand.u32 %v106_v6, %v94_v14  ;;  %v95_v17 = vld.sshfl [vmem:[#allocation1 + $0x20] sm:$0xff pattern:$0x73625140]  ;;  %v96_v18 = vld.sshfl [vmem:[#allocation1 + $0x28] sm:$0xff pattern:$0x73625140]  ;;  %78 = vperm.xlu0 %741, %v70_v7  }
   0xc   :  { %130 = vmatpush.bf16.msra.mxu0 %v107_v11  ;;  %144 = vmatpush.bf16.msra.mxu1 %v109_v12  ;;  %v115_v19 = vand.u32 %v106_v6, %v95_v17  ;;  %v117_v20 = vand.u32 %v106_v6, %v96_v18  ;;  %v97_v21 = vld.sshfl [vmem:[#allocation1 + $0x30] sm:$0xff pattern:$0x73625140]  ;;  %v98_v22 = vld.sshfl [vmem:[#allocation1 + $0x38] sm:$0xff pattern:$0x73625140] }
   0xd   :  { %158 = vmatpush.bf16.msra.mxu2 %v111_v15  ;;  %172 = vmatpush.bf16.msra.mxu3 %v113_v16  ;;  %v119_v23 = vand.u32 %v106_v6, %v97_v21  ;;  %v121_v24 = vand.u32 %v106_v6, %v98_v22  ;;  %v539_v21 = vlaneseq  ;;  %v854_v22 = vld [vmem:[%s1094_s1] sm:$0xff] }
   0xe   :  { %v541_v26 = vperm.slane %v854_v22, 0  ;;  %vm375_vm8 = vcmp.ne.s32.totalorder %v854_v22, 255 }
   0xf   :  { %720 = vmatmul.msk.bf16.vlgmr.msra.gmra.mxu0 %vm99_vm2, %v737_v10  ;;  %721 = vmatmul.msk.bf16.vlgmr.msra.gmra.mxu1 %vm99_vm2, %v737_v10 }
  0x10   :  { %186 = vmatpush.bf16.msrb.mxu0 %v115_v19  ;;  %200 = vmatpush.bf16.msrb.mxu1 %v117_v20 }
  0x11   :  { %722 = vmatmul.msk.bf16.vlgmr.msra.gmra.mxu2 %vm99_vm2, %v737_v10  ;;  %723 = vmatmul.msk.bf16.vlgmr.msra.gmra.mxu3 %vm99_vm2, %v737_v10 }
  0x12   :  { %214 = vmatpush.bf16.msrb.mxu2 %v119_v23  ;;  %228 = vmatpush.bf16.msrb.mxu3 %v121_v24 }
  0x1f   :  { %724 = vmatmul.msk.bf16.vlgmr.msrb.gmra.mxu0 %vm99_vm2, %v737_v10  ;;  %725 = vmatmul.msk.bf16.vlgmr.msrb.gmra.mxu1 %vm99_vm2, %v737_v10 }
  0x21   :  { %726 = vmatmul.msk.bf16.vlgmr.msrb.gmra.mxu2 %vm99_vm2, %v737_v10  ;;  %727 = vmatmul.msk.bf16.vlgmr.msrb.gmra.mxu3 %vm99_vm2, %v737_v10 }
  0x75   :  { %v74_v25 = vpop.permute.xlu0 %73 }
  0x77   :  { %v856_v23 = vpop.permute.xlu1 %263 }
  0x7d   :  { %v79_v29 = vpop.permute.xlu0 %78 }
  0x8c   :  { %v132_v27 = vpop.f32.mrf.mxu0  ;;  %v146_v28 = vpop.f32.mrf.mxu1 }
  0x8d   :  { %v133_v30 = vadd.f32 %v132_v27, %v74_v25  ;;  %v147_v31 = vadd.f32 %v146_v28, %v74_v25 }
  0x8f   :  { %v235_v38 = vmax.f32 %v133_v30, 0.0  ;;  %v236_v39 = vmax.f32 %v147_v31, 0.0 }
  0x94   :  { %v160_v32 = vpop.f32.mrf.mxu2  ;;  %v174_v33 = vpop.f32.mrf.mxu3 }
  0x95   :  { %v134_v34 = vpop.f32.mrf.mxu0  ;;  %v148_v35 = vpop.f32.mrf.mxu1  ;;  %v161_v44 = vadd.f32 %v160_v32, %v74_v25  ;;  %v175_v45 = vadd.f32 %v174_v33, %v74_v25  ;;  %v542_v32 = vperm.slane %v854_v22, 1 }
  0x96   :  { %v135_v36 = vadd.f32 %v134_v34, %v79_v29  ;;  %v149_v37 = vadd.f32 %v148_v35, %v79_v29 }
  0x97   :  { %v237_v53 = vmax.f32 %v161_v44, 0.0  ;;  %v238_v54 = vmax.f32 %v175_v45, 0.0 }
  0x98   :  { %v243_v40 = vmax.f32 %v135_v36, 0.0  ;;  %v244_v41 = vmax.f32 %v149_v37, 0.0 }
  0x9a   :  { %v251_v42 = vpack.c.bf16 %v243_v40, %v235_v38  ;;  %v252_v43 = vpack.c.bf16 %v244_v41, %v236_v39 }
  0x9c   :  { %v162_v46 = vpop.f32.mrf.mxu2  ;;  %v176_v47 = vpop.f32.mrf.mxu3  ;;  %277 = vmatpush.bf16.msra.mxu0 %v251_v42  ;;  %290 = vmatpush.bf16.msra.mxu1 %v252_v43 }
  0x9d   :  { %v163_v49 = vadd.f32 %v162_v46, %v79_v29  ;;  %v177_v50 = vadd.f32 %v176_v47, %v79_v29  ;;  %v188_v51 = vpop.f32.mrf.mxu0  ;;  %v202_v52 = vpop.f32.mrf.mxu1 }
  0x9e   :  { %v189_v59 = vadd.f32 %v188_v51, %v74_v25  ;;  %v203_v60 = vadd.f32 %v202_v52, %v74_v25 }
  0x9f   :  { %v245_v55 = vmax.f32 %v163_v49, 0.0  ;;  %v246_v56 = vmax.f32 %v177_v50, 0.0  ;;  %728 = vmatmul.msk.bf16.vlgmr.msra.gmra.mxu0 %vm266_vm3, %v259_v48  ;;  %729 = vmatmul.msk.bf16.vlgmr.msra.gmra.mxu1 %vm266_vm3, %v259_v48 }
  0xa0   :  { %v239_v3 = vmax.f32 %v189_v59, 0.0  ;;  %v240_v4 = vmax.f32 %v203_v60, 0.0 }
  0xa1   :  { %v253_v57 = vpack.c.bf16 %v245_v55, %v237_v53  ;;  %v254_v58 = vpack.c.bf16 %v246_v56, %v238_v54 }
  0xa3   :  { %303 = vmatpush.bf16.msra.mxu2 %v253_v57  ;;  %316 = vmatpush.bf16.msra.mxu3 %v254_v58 }
  0xa4   :  { %v216_v61 = vpop.f32.mrf.mxu2  ;;  %v230_v62 = vpop.f32.mrf.mxu3 }
  0xa5   :  { %v190_v63 = vpop.f32.mrf.mxu0  ;;  %v204_v0 = vpop.f32.mrf.mxu1  ;;  %v217_v9 = vadd.f32 %v216_v61, %v74_v25  ;;  %v231_v10 = vadd.f32 %v230_v62, %v74_v25  ;;  %v858_v25 = vshrl.u32 %v539_v21, 7 }
  0xa6   :  { %v191_v1 = vadd.f32 %v190_v63, %v79_v29  ;;  %v205_v2 = vadd.f32 %v204_v0, %v79_v29  ;;  %730 = vmatmul.msk.bf16.vlgmr.msra.gmra.mxu2 %vm266_vm3, %v259_v48  ;;  %731 = vmatmul.msk.bf16.vlgmr.msra.gmra.mxu3 %vm266_vm3, %v259_v48  ;;  %v543_v63 = vperm.slane %v854_v22, 2 }
  0xa7   :  { %v241_v15 = vmax.f32 %v217_v9, 0.0  ;;  %v242_v16 = vmax.f32 %v231_v10, 0.0  ;;  %vm549_vm5 = vcmp.eq.s32.totalorder %v858_v25, %v541_v26  ;;  %vm550_vm6 = vcmp.eq.s32.totalorder %v858_v25, %v542_v32 }
  0xa8   :  { %v247_v5 = vmax.f32 %v191_v1, 0.0  ;;  %v248_v6 = vmax.f32 %v205_v2, 0.0  ;;  %v544_v9 = vperm.slane %v854_v22, 3  ;;  %vm892_vm7 = vcmp.eq.s32.totalorder %v858_v25, %v543_v63 }
  0xa9   :  { %vm691_vm14 = vcmp.eq.s32.totalorder %v858_v25, 1  ;;  %vm688_vm15 = vcmp.eq.s32.totalorder %v858_v25, 0 }
  0xaa   :  { %v255_v7 = vpack.c.bf16 %v247_v5, %v239_v3  ;;  %v256_v8 = vpack.c.bf16 %v248_v6, %v240_v4  ;;  %vm908_vm9 = vcmp.eq.s32.totalorder %v858_v25, %v544_v9 }
  0xac   :  { %v218_v11 = vpop.f32.mrf.mxu2  ;;  %v232_v12 = vpop.f32.mrf.mxu3  ;;  %329 = vmatpush.bf16.msrb.mxu0 %v255_v7  ;;  %342 = vmatpush.bf16.msrb.mxu1 %v256_v8 }
  0xad   :  { %v219_v13 = vadd.f32 %v218_v11, %v79_v29  ;;  %v233_v14 = vadd.f32 %v232_v12, %v79_v29 }
  0xaf   :  { %v249_v17 = vmax.f32 %v219_v13, 0.0  ;;  %v250_v18 = vmax.f32 %v233_v14, 0.0  ;;  %732 = vmatmul.msk.bf16.vlgmr.msrb.gmra.mxu0 %vm266_vm3, %v259_v48  ;;  %733 = vmatmul.msk.bf16.vlgmr.msrb.gmra.mxu1 %vm266_vm3, %v259_v48 }
  0xb1   :  { %v257_v19 = vpack.c.bf16 %v249_v17, %v241_v15  ;;  %v258_v20 = vpack.c.bf16 %v250_v18, %v242_v16 }
  0xb3   :  { %355 = vmatpush.bf16.msrb.mxu2 %v257_v19  ;;  %368 = vmatpush.bf16.msrb.mxu3 %v258_v20 }
  0xb6   :  { %734 = vmatmul.msk.bf16.vlgmr.msrb.gmra.mxu2 %vm266_vm3, %v259_v48  ;;  %735 = vmatmul.msk.bf16.vlgmr.msrb.gmra.mxu3 %vm266_vm3, %v259_v48 }
 0x11c   :  { %v279_v24 = vpop.f32.mrf.mxu0  ;;  %v292_v27 = vpop.f32.mrf.mxu1 }
 0x11d   :  { %v280_v28 = vadd.f32 %v279_v24, %v856_v23  ;;  %v293_v29 = vadd.f32 %v292_v27, %v856_v23 }
 0x11f   :  { %v379_v30 = vsel %vm378_vm4, %v280_v28, -inf  ;;  %v386_v31 = vsel %vm378_vm4, %v293_v29, -inf  ;;  %v557_v37 = vsel %vm549_vm5, %v280_v28, 0.0  ;;  %v558_v45 = vsel %vm550_vm6, %v293_v29, 0.0 }
 0x120   :  { %v380_v33 = vrot.slane %v379_v30, 4  ;;  %v387_v34 = vrot.slane %v386_v31, 4  ;;  %v565_v43 = vsel %vm378_vm4, %v557_v37, 0.0  ;;  %v572_v49 = vsel %vm378_vm4, %v558_v45, 0.0 }
 0x121   :  { %v566_v48 = vrot.slane %v565_v43, 4  ;;  %v573_v58 = vrot.slane %v572_v49, 4 }
 0x122   :  { %v381_v35 = vmax.f32 %v379_v30, %v380_v33  ;;  %v388_v36 = vmax.f32 %v386_v31, %v387_v34 }
 0x123   :  { %v567_v2 = vadd.f32 %v566_v48, %v565_v43  ;;  %v574_v7 = vadd.f32 %v573_v58, %v572_v49 }
 0x124   :  { %v382_v38 = vrot.slane %v381_v35, 2  ;;  %v389_v39 = vrot.slane %v388_v36, 2  ;;  %v281_v40 = vpop.f32.mrf.mxu0  ;;  %v294_v41 = vpop.f32.mrf.mxu1 }
 0x125   :  { %v568_v15 = vrot.slane %v567_v2, 2  ;;  %v575_v20 = vrot.slane %v574_v7, 2 }
 0x126   :  { %v383_v42 = vmax.f32 %v381_v35, %v382_v38  ;;  %v390_v44 = vmax.f32 %v388_v36, %v389_v39  ;;  %v545_v38 = vperm.slane %v854_v22, 4 }
 0x127   :  { %v569_v35 = vadd.f32 %v568_v15, %v567_v2 }
 0x128   :  { %v384_v46 = vrot.slane %v383_v42, 1  ;;  %v391_v47 = vrot.slane %v390_v44, 1  ;;  %vm932_vm10 = vcmp.eq.s32.totalorder %v858_v25, %v545_v38 }
 0x129   :  { %v305_v50 = vpop.f32.mrf.mxu2  ;;  %v318_v51 = vpop.f32.mrf.mxu3 }
 0x12a   :  { %v870_v52 = vmax.f32 %v383_v42, %v384_v46  ;;  %v872_v53 = vmax.f32 %v390_v44, %v391_v47  ;;  %v875_v54 = vadd.f32 %v305_v50, %v856_v23  ;;  %v878_v55 = vadd.f32 %v318_v51, %v856_v23 }
 0x12b   :  { %v576_v46 = vadd.f32 %v575_v20, %v574_v7 }
 0x12c   :  { %v435_v56 = vsub.f32 %v280_v28, %v870_v52  ;;  %v436_v57 = vsub.f32 %v293_v29, %v872_v53  ;;  %v393_v59 = vsel %vm378_vm4, %v875_v54, -inf  ;;  %v331_v60 = vpop.f32.mrf.mxu0  ;;  %v344_v61 = vpop.f32.mrf.mxu1  ;;  %v400_v0 = vsel %vm378_vm4, %v878_v55, -inf }
 0x12d   :  { %v394_v62 = vrot.slane %v393_v59, 4  ;;  %v401_v4 = vrot.slane %v400_v0, 4  ;;  %v888_v6 = vadd.f32 %v331_v60, %v856_v23  ;;  %v900_v19 = vadd.f32 %v344_v61, %v856_v23 }
 0x12e   :  { %v443_v1 = vmul.f32 1.442695, %v435_v56  ;;  %v445_v3 = vmul.f32 1.442695, %v436_v57  ;;  %v559_v21 = vsel %vm892_vm7, %v875_v54, 0.0  ;;  %v777_v29 = vmov 0.0  }
 0x12f   :  { %v395_v5 = vmax.f32 %v393_v59, %v394_v62  ;;  %v402_v8 = vmax.f32 %v400_v0, %v401_v4  ;;  %v407_v12 = vsel %vm378_vm4, %v888_v6, -inf  ;;  %v905_v30 = vsel %vm375_vm8, 1.0, %v777_v29 }
 0x130   :  { %743 = vpow2.f32 %v443_v1  ;;  %v408_v17 = vrot.slane %v407_v12, 4  ;;  %v414_v33 = vsel %vm378_vm4, %v900_v19, -inf  ;;  %v579_v42 = vsel %vm378_vm4, %v559_v21, 0.0 }
 0x131   :  { %745 = vpow2.f32 %v445_v3  ;;  %v396_v10 = vrot.slane %v395_v5, 2  ;;  %v307_v13 = vpop.f32.mrf.mxu2  ;;  %v320_v14 = vpop.f32.mrf.mxu3  ;;  %v403_v16 = vrot.slane %v402_v8, 2  ;;  %v415_v43 = vrot.slane %v414_v33, 4 }
 0x132   :  { %v409_v26 = vmax.f32 %v407_v12, %v408_v17  ;;  %v560_v50 = vsel %vm908_vm9, %v878_v55, 0.0  ;;  %v580_v59 = vrot.slane %v579_v42, 4  ;;  %v546_v1 = vperm.slane %v854_v22, 5 }
 0x133   :  { %v397_v18 = vmax.f32 %v395_v5, %v396_v10  ;;  %v404_v24 = vmax.f32 %v402_v8, %v403_v16  ;;  %v416_v61 = vmax.f32 %v414_v33, %v415_v43  ;;  %v586_v3 = vsel %vm378_vm4, %v560_v50, 0.0 }
 0x134   :  { %v333_v27 = vpop.f32.mrf.mxu0  ;;  %v346_v28 = vpop.f32.mrf.mxu1  ;;  %v410_v37 = vrot.slane %v409_v26, 2  ;;  %v570_v5 = vrot.slane %v569_v35, 1  ;;  %v577_v9 = vrot.slane %v576_v46, 1  ;;  %v581_v10 = vadd.f32 %v580_v59, %v579_v42 }
 0x135   :  { %v398_v31 = vrot.slane %v397_v18, 1  ;;  %v405_v36 = vrot.slane %v404_v24, 1  ;;  %v587_v11 = vrot.slane %v586_v3, 4  ;;  %vm941_vm11 = vcmp.eq.s32.totalorder %v858_v25, %v546_v1 }
 0x136   :  { %v744_v34 = vpop.eup %743  ;;  %v411_v51 = vmax.f32 %v409_v26, %v410_v37  ;;  %v547_v17 = vperm.slane %v854_v22, 6  ;;  %v952_v20 = vadd.f32 %v570_v5, %v569_v35  ;;  %v548_v26 = vperm.slane %v854_v22, 7 }
 0x137   :  { %v746_v39 = vpop.eup %745  ;;  %v459_v40 = vsel %vm378_vm4, %v744_v34, 0.0  ;;  %v916_v41 = vmax.f32 %v397_v18, %v398_v31  ;;  %v920_v47 = vmax.f32 %v404_v24, %v405_v36  ;;  %v955_v31 = vadd.f32 %v577_v9, %v576_v46 }
 0x138   :  { %v460_v44 = vrot.slane %v459_v40, 4  ;;  %v466_v45 = vsel %vm378_vm4, %v746_v39, 0.0  ;;  %v412_v0 = vrot.slane %v411_v51, 1  ;;  %v582_v32 = vrot.slane %v581_v10, 2 }
 0x139   :  { %v467_v48 = vrot.slane %v466_v45, 4  ;;  %v437_v49 = vsub.f32 %v875_v54, %v916_v41  ;;  %v357_v56 = vpop.f32.mrf.mxu2  ;;  %v370_v57 = vpop.f32.mrf.mxu3  ;;  %v438_v60 = vsub.f32 %v878_v55, %v920_v47  ;;  %v417_v55 = vrot.slane %v416_v61, 2 }
 0x13a   :  { %v461_v58 = vadd.f32 %v460_v44, %v459_v40  ;;  %v936_v7 = vmax.f32 %v411_v51, %v412_v0  ;;  %v946_v16 = vadd.f32 %v357_v56, %v856_v23  ;;  %v950_v18 = vadd.f32 %v370_v57, %v856_v23 }
 0x13b   :  { %v468_v62 = vadd.f32 %v467_v48, %v466_v45  ;;  %v447_v63 = vmul.f32 1.442695, %v437_v49  ;;  %v449_v54 = vmul.f32 1.442695, %v438_v60  ;;  %v418_v13 = vmax.f32 %v416_v61, %v417_v55 }
 0x13c   :  { %v462_v2 = vrot.slane %v461_v58, 2  ;;  %v439_v12 = vsub.f32 %v888_v6, %v936_v7  ;;  %v421_v33 = vsel %vm378_vm4, %v946_v16, -inf  ;;  %v588_v36 = vadd.f32 %v587_v11, %v586_v3 }
 0x13d   :  { %747 = vpow2.f32 %v447_v63  ;;  %v469_v8 = vrot.slane %v468_v62, 2  ;;  %v419_v24 = vrot.slane %v418_v13, 1  ;;  %v561_v23 = vsel %vm932_vm10, %v888_v6, 0.0 }
 0x13e   :  { %749 = vpow2.f32 %v449_v54  ;;  %v463_v15 = vadd.f32 %v462_v2, %v461_v58  ;;  %v451_v21 = vmul.f32 1.442695, %v439_v12  ;;  %v422_v39 = vrot.slane %v421_v33, 4 }
 0x13f   :  { %v470_v29 = vadd.f32 %v469_v8, %v468_v62  ;;  %v962_v35 = vmax.f32 %v418_v13, %v419_v24  ;;  %v428_v40 = vsel %vm378_vm4, %v950_v18, -inf  ;;  %v630_v42 = vperm.slane %v905_v30, 0 }
 0x140   :  { %751 = vpow2.f32 %v451_v21  ;;  %v464_v22 = vrot.slane %v463_v15, 1  ;;  %vm972_vm12 = vcmp.eq.s32.totalorder %v858_v25, %v547_v17  ;;  %v593_v49 = vsel %vm378_vm4, %v561_v23, 0.0 }
 0x141   :  { %v359_v27 = vpop.f32.mrf.mxu2  ;;  %v372_v28 = vpop.f32.mrf.mxu3  ;;  %v440_v45 = vsub.f32 %v900_v19, %v962_v35  ;;  %v471_v46 = vrot.slane %v470_v29, 1  ;;  %v423_v50 = vmax.f32 %v421_v33, %v422_v39  ;;  %v583_v56 = vadd.f32 %v582_v32, %v581_v10 }
 0x142   :  { %v429_v58 = vrot.slane %v428_v40, 4  ;;  %v465_v59 = vadd.f32 %v464_v22, %v463_v15  ;;  %v589_v61 = vrot.slane %v588_v36, 2  ;;  %v562_v1 = vsel %vm941_vm11, %v900_v19, 0.0 }
 0x143   :  { %v748_v34 = vpop.eup %747  ;;  %v453_v57 = vmul.f32 1.442695, %v440_v45  ;;  %v424_v62 = vrot.slane %v423_v50, 2  ;;  %v472_v54 = vadd.f32 %v471_v46, %v470_v29  ;;  %v584_v8 = vrot.slane %v583_v56, 1 }
 0x144   :  { %v750_v37 = vpop.eup %749  ;;  %v473_v38 = vsel %vm378_vm4, %v748_v34, 0.0  ;;  %v430_v2 = vmax.f32 %v428_v40, %v429_v58  ;;  %v594_v10 = vrot.slane %v593_v49, 4  ;;  %v981_v17 = vadd.f32 %v589_v61, %v588_v36 }
 0x145   :  { %v474_v43 = vrot.slane %v473_v38, 4  ;;  %v480_v44 = vsel %vm378_vm4, %v750_v37, 0.0  ;;  %753 = vpow2.f32 %v453_v57  ;;  %v425_v5 = vmax.f32 %v423_v50, %v424_v62 }
 0x146   :  { %v481_v48 = vrot.slane %v480_v44, 4  ;;  %v752_v63 = vpop.eup %751  ;;  %755 = vlog2.f32 %v465_v59  ;;  %v431_v13 = vrot.slane %v430_v2, 2  ;;  %v600_v19 = vsel %vm378_vm4, %v562_v1, 0.0 }
 0x147   :  { %v475_v51 = vadd.f32 %v474_v43, %v473_v38  ;;  %v487_v4 = vsel %vm378_vm4, %v752_v63, 0.0  ;;  %v426_v12 = vrot.slane %v425_v5, 1  ;;  %757 = vlog2.f32 %v472_v54 }
 0x148   :  { %v482_v60 = vadd.f32 %v481_v48, %v480_v44  ;;  %v488_v9 = vrot.slane %v487_v4, 4  ;;  %v432_v27 = vmax.f32 %v430_v2, %v431_v13  ;;  %vm987_vm13 = vcmp.eq.s32.totalorder %v858_v25, %v548_v26 }
 0x149   :  { %v476_v0 = vrot.slane %v475_v51, 2  ;;  %v984_v24 = vmax.f32 %v425_v5, %v426_v12  ;;  %v631_v32 = vperm.slane %v905_v30, 1  ;;  %v595_v36 = vadd.f32 %v594_v10, %v593_v49 }
 0x14a   :  { %v483_v3 = vrot.slane %v482_v60, 2  ;;  %v489_v21 = vadd.f32 %v488_v9, %v487_v4  ;;  %v601_v37 = vrot.slane %v600_v19, 4  ;;  %v563_v38 = vsel %vm972_vm12, %v946_v16, 0.0 }
 0x14b   :  { %v477_v55 = vadd.f32 %v476_v0, %v475_v51  ;;  %v754_v29 = vpop.eup %753  ;;  %v441_v22 = vsub.f32 %v946_v16, %v984_v24  ;;  %v998_v44 = vadd.f32 %v584_v8, %v583_v56  ;;  %v591_v45 = vrot.slane %v981_v17, 1 }
 0x14c   :  { %v484_v11 = vadd.f32 %v483_v3, %v482_v60  ;;  %v490_v34 = vrot.slane %v489_v21, 2  ;;  %v494_v23 = vsel %vm378_vm4, %v754_v29, 0.0  ;;  %v756_v43 = vpop.eup %755  ;;  %v433_v48 = vrot.slane %v432_v27, 1 }
 0x14d   :  { %v478_v15 = vrot.slane %v477_v55, 1  ;;  %v495_v40 = vrot.slane %v494_v23, 4  ;;  %v455_v46 = vmul.f32 1.442695, %v441_v22  ;;  %v632_v49 = vperm.slane %v905_v30, 2  ;;  %v758_v58 = vpop.eup %757 }
 0x14e   :  { %v485_v14 = vrot.slane %v484_v11, 1  ;;  %v491_v39 = vadd.f32 %v490_v34, %v489_v21  ;;  %v596_v51 = vrot.slane %v595_v36, 2  ;;  %v1002_v59 = vadd.f32 %v601_v37, %v600_v19 }
 0x14f   :  { %v479_v33 = vadd.f32 %v478_v15, %v477_v55  ;;  %v496_v57 = vadd.f32 %v495_v40, %v494_v23  ;;  %v607_v16 = vsel %vm378_vm4, %v563_v38, 0.0  ;;  %v1005_v6 = vmax.f32 %v432_v27, %v433_v48 }
 0x150   :  { %v486_v26 = vadd.f32 %v485_v14, %v484_v11  ;;  %v492_v50 = vrot.slane %v491_v39, 1  ;;  %v516_v60 = vmul.f32 0.6931472, %v756_v43  ;;  %v633_v63 = vperm.slane %v905_v30, 3 }
 0x151   :  { %759 = vlog2.f32 %v479_v33  ;;  %v497_v61 = vrot.slane %v496_v57, 2  ;;  %v442_v62 = vsub.f32 %v950_v18, %v1005_v6  ;;  %v671_v0 = vsel %vm103_vm0, %v630_v42, 0.0 }
 0x152   :  { %761 = vpow2.f32 %v455_v46  ;;  %v493_v56 = vadd.f32 %v492_v50, %v491_v39  ;;  %v672_v1 = vsel %vm103_vm0, %v631_v32, 0.0  ;;  %v518_v54 = vmul.f32 0.6931472, %v758_v58 }
 0x153   :  { %763 = vlog2.f32 %v486_v26  ;;  %v498_v3 = vadd.f32 %v497_v61, %v496_v57  ;;  %v634_v4 = vperm.slane %v905_v30, 4  ;;  %v673_v5 = vadd.f32 %v672_v1, %v671_v0 }
 0x154   :  { %765 = vlog2.f32 %v493_v56  ;;  %v457_v55 = vmul.f32 1.442695, %v442_v62  ;;  %v674_v8 = vsel %vm103_vm0, %v632_v49, 0.0  ;;  %v676_v9 = vsel %vm103_vm0, %v633_v63, 0.0 }
 0x155   :  { %v499_v11 = vrot.slane %v498_v3, 1  ;;  %v564_v12 = vsel %vm987_vm13, %v950_v18, 0.0  ;;  %v675_v13 = vadd.f32 %v674_v8, %v673_v5  ;;  %v531_v21 = vadd.f32 %v516_v60, %v870_v52 }
 0x156   :  { %767 = vpow2.f32 %v457_v55  ;;  %v635_v19 = vperm.slane %v905_v30, 5  ;;  %v678_v14 = vsel %vm103_vm0, %v634_v4, 0.0  ;;  %v532_v29 = vadd.f32 %v518_v54, %v872_v53 }
 0x157   :  { %v760_v2 = vpop.eup %759  ;;  %v500_v33 = vadd.f32 %v499_v11, %v498_v3  ;;  %v677_v23 = vadd.f32 %v676_v9, %v675_v13  ;;  %v608_v18 = vrot.slane %v607_v16, 4  ;;  %v636_v37 = vperm.slane %v905_v30, 6 }
 0x158   :  { %v520_v10 = vmul.f32 0.6931472, %v760_v2  ;;  %v762_v15 = vpop.eup %761  ;;  %v680_v52 = vsel %vm103_vm0, %v635_v19, 0.0  ;;  %v597_v38 = vadd.f32 %v596_v51, %v595_v36  ;;  %v614_v26 = vsel %vm378_vm4, %v564_v12, 0.0 }
 0x159   :  { %v764_v27 = vpop.eup %763  ;;  %v501_v34 = vsel %vm378_vm4, %v762_v15, 0.0  ;;  %v679_v39 = vadd.f32 %v678_v14, %v677_v23  ;;  %769 = vlog2.f32 %v500_v33  ;;  %v637_v43 = vperm.slane %v905_v30, 7 }
 0x15a   :  { %v502_v28 = vrot.slane %v501_v34, 4  ;;  %v533_v22 = vadd.f32 %v520_v10, %v916_v41  ;;  %v766_v40 = vpop.eup %765  ;;  %v682_v46 = vsel %vm103_vm0, %v636_v37, 0.0  ;;  %v621_v48 = vsub.f32 %v531_v21, %v952_v20 }
 0x15b   :  { %v622_v50 = vsub.f32 %v532_v29, %v955_v31  ;;  %v522_v57 = vmul.f32 0.6931472, %v764_v27  ;;  %v681_v58 = vadd.f32 %v680_v52, %v679_v39  ;;  %v603_v36 = vrot.slane %v1002_v59, 2 }
 0x15c   :  { %v503_v53 = vadd.f32 %v502_v28, %v501_v34  ;;  %v768_v41 = vpop.eup %767  ;;  %v609_v60 = vadd.f32 %v608_v18, %v607_v16  ;;  %v684_v56 = vsel %vm103_vm0, %v637_v43, 0.0  ;;  %v623_v61 = vsub.f32 %v533_v22, %v998_v44 }
 0x15d   :  { %v524_v62 = vmul.f32 0.6931472, %v766_v40  ;;  %v508_v0 = vsel %vm378_vm4, %v768_v41, 0.0  ;;  %v683_v1 = vadd.f32 %v682_v46, %v681_v58  ;;  %v598_v20 = vrot.slane %v597_v38, 1 }
 0x15e   :  { %v504_v51 = vrot.slane %v503_v53, 2  ;;  %v509_v31 = vrot.slane %v508_v0, 4  ;;  %v615_v54 = vrot.slane %v614_v26, 4  ;;  %v646_v3 = vmul.f32 %v630_v42, %v621_v48 }
 0x15f   :  { %v647_v16 = vmul.f32 %v631_v32, %v622_v50  ;;  %v534_v5 = vadd.f32 %v522_v57, %v920_v47  ;;  %v685_v55 = vadd.f32 %v684_v56, %v683_v1  ;;  %v770_v8 = vpop.eup %769  ;;  %v592_v44 = vadd.f32 %v591_v45, %v981_v17 }
 0x160   :  { %v505_v2 = vadd.f32 %v504_v51, %v503_v53  ;;  %v510_v10 = vadd.f32 %v509_v31, %v508_v0  ;;  %v648_v11 = vmul.f32 %v632_v49, %v623_v61  ;;  %v535_v12 = vadd.f32 %v524_v62, %v936_v7 }
 0x161   :  { %v604_v42 = vadd.f32 %v603_v36, %v1002_v59  ;;  %v610_v13 = vrot.slane %v609_v60, 2  ;;  %686 = vadd.xlane.f32.xlu2 %v685_v55  ;;  %v599_v32 = vadd.f32 %v598_v20, %v597_v38  ;;  %v616_v21 = vadd.f32 %v615_v54, %v614_v26 }
 0x162   :  { %v506_v9 = vrot.slane %v505_v2, 1  ;;  %v511_v47 = vrot.slane %v510_v10, 2  ;;  %v624_v14 = vsub.f32 %v534_v5, %v592_v44  ;;  %v526_v27 = vmul.f32 0.6931472, %v770_v8 }
 0x163   :  { %v654_v29 = vsel %vm103_vm0, %v646_v3, 0.0  ;;  %v655_v17 = vsel %vm103_vm0, %v647_v16, 0.0  ;;  %v625_v33 = vsub.f32 %v535_v12, %v599_v32  ;;  %v605_v49 = vrot.slane %v604_v42, 1 }
 0x164   :  { %v507_v15 = vadd.f32 %v506_v9, %v505_v2  ;;  %v512_v45 = vadd.f32 %v511_v47, %v510_v10  ;;  %v611_v34 = vadd.f32 %v610_v13, %v609_v60  ;;  %v657_v7 = vsel %vm103_vm0, %v648_v11, 0.0 }
 0x165   :  { %v656_v23 = vadd.f32 %v655_v17, %v654_v29  ;;  %v536_v28 = vadd.f32 %v526_v27, %v962_v35  ;;  %v617_v18 = vrot.slane %v616_v21, 2  ;;  %v649_v52 = vmul.f32 %v633_v63, %v624_v14 }
 0x166   :  { %771 = vlog2.f32 %v507_v15  ;;  %v513_v59 = vrot.slane %v512_v45, 1  ;;  %v606_v26 = vadd.f32 %v605_v49, %v604_v42  ;;  %v612_v39 = vrot.slane %v611_v34, 1 }
 0x167   :  { %v658_v38 = vadd.f32 %v657_v7, %v656_v23  ;;  %v650_v40 = vmul.f32 %v634_v4, %v625_v33  ;;  %v618_v48 = vadd.f32 %v617_v18, %v616_v21  ;;  %v659_v57 = vsel %vm103_vm0, %v649_v52, 0.0 }
 0x168   :  { %v514_v22 = vadd.f32 %v513_v59, %v512_v45  ;;  %v626_v50 = vsub.f32 %v536_v28, %v606_v26  ;;  %v613_v41 = vadd.f32 %v612_v39, %v611_v34 }
 0x169   :  { %v660_v58 = vadd.f32 %v659_v57, %v658_v38  ;;  %v661_v63 = vsel %vm103_vm0, %v650_v40, 0.0  ;;  %v619_v36 = vrot.slane %v618_v48, 1 }
 0x16a   :  { %773 = vlog2.f32 %v514_v22  ;;  %v651_v60 = vmul.f32 %v635_v19, %v626_v50 }
 0x16b   :  { %v662_v4 = vadd.f32 %v661_v63, %v660_v58  ;;  %v620_v1 = vadd.f32 %v619_v36, %v618_v48 }
 0x16c   :  { %v772_v53 = vpop.eup %771  ;;  %v663_v20 = vsel %vm103_vm0, %v651_v60, 0.0 }
 0x16d   :  { %v528_v46 = vmul.f32 0.6931472, %v772_v53  ;;  %v664_v2 = vadd.f32 %v663_v20, %v662_v4 }
 0x16f   :  { %v537_v35 = vadd.f32 %v528_v46, %v984_v24 }
 0x170   :  { %v774_v56 = vpop.eup %773 }
 0x171   :  { %v627_v51 = vsub.f32 %v537_v35, %v613_v41  ;;  %v530_v61 = vmul.f32 0.6931472, %v774_v56 }
 0x173   :  { %v652_v62 = vmul.f32 %v636_v37, %v627_v51  ;;  %v538_v0 = vadd.f32 %v530_v61, %v1005_v6 }
 0x175   :  { %v665_v24 = vsel %vm103_vm0, %v652_v62, 0.0  ;;  %v628_v31 = vsub.f32 %v538_v0, %v620_v1 }
 0x176   :  { %v666_v54 = vadd.f32 %v665_v24, %v664_v2 }
 0x177   :  { %v653_v3 = vmul.f32 %v637_v43, %v628_v31 }
 0x179   :  { %v667_v19 = vsel %vm103_vm0, %v653_v3, 0.0 }
 0x17a   :  { %v668_v16 = vadd.f32 %v667_v19, %v666_v54 }
 0x17c   :  { %669 = vadd.xlane.f32.xlu1 %v668_v16 }
 0x1d4   :  { %v687_v5 = vpop.xlane.xlu2 %686 }
 0x1d5   :  { %v692_v55 = vperm.slane %v687_v5, 0 }
 0x1d7   :  { %v693_v37 = vsel %vm691_vm14, %v692_v55, 0.0 }
 0x1ef   :  { %v670_v6 = vpop.xlane.xlu1 %669 }
 0x1f0   :  { %v689_v8 = vperm.slane %v670_v6, 0 }
 0x1f2   :  { %v690_v44 = vsel %vm688_vm15, %v689_v8, 0.0 }
 0x1f3   :  { %v694_v9 = vadd.f32 %v693_v37, %v690_v44 }
 0x1f5   :  { %702 = vst [vmem:[%s1095_s6] sm:$0xff] %v694_v9 }

// kernel: mean_teacher_forward_train.5
= control target key start
LH: loop header
LB: loop body
LE: loop exit
PB: predicated region body
PF: predicated region fallthrough
CT: control target
= control target key end

     0   :  { %vm97_vm0 = vcmask 1040384   ;;  %v1577_v2 = vmov 0   ;;  %vm98_vm1 = vcmask 1041408   ;;  %v1578_v4 = vmov 65535   ;;  %s2153_s1 = inlined_call_operand.vmem [shape: bf16[3,1024], index: 1, kind: input, shape index: {}]   ;;  %s2154_s3 = inlined_call_operand.vmem [shape: f32[16,1], index: 3, kind: input, shape index: {}]   ;;  %s2155_s2 = inlined_call_operand.vmem [shape: bf16[16,3], index: 2, kind: input, shape index: {}]   ;;  %s2156_s4 = inlined_call_operand.vmem [shape: bf16[4,16], index: 4, kind: input, shape index: {}]   ;;  %s2157_s5 = inlined_call_operand.vmem [shape: f32[4,1], index: 5, kind: input, shape index: {}]   ;;  %s2158_s7 = inlined_call_operand.vmem [shape: f32[16,1], index: 7, kind: input, shape index: {}]   ;;  %s2159_s6 = inlined_call_operand.vmem [shape: bf16[16,3], index: 6, kind: input, shape index: {}]   ;;  %s2160_s9 = inlined_call_operand.vmem [shape: f32[4,1], index: 9, kind: input, shape index: {}]   ;;  %s2161_s8 = inlined_call_operand.vmem [shape: bf16[4,16], index: 8, kind: input, shape index: {}]   ;;  %s2162_s0 = inlined_call_operand.<no memory space> [shape: f32[1,1], index: 0, kind: input, shape index: {}]   ;;  %s2163_s10 = inlined_call_operand.vmem [shape: f32[8,128], index: 10, kind: output, shape index: {}]  }
   0x1   :  { %v59_v0 = vld [vmem:[%s2153_s1] sm:$0xff]  ;;  %1518 = vset.pattern.permute.xlu0 %v1577_v2  ;;  %v60_v3 = vld [vmem:[%s2153_s1 + $0x8] sm:$0xff]  ;;  %1520 = vset.pattern.permute.xlu2 %v1577_v2  ;;  %v99_v5 = vsel %vm97_vm0, 4294967295, %v1578_v4  ;;  %vm93_vm2 = vcmask 23552   ;;  %vm260_vm3 = vcmask 130048   ;;  %vm368_vm4 = vcmask 1043456  }
   0x2   :  { %v63_v1 = vld [vmem:[%s2154_s3] sm:$0xff]  ;;  %81 = vst [vmem:[#allocation1] ss:$4 sm:$0xff] %v59_v0  ;;  %1519 = vset.pattern.permute.xlu1 %v1577_v2  ;;  %v1644_v6 = vsel %vm98_vm1, %v99_v5, 0  ;;  %v64_v7 = vld [vmem:[%s2154_s3 + $0x8] sm:$0xff] }
   0x3   :  { %67 = vperm.xlu0 %1518, %v63_v1   ;;  %84 = vst [vmem:[#allocation1 + $0x20] ss:$4 sm:$0xff] %v60_v3  ;;  %v1513_v16 = vld [vmem:[%s2155_s2] sm:$0xff] }
   0x4   :  { %v1681_v47 = vld [vmem:[%s2156_s4] sm:$0x3] }
   0x5   :  { %v254_v56 = vld [vmem:[%s2157_s5] sm:$0xf] }
   0x6   :  { %257 = vperm.xlu2 %1520, %v254_v56   ;;  %v883_v5 = vld [vmem:[%s2158_s7] sm:$0xff] }
   0x7   :  { %887 = vperm.xlu1 %1519, %v883_v5  }
   0x9   :  { %v85_v8 = vld.sshfl [vmem:[#allocation1] sm:$0xff pattern:$0x73625140]  ;;  %v86_v9 = vld.sshfl [vmem:[#allocation1 + $0x8] sm:$0xff pattern:$0x73625140] }
   0xa   :  { %v101_v10 = vand.u32 %v1644_v6, %v85_v8  ;;  %v103_v11 = vand.u32 %v1644_v6, %v86_v9  ;;  %v87_v12 = vld.sshfl [vmem:[#allocation1 + $0x10] sm:$0xff pattern:$0x73625140]  ;;  %v88_v13 = vld.sshfl [vmem:[#allocation1 + $0x18] sm:$0xff pattern:$0x73625140] }
   0xb   :  { %v105_v14 = vand.u32 %v1644_v6, %v87_v12  ;;  %v107_v15 = vand.u32 %v1644_v6, %v88_v13  ;;  %900 = vst [vmem:[#allocation1] ss:$4 sm:$0xff] %v59_v0  ;;  %v89_v17 = vld.sshfl [vmem:[#allocation1 + $0x20] sm:$0xff pattern:$0x73625140]  ;;  %72 = vperm.xlu0 %1518, %v64_v7  }
   0xc   :  { %124 = vmatpush.bf16.msra.mxu0 %v101_v10  ;;  %138 = vmatpush.bf16.msra.mxu1 %v103_v11  ;;  %v109_v18 = vand.u32 %v1644_v6, %v89_v17  ;;  %v90_v19 = vld.sshfl [vmem:[#allocation1 + $0x28] sm:$0xff pattern:$0x73625140]  ;;  %v91_v20 = vld.sshfl [vmem:[#allocation1 + $0x30] sm:$0xff pattern:$0x73625140] }
   0xd   :  { %152 = vmatpush.bf16.msra.mxu2 %v105_v14  ;;  %166 = vmatpush.bf16.msra.mxu3 %v107_v15  ;;  %v111_v21 = vand.u32 %v1644_v6, %v90_v19  ;;  %v113_v22 = vand.u32 %v1644_v6, %v91_v20  ;;  %v92_v23 = vld.sshfl [vmem:[#allocation1 + $0x38] sm:$0xff pattern:$0x73625140] }
   0xe   :  { %v115_v24 = vand.u32 %v1644_v6, %v92_v23  ;;  %902 = vst [vmem:[#allocation1 + $0x20] ss:$4 sm:$0xff] %v60_v3 }
   0xf   :  { %1473 = vmatmul.msk.bf16.vlgmr.msra.gmra.mxu0 %vm93_vm2, %v1513_v16  ;;  %1474 = vmatmul.msk.bf16.vlgmr.msra.gmra.mxu1 %vm93_vm2, %v1513_v16 }
  0x10   :  { %180 = vmatpush.bf16.msrb.mxu0 %v109_v18  ;;  %1475 = vmatmul.msk.bf16.vlgmr.msra.gmra.mxu2 %vm93_vm2, %v1513_v16 }
  0x11   :  { %1476 = vmatmul.msk.bf16.vlgmr.msra.gmra.mxu3 %vm93_vm2, %v1513_v16  ;;  %194 = vmatpush.bf16.msrb.mxu1 %v111_v21 }
  0x12   :  { %208 = vmatpush.bf16.msrb.mxu2 %v113_v22  ;;  %222 = vmatpush.bf16.msrb.mxu3 %v115_v24  ;;  %v903_v1 = vld.sshfl [vmem:[#allocation1] sm:$0xff pattern:$0x73625140]  ;;  %v904_v4 = vld.sshfl [vmem:[#allocation1 + $0x8] sm:$0xff pattern:$0x73625140] }
  0x13   :  { %v914_v11 = vand.u32 %v903_v1, %v1644_v6  ;;  %v916_v12 = vand.u32 %v904_v4, %v1644_v6 }
  0x15   :  { %v907_v13 = vld.sshfl [vmem:[#allocation1 + $0x20] sm:$0xff pattern:$0x73625140]  ;;  %v908_v14 = vld.sshfl [vmem:[#allocation1 + $0x28] sm:$0xff pattern:$0x73625140] }
  0x16   :  { %v922_v21 = vand.u32 %v907_v13, %v1644_v6  ;;  %v924_v22 = vand.u32 %v908_v14, %v1644_v6 }
  0x1f   :  { %1477 = vmatmul.msk.bf16.vlgmr.msrb.gmra.mxu0 %vm93_vm2, %v1513_v16  ;;  %1478 = vmatmul.msk.bf16.vlgmr.msrb.gmra.mxu1 %vm93_vm2, %v1513_v16 }
  0x20   :  { %1479 = vmatmul.msk.bf16.vlgmr.msrb.gmra.mxu2 %vm93_vm2, %v1513_v16 }
  0x21   :  { %1480 = vmatmul.msk.bf16.vlgmr.msrb.gmra.mxu3 %vm93_vm2, %v1513_v16 }
  0x75   :  { %v1668_v25 = vpop.permute.xlu0 %67 }
  0x7d   :  { %v1670_v28 = vpop.permute.xlu0 %72 }
  0x8c   :  { %v126_v26 = vpop.f32.mrf.mxu0  ;;  %v140_v27 = vpop.f32.mrf.mxu1 }
  0x8d   :  { %v127_v29 = vadd.f32 %v126_v26, %v1668_v25  ;;  %v141_v30 = vadd.f32 %v140_v27, %v1668_v25  ;;  %v905_v26 = vld.sshfl [vmem:[#allocation1 + $0x10] sm:$0xff pattern:$0x73625140]  ;;  %v906_v27 = vld.sshfl [vmem:[#allocation1 + $0x18] sm:$0xff pattern:$0x73625140] }
  0x8f   :  { %v229_v37 = vmax.f32 %v127_v29, 0.0  ;;  %v230_v38 = vmax.f32 %v141_v30, 0.0 }
  0x93   :  { %v154_v31 = vpop.f32.mrf.mxu2 }
  0x94   :  { %v168_v32 = vpop.f32.mrf.mxu3  ;;  %v128_v33 = vpop.f32.mrf.mxu0  ;;  %v155_v43 = vadd.f32 %v154_v31, %v1668_v25 }
  0x95   :  { %v142_v34 = vpop.f32.mrf.mxu1  ;;  %v129_v35 = vadd.f32 %v128_v33, %v1670_v28  ;;  %v169_v44 = vadd.f32 %v168_v32, %v1668_v25  ;;  %v884_v32 = vld [vmem:[%s2158_s7 + $0x8] sm:$0xff]  ;;  %v920_v33 = vand.u32 %v906_v27, %v1644_v6 }
  0x96   :  { %v143_v36 = vadd.f32 %v142_v34, %v1670_v28  ;;  %v231_v52 = vmax.f32 %v155_v43, 0.0  ;;  %v909_v34 = vld.sshfl [vmem:[#allocation1 + $0x30] sm:$0xff pattern:$0x73625140]  ;;  %892 = vperm.xlu1 %1519, %v884_v32  }
  0x97   :  { %v237_v39 = vmax.f32 %v129_v35, 0.0  ;;  %v232_v53 = vmax.f32 %v169_v44, 0.0  ;;  %v910_v35 = vld.sshfl [vmem:[#allocation1 + $0x38] sm:$0xff pattern:$0x73625140] }
  0x98   :  { %v238_v40 = vmax.f32 %v143_v36, 0.0 }
  0x99   :  { %v245_v41 = vpack.c.bf16 %v237_v39, %v229_v37  ;;  %v928_v39 = vand.u32 %v910_v35, %v1644_v6 }
  0x9a   :  { %v246_v42 = vpack.c.bf16 %v238_v40, %v230_v38  ;;  %v926_v38 = vand.u32 %v909_v34, %v1644_v6  ;;  %v1514_v40 = vld [vmem:[%s2159_s6] sm:$0xff] }
  0x9b   :  { %v156_v45 = vpop.f32.mrf.mxu2  ;;  %271 = vmatpush.bf16.msra.mxu0 %v245_v41 }
  0x9c   :  { %v170_v46 = vpop.f32.mrf.mxu3  ;;  %284 = vmatpush.bf16.msra.mxu1 %v246_v42  ;;  %v157_v48 = vadd.f32 %v156_v45, %v1670_v28  ;;  %v182_v50 = vpop.f32.mrf.mxu0 }
  0x9d   :  { %v171_v49 = vadd.f32 %v170_v46, %v1670_v28  ;;  %v196_v51 = vpop.f32.mrf.mxu1  ;;  %v183_v59 = vadd.f32 %v182_v50, %v1668_v25 }
  0x9e   :  { %v239_v54 = vmax.f32 %v157_v48, 0.0  ;;  %1481 = vmatmul.msk.bf16.vlgmr.msra.gmra.mxu0 %vm260_vm3, %v1681_v47  ;;  %v197_v60 = vadd.f32 %v196_v51, %v1668_v25 }
  0x9f   :  { %v240_v55 = vmax.f32 %v171_v49, 0.0  ;;  %1482 = vmatmul.msk.bf16.vlgmr.msra.gmra.mxu1 %vm260_vm3, %v1681_v47  ;;  %v233_v7 = vmax.f32 %v183_v59, 0.0 }
  0xa0   :  { %v247_v57 = vpack.c.bf16 %v239_v54, %v231_v52  ;;  %v234_v8 = vmax.f32 %v197_v60, 0.0 }
  0xa1   :  { %v248_v58 = vpack.c.bf16 %v240_v55, %v232_v53 }
  0xa2   :  { %297 = vmatpush.bf16.msra.mxu2 %v247_v57 }
  0xa3   :  { %310 = vmatpush.bf16.msra.mxu3 %v248_v58  ;;  %v210_v61 = vpop.f32.mrf.mxu2 }
  0xa4   :  { %v224_v62 = vpop.f32.mrf.mxu3  ;;  %v184_v63 = vpop.f32.mrf.mxu0  ;;  %v211_v17 = vadd.f32 %v210_v61, %v1668_v25 }
  0xa5   :  { %v198_v0 = vpop.f32.mrf.mxu1  ;;  %v185_v2 = vadd.f32 %v184_v63, %v1670_v28  ;;  %1483 = vmatmul.msk.bf16.vlgmr.msra.gmra.mxu2 %vm260_vm3, %v1681_v47  ;;  %v225_v18 = vadd.f32 %v224_v62, %v1668_v25 }
  0xa6   :  { %v199_v3 = vadd.f32 %v198_v0, %v1670_v28  ;;  %1484 = vmatmul.msk.bf16.vlgmr.msra.gmra.mxu3 %vm260_vm3, %v1681_v47  ;;  %v235_v29 = vmax.f32 %v211_v17, 0.0 }
  0xa7   :  { %v241_v9 = vmax.f32 %v185_v2, 0.0  ;;  %v236_v30 = vmax.f32 %v225_v18, 0.0 }
  0xa8   :  { %v242_v10 = vmax.f32 %v199_v3, 0.0 }
  0xa9   :  { %v249_v15 = vpack.c.bf16 %v241_v9, %v233_v7 }
  0xaa   :  { %v250_v16 = vpack.c.bf16 %v242_v10, %v234_v8 }
  0xab   :  { %v212_v19 = vpop.f32.mrf.mxu2  ;;  %323 = vmatpush.bf16.msrb.mxu0 %v249_v15 }
  0xac   :  { %v226_v20 = vpop.f32.mrf.mxu3  ;;  %336 = vmatpush.bf16.msrb.mxu1 %v250_v16  ;;  %v213_v23 = vadd.f32 %v212_v19, %v1670_v28 }
  0xad   :  { %v227_v24 = vadd.f32 %v226_v20, %v1670_v28  ;;  %v918_v28 = vand.u32 %v905_v26, %v1644_v6  ;;  %v1737_v6 = vpop.permute.xlu2 %257 }
  0xae   :  { %v243_v31 = vmax.f32 %v213_v23, 0.0  ;;  %1485 = vmatmul.msk.bf16.vlgmr.msrb.gmra.mxu0 %vm260_vm3, %v1681_v47 }
  0xaf   :  { %937 = vmatpush.bf16.msra.mxu0 %v914_v11  ;;  %v244_v25 = vmax.f32 %v227_v24, 0.0  ;;  %1486 = vmatmul.msk.bf16.vlgmr.msrb.gmra.mxu1 %vm260_vm3, %v1681_v47 }
  0xb0   :  { %951 = vmatpush.bf16.msra.mxu1 %v916_v12  ;;  %v251_v36 = vpack.c.bf16 %v243_v31, %v235_v29 }
  0xb1   :  { %v252_v37 = vpack.c.bf16 %v244_v25, %v236_v30 }
  0xb2   :  { %349 = vmatpush.bf16.msrb.mxu2 %v251_v36 }
  0xb3   :  { %993 = vmatpush.bf16.msrb.mxu0 %v922_v21  ;;  %362 = vmatpush.bf16.msrb.mxu3 %v252_v37 }
  0xb4   :  { %1007 = vmatpush.bf16.msrb.mxu1 %v924_v22 }
  0xb5   :  { %1487 = vmatmul.msk.bf16.vlgmr.msrb.gmra.mxu2 %vm260_vm3, %v1681_v47 }
  0xb6   :  { %965 = vmatpush.bf16.msra.mxu2 %v918_v28  ;;  %1488 = vmatmul.msk.bf16.vlgmr.msrb.gmra.mxu3 %vm260_vm3, %v1681_v47 }
  0xb7   :  { %979 = vmatpush.bf16.msra.mxu3 %v920_v33 }
  0xba   :  { %1021 = vmatpush.bf16.msrb.mxu2 %v926_v38 }
  0xbb   :  { %1035 = vmatpush.bf16.msrb.mxu3 %v928_v39 }
  0xbe   :  { %1497 = vmatmul.msk.bf16.vlgmr.msra.gmra.mxu0 %vm93_vm2, %v1514_v40 }
  0xbf   :  { %1498 = vmatmul.msk.bf16.vlgmr.msra.gmra.mxu1 %vm93_vm2, %v1514_v40 }
  0xc5   :  { %1499 = vmatmul.msk.bf16.vlgmr.msra.gmra.mxu2 %vm93_vm2, %v1514_v40 }
  0xc6   :  { %1500 = vmatmul.msk.bf16.vlgmr.msra.gmra.mxu3 %vm93_vm2, %v1514_v40 }
  0xce   :  { %1501 = vmatmul.msk.bf16.vlgmr.msrb.gmra.mxu0 %vm93_vm2, %v1514_v40 }
  0xcf   :  { %1502 = vmatmul.msk.bf16.vlgmr.msrb.gmra.mxu1 %vm93_vm2, %v1514_v40 }
  0xd5   :  { %1503 = vmatmul.msk.bf16.vlgmr.msrb.gmra.mxu2 %vm93_vm2, %v1514_v40 }
  0xd6   :  { %1504 = vmatmul.msk.bf16.vlgmr.msrb.gmra.mxu3 %vm93_vm2, %v1514_v40 }
 0x11b   :  { %v273_v41 = vpop.f32.mrf.mxu0 }
 0x11c   :  { %v286_v42 = vpop.f32.mrf.mxu1  ;;  %v1740_v43 = vadd.f32 %v273_v41, %v1737_v6 }
 0x11d   :  { %v1743_v44 = vadd.f32 %v286_v42, %v1737_v6 }
 0x11e   :  { %v369_v45 = vsel %vm368_vm4, %v1740_v43, -inf }
 0x11f   :  { %v376_v46 = vsel %vm368_vm4, %v1743_v44, -inf  ;;  %v370_v47 = vrot.slane %v369_v45, 4 }
 0x120   :  { %v377_v48 = vrot.slane %v376_v46, 4 }
 0x121   :  { %v371_v49 = vmax.f32 %v369_v45, %v370_v47 }
 0x122   :  { %v378_v50 = vmax.f32 %v376_v46, %v377_v48 }
 0x123   :  { %v372_v51 = vrot.slane %v371_v49, 2  ;;  %v275_v53 = vpop.f32.mrf.mxu0 }
 0x124   :  { %v379_v52 = vrot.slane %v378_v50, 2  ;;  %v288_v54 = vpop.f32.mrf.mxu1 }
 0x125   :  { %v373_v55 = vmax.f32 %v371_v49, %v372_v51 }
 0x126   :  { %v380_v56 = vmax.f32 %v378_v50, %v379_v52 }
 0x127   :  { %v374_v57 = vrot.slane %v373_v55, 1 }
 0x128   :  { %v381_v58 = vrot.slane %v380_v56, 1  ;;  %v299_v59 = vpop.f32.mrf.mxu2 }
 0x129   :  { %v312_v60 = vpop.f32.mrf.mxu3  ;;  %v1749_v61 = vmax.f32 %v373_v55, %v374_v57  ;;  %v1754_v63 = vadd.f32 %v299_v59, %v1737_v6 }
 0x12a   :  { %v1751_v62 = vmax.f32 %v380_v56, %v381_v58  ;;  %v1757_v0 = vadd.f32 %v312_v60, %v1737_v6 }
 0x12b   :  { %v425_v1 = vsub.f32 %v1740_v43, %v1749_v61  ;;  %vm723_vm5 = vcmp.eq.f32.partialorder %v1740_v43, %v1749_v61  ;;  %v1767_v3 = vpop.f32.mrf.mxu0  ;;  %v383_v5 = vsel %vm368_vm4, %v1754_v63, -inf }
 0x12c   :  { %v426_v2 = vsub.f32 %v1743_v44, %v1751_v62  ;;  %vm724_vm6 = vcmp.eq.f32.partialorder %v1743_v44, %v1751_v62  ;;  %v1769_v4 = vpop.f32.mrf.mxu1  ;;  %v390_v7 = vsel %vm368_vm4, %v1757_v0, -inf  ;;  %v384_v10 = vrot.slane %v383_v5, 4 }
 0x12d   :  { %v433_v8 = vmul.f32 1.442695, %v425_v1  ;;  %v391_v11 = vrot.slane %v390_v7, 4 }
 0x12e   :  { %v435_v9 = vmul.f32 1.442695, %v426_v2  ;;  %v385_v12 = vmax.f32 %v383_v5, %v384_v10 }
 0x12f   :  { %1521 = vpow2.f32 %v433_v8  ;;  %v392_v13 = vmax.f32 %v390_v7, %v391_v11 }
 0x130   :  { %1523 = vpow2.f32 %v435_v9  ;;  %v301_v14 = vpop.f32.mrf.mxu2  ;;  %v386_v16 = vrot.slane %v385_v12, 2 }
 0x131   :  { %v314_v15 = vpop.f32.mrf.mxu3  ;;  %v393_v17 = vrot.slane %v392_v13, 2 }
 0x132   :  { %v387_v20 = vmax.f32 %v385_v12, %v386_v16 }
 0x133   :  { %v327_v18 = vpop.f32.mrf.mxu0  ;;  %v394_v21 = vmax.f32 %v392_v13, %v393_v17 }
 0x134   :  { %v340_v19 = vpop.f32.mrf.mxu1  ;;  %v388_v26 = vrot.slane %v387_v20, 1 }
 0x135   :  { %v1775_v22 = vpop.eup %1521  ;;  %v395_v27 = vrot.slane %v394_v21, 1 }
 0x136   :  { %v1777_v23 = vpop.eup %1523  ;;  %v449_v24 = vsel %vm368_vm4, %v1775_v22, 0.0  ;;  %v1783_v25 = vmax.f32 %v387_v20, %v388_v26 }
 0x137   :  { %v450_v29 = vrot.slane %v449_v24, 4  ;;  %v456_v30 = vsel %vm368_vm4, %v1777_v23, 0.0  ;;  %v1785_v32 = vmax.f32 %v394_v21, %v395_v27 }
 0x138   :  { %v457_v31 = vrot.slane %v456_v30, 4  ;;  %v1787_v28 = vpop.f32.mrf.mxu2  ;;  %v427_v36 = vsub.f32 %v1754_v63, %v1783_v25  ;;  %vm725_vm7 = vcmp.eq.f32.partialorder %v1754_v63, %v1783_v25 }
 0x139   :  { %v1789_v33 = vpop.f32.mrf.mxu3  ;;  %v451_v34 = vadd.f32 %v450_v29, %v449_v24  ;;  %v428_v37 = vsub.f32 %v1757_v0, %v1785_v32  ;;  %vm726_vm8 = vcmp.eq.f32.partialorder %v1757_v0, %v1785_v32  ;;  %v1813_v24 = vpop.permute.xlu1 %887 }
 0x13a   :  { %v458_v35 = vadd.f32 %v457_v31, %v456_v30  ;;  %v437_v40 = vmul.f32 1.442695, %v427_v36 }
 0x13b   :  { %v452_v38 = vrot.slane %v451_v34, 2  ;;  %v439_v42 = vmul.f32 1.442695, %v428_v37  ;;  %v939_v55 = vpop.f32.mrf.mxu0 }
 0x13c   :  { %v459_v39 = vrot.slane %v458_v35, 2  ;;  %1525 = vpow2.f32 %v437_v40  ;;  %v1807_v60 = vpop.f32.mrf.mxu1 }
 0x13d   :  { %v453_v41 = vadd.f32 %v452_v38, %v451_v34  ;;  %1527 = vpow2.f32 %v439_v42 }
 0x13e   :  { %v460_v45 = vadd.f32 %v459_v39, %v458_v35 }
 0x13f   :  { %v454_v46 = vrot.slane %v453_v41, 1 }
 0x140   :  { %v461_v47 = vrot.slane %v460_v45, 1  ;;  %v353_v48 = vpop.f32.mrf.mxu2 }
 0x141   :  { %v366_v49 = vpop.f32.mrf.mxu3  ;;  %v455_v50 = vadd.f32 %v454_v46, %v453_v41 }
 0x142   :  { %v462_v51 = vadd.f32 %v461_v47, %v460_v45  ;;  %v1799_v52 = vpop.eup %1525 }
 0x143   :  { %1529 = vrcp.f32 %v455_v50  ;;  %v1801_v53 = vpop.eup %1527  ;;  %v463_v54 = vsel %vm368_vm4, %v1799_v52, 0.0  ;;  %v514_v15 = vand.u32 2147483647, %v455_v50  ;;  %v516_v16 = vand.u32 2147483648, %v455_v50  ;;  %v941_v30 = vpop.f32.mrf.mxu0 }
 0x144   :  { %1531 = vrcp.f32 %v462_v51  ;;  %v464_v56 = vrot.slane %v463_v54, 4  ;;  %v470_v57 = vsel %vm368_vm4, %v1801_v53, 0.0  ;;  %v531_v20 = vand.u32 2147483648, %v462_v51  ;;  %v955_v40 = vpop.f32.mrf.mxu1 }
 0x145   :  { %v471_v58 = vrot.slane %v470_v57, 4  ;;  %v529_v27 = vand.u32 2147483647, %v462_v51  ;;  %vm510_vm11 = vweird.f32 %v455_v50  ;;  %v517_v35 = vor.u32 1.1754944e-38, %v516_v16 }
 0x146   :  { %v465_v59 = vadd.f32 %v464_v56, %v463_v54  ;;  %vm525_vm13 = vweird.f32 %v462_v51  ;;  %vm515_vm14 = vcmp.eq.f32.partialorder %v514_v15, 8.507059e+37  ;;  %v532_v39 = vor.u32 1.1754944e-38, %v531_v20 }
 0x147   :  { %v472_v2 = vadd.f32 %v471_v58, %v470_v57  ;;  %vm530_vm0 = vcmp.eq.f32.partialorder %v529_v27, 8.507059e+37  ;;  %v940_v56 = vadd.f32 %v939_v55, %v1813_v24  ;;  %v1831_v57 = vpop.permute.xlu1 %892 }
 0x148   :  { %v1809_v5 = vpop.f32.mrf.mxu2  ;;  %v466_v10 = vrot.slane %v465_v59, 2  ;;  %v956_v55 = vadd.f32 %v955_v40, %v1831_v57 }
 0x149   :  { %v1530_v1 = vpop.eup %1529  ;;  %v1811_v7 = vpop.f32.mrf.mxu3  ;;  %v473_v12 = vrot.slane %v472_v2, 2 }
 0x14a   :  { %v1532_v8 = vpop.eup %1531  ;;  %v506_v9 = vmul.f32 %v1530_v1, %v455_v50  ;;  %v467_v14 = vadd.f32 %v466_v10, %v465_v59  ;;  %vm511_vm9 = vweird.f32 %v1530_v1 }
 0x14b   :  { %v521_v11 = vmul.f32 %v1532_v8, %v462_v51  ;;  %v474_v18 = vadd.f32 %v473_v12, %v472_v2  ;;  %vm526_vm10 = vweird.f32 %v1532_v8  ;;  %vm512_vm12 = vmor %vm510_vm11, %vm511_vm9  ;;  %v954_v12 = vadd.f32 %v1807_v60, %v1813_v24 }
 0x14c   :  { %v507_v13 = vsub.f32 1.0, %v506_v9  ;;  %v468_v21 = vrot.slane %v467_v14, 1  ;;  %vm527_vm15 = vmor %vm525_vm13, %vm526_vm10  ;;  %v942_v9 = vadd.f32 %v941_v30, %v1831_v57 }
 0x14d   :  { %v522_v17 = vsub.f32 1.0, %v521_v11  ;;  %v475_v29 = vrot.slane %v474_v18, 1  ;;  %v1042_v11 = vmax.f32 %v940_v56, 0.0 }
 0x14e   :  { %v508_v19 = vmul.f32 %v1530_v1, %v507_v13  ;;  %v469_v34 = vadd.f32 %v468_v21, %v467_v14  ;;  %v1009_v13 = vpop.f32.mrf.mxu1  ;;  %v1050_v16 = vmax.f32 %v942_v9, 0.0 }
 0x14f   :  { %v523_v26 = vmul.f32 %v1532_v8, %v522_v17  ;;  %v1815_v37 = vadd.f32 %v475_v29, %v474_v18  ;;  %v1067_v29 = vld [vmem:[%s2160_s9] sm:$0xf] }
 0x150   :  { %v509_v31 = vadd.f32 %v1530_v1, %v508_v19  ;;  %1533 = vrcp.f32 %v469_v34  ;;  %v1818_v45 = vpop.f32.mrf.mxu2  ;;  %vm540_vm2 = vweird.f32 %v469_v34  ;;  %1070 = vperm.xlu2 %1520, %v1067_v29  }
 0x151   :  { %v524_v36 = vadd.f32 %v1532_v8, %v523_v26  ;;  %1535 = vrcp.f32 %v1815_v37  ;;  %v1820_v46 = vpop.f32.mrf.mxu3  ;;  %v561_v15 = vand.u32 2147483648, %v1815_v37  ;;  %v559_v21 = vand.u32 2147483647, %v1815_v37 }
 0x152   :  { %v513_v38 = vsel %vm512_vm12, %v1530_v1, %v509_v31  ;;  %v995_v1 = vpop.f32.mrf.mxu0  ;;  %vm555_vm11 = vweird.f32 %v1815_v37  ;;  %v970_v9 = vadd.f32 %v1818_v45, %v1831_v57 }
 0x153   :  { %v518_v41 = vsel %vm515_vm14, %v517_v35, %v513_v38  ;;  %v528_v42 = vsel %vm527_vm15, %v1532_v8, %v524_v36  ;;  %v544_v8 = vand.u32 2147483647, %v469_v34  ;;  %v1051_v35 = vmax.f32 %v956_v55, 0.0 }
 0x154   :  { %v1823_v47 = vmul.f32 %v1775_v22, %v518_v41  ;;  %v533_v48 = vsel %vm530_vm0, %v532_v39, %v528_v42  ;;  %v968_v36 = vadd.f32 %v1809_v5, %v1813_v24  ;;  %v562_v40 = vor.u32 1.1754944e-38, %v561_v15 }
 0x155   :  { %v1826_v49 = vmul.f32 %v1777_v23, %v533_v48  ;;  %v546_v23 = vand.u32 2147483648, %v469_v34  ;;  %vm1840_vm10 = vcmp.eq.f32.partialorder %v544_v8, 8.507059e+37  ;;  %vm560_vm14 = vcmp.eq.f32.partialorder %v559_v21, 8.507059e+37 }
 0x156   :  { %v625_v50 = vadd.f32 1e-10, %v1823_v47  ;;  %v1534_v54 = vpop.eup %1533  ;;  %v982_v5 = vadd.f32 %v1811_v7, %v1813_v24  ;;  %v996_v8 = vadd.f32 %v995_v1, %v1813_v24  ;;  %v1052_v15 = vmax.f32 %v970_v9, 0.0 }
 0x157   :  { %v626_v51 = vadd.f32 1e-10, %v1826_v49  ;;  %v1536_v58 = vpop.eup %1535  ;;  %v536_v59 = vmul.f32 %v1534_v54, %v469_v34  ;;  %vm541_vm1 = vweird.f32 %v1534_v54  ;;  %v547_v60 = vor.u32 1.1754944e-38, %v546_v23 }
 0x158   :  { %1537 = vlog2.f32 %v625_v50  ;;  %v551_v22 = vmul.f32 %v1536_v58, %v1815_v37  ;;  %v1023_v17 = vpop.f32.mrf.mxu2  ;;  %vm556_vm9 = vweird.f32 %v1536_v58  ;;  %vm542_vm12 = vmor %vm540_vm2, %vm541_vm1  ;;  %v1043_v34 = vmax.f32 %v954_v12, 0.0 }
 0x159   :  { %1539 = vlog2.f32 %v626_v51  ;;  %v537_v2 = vsub.f32 1.0, %v536_v59  ;;  %v1037_v18 = vpop.f32.mrf.mxu3  ;;  %vm557_vm13 = vmor %vm555_vm11, %vm556_vm9  ;;  %v1058_v37 = vpack.c.bf16 %v1050_v16, %v1042_v11  ;;  %v1010_v23 = vadd.f32 %v1009_v13, %v1813_v24 }
 0x15a   :  { %v552_v10 = vsub.f32 1.0, %v551_v22  ;;  %v997_v56 = vpop.f32.mrf.mxu0  ;;  %v1059_v22 = vpack.c.bf16 %v1051_v35, %v1043_v34  ;;  %v1045_v1 = vmax.f32 %v982_v5, 0.0  ;;  %v1046_v12 = vmax.f32 %v996_v8, 0.0 }
 0x15b   :  { %v538_v14 = vmul.f32 %v1534_v54, %v537_v2  ;;  %1083 = vmatpush.bf16.msra.mxu0 %v1058_v37 }
 0x15c   :  { %v553_v20 = vmul.f32 %v1536_v58, %v552_v10  ;;  %1096 = vmatpush.bf16.msra.mxu1 %v1059_v22  ;;  %v998_v10 = vadd.f32 %v997_v56, %v1831_v57 }
 0x15d   :  { %v539_v26 = vadd.f32 %v1534_v54, %v538_v14  ;;  %v1047_v14 = vmax.f32 %v1010_v23, 0.0 }
 0x15e   :  { %v1538_v19 = vpop.eup %1537  ;;  %v554_v31 = vadd.f32 %v1536_v58, %v553_v20  ;;  %v1054_v45 = vmax.f32 %v998_v10, 0.0  ;;  %v1038_v20 = vadd.f32 %v1037_v18, %v1813_v24 }
 0x15f   :  { %v1540_v30 = vpop.eup %1539  ;;  %v634_v38 = vmul.f32 0.6931472, %v1538_v19  ;;  %v543_v39 = vsel %vm542_vm12, %v1534_v54, %v539_v26  ;;  %v1862_v54 = vld [vmem:[%s2161_s8] sm:$0x3]  ;;  %v1024_v19 = vadd.f32 %v1023_v17, %v1813_v24 }
 0x160   :  { %v548_v41 = vsel %vm1840_vm10, %v547_v60, %v543_v39  ;;  %v558_v42 = vsel %vm557_vm13, %v1536_v58, %v554_v31  ;;  %v636_v48 = vmul.f32 0.6931472, %v1540_v30  ;;  %v1044_v58 = vmax.f32 %v968_v36, 0.0  ;;  %1505 = vmatmul.msk.bf16.vlgmr.msra.gmra.mxu0 %vm260_vm3, %v1862_v54  ;;  %v1025_v55 = vpop.f32.mrf.mxu2  ;;  %1506 = vmatmul.msk.bf16.vlgmr.msra.gmra.mxu1 %vm260_vm3, %v1862_v54 }
 0x161   :  { %v1855_v50 = vmul.f32 %v1799_v52, %v548_v41  ;;  %v563_v51 = vsel %vm560_vm14, %v562_v40, %v558_v42  ;;  %v649_v2 = vmul.f32 %v634_v38, %v1823_v47  ;;  %v1011_v47 = vpop.f32.mrf.mxu1  ;;  %v1039_v13 = vpop.f32.mrf.mxu3  ;;  %v1026_v26 = vadd.f32 %v1025_v55, %v1831_v57 }
 0x162   :  { %v564_v59 = vmul.f32 %v1801_v53, %v563_v51  ;;  %v984_v53 = vadd.f32 %v1820_v46, %v1831_v57  ;;  %v650_v11 = vmul.f32 %v636_v48, %v1826_v49  ;;  %v1012_v46 = vadd.f32 %v1011_v47, %v1831_v57 }
 0x163   :  { %v627_v52 = vadd.f32 1e-10, %v1855_v50  ;;  %v1060_v49 = vpack.c.bf16 %v1052_v15, %v1044_v58  ;;  %v1040_v27 = vadd.f32 %v1039_v13, %v1831_v57  ;;  %v1062_v60 = vpack.c.bf16 %v1054_v45, %v1046_v12 }
 0x164   :  { %v628_v7 = vadd.f32 1e-10, %v564_v59  ;;  %v1053_v16 = vmax.f32 %v984_v53, 0.0  ;;  %v1055_v29 = vmax.f32 %v1012_v46, 0.0  ;;  %v1048_v30 = vmax.f32 %v1024_v19, 0.0 }
 0x165   :  { %1541 = vlog2.f32 %v627_v52  ;;  %v1049_v31 = vmax.f32 %v1038_v20, 0.0  ;;  %1109 = vmatpush.bf16.msra.mxu2 %v1060_v49  ;;  %v1056_v34 = vmax.f32 %v1026_v26, 0.0  ;;  %v1057_v35 = vmax.f32 %v1040_v27, 0.0  ;;  %1135 = vmatpush.bf16.msrb.mxu0 %v1062_v60 }
 0x166   :  { %1543 = vlog2.f32 %v628_v7  ;;  %v1061_v21 = vpack.c.bf16 %v1053_v16, %v1045_v1  ;;  %v657_v36 = vsel %vm368_vm4, %v649_v2, 0.0  ;;  %v664_v17 = vsel %vm368_vm4, %v650_v11, 0.0 }
 0x167   :  { %v1063_v24 = vpack.c.bf16 %v1055_v29, %v1047_v14  ;;  %v658_v18 = vrot.slane %v657_v36, 4  ;;  %v665_v39 = vrot.slane %v664_v17, 4  ;;  %v1064_v37 = vpack.c.bf16 %v1056_v34, %v1048_v30 }
 0x168   :  { %1122 = vmatpush.bf16.msra.mxu3 %v1061_v21  ;;  %v1065_v57 = vpack.c.bf16 %v1057_v35, %v1049_v31  ;;  %1507 = vmatmul.msk.bf16.vlgmr.msra.gmra.mxu2 %vm260_vm3, %v1862_v54  ;;  %v848_v55 = vstv %s2162_s0  ;;  %v1579_v49 = vmov 0.0  }
 0x169   :  { %v659_v48 = vadd.f32 %v658_v18, %v657_v36  ;;  %v666_v51 = vadd.f32 %v665_v39, %v664_v17  ;;  %1148 = vmatpush.bf16.msrb.mxu1 %v1063_v24  ;;  %1161 = vmatpush.bf16.msrb.mxu2 %v1064_v37  ;;  %v326_v36 = vadd.f32 %v1767_v3, %v1737_v6 }
 0x16a   :  { %v352_v39 = vadd.f32 %v1787_v28, %v1737_v6 }
 0x16b   :  { %v1542_v38 = vpop.eup %1541  ;;  %1508 = vmatmul.msk.bf16.vlgmr.msra.gmra.mxu3 %vm260_vm3, %v1862_v54  ;;  %v660_v22 = vrot.slane %v659_v48, 2  ;;  %v667_v58 = vrot.slane %v666_v51, 2  ;;  %v397_v17 = vsel %vm368_vm4, %v326_v36, -inf }
 0x16c   :  { %v1544_v40 = vpop.eup %1543  ;;  %v638_v41 = vmul.f32 0.6931472, %v1542_v38  ;;  %1174 = vmatpush.bf16.msrb.mxu3 %v1065_v57  ;;  %v398_v24 = vrot.slane %v397_v17, 4 }
 0x16d   :  { %v640_v42 = vmul.f32 0.6931472, %v1544_v40  ;;  %v661_v52 = vadd.f32 %v660_v22, %v659_v48  ;;  %v668_v8 = vadd.f32 %v667_v58, %v666_v51  ;;  %v365_v40 = vadd.f32 %v1789_v33, %v1737_v6 }
 0x16e   :  { %v651_v5 = vmul.f32 %v638_v41, %v1855_v50  ;;  %v399_v37 = vmax.f32 %v397_v17, %v398_v24  ;;  %v411_v41 = vsel %vm368_vm4, %v352_v39, -inf  ;;  %v721_v51 = vlaneseq }
 0x16f   :  { %v652_v56 = vmul.f32 %v640_v42, %v564_v59  ;;  %v662_v53 = vrot.slane %v661_v52, 1  ;;  %v669_v10 = vrot.slane %v668_v8, 1  ;;  %v418_v3 = vsel %vm368_vm4, %v365_v40, -inf }
 0x170   :  { %v671_v2 = vsel %vm368_vm4, %v651_v5, 0.0  ;;  %1509 = vmatmul.msk.bf16.vlgmr.msrb.gmra.mxu0 %vm260_vm3, %v1862_v54  ;;  %1510 = vmatmul.msk.bf16.vlgmr.msrb.gmra.mxu1 %vm260_vm3, %v1862_v54  ;;  %v400_v42 = vrot.slane %v399_v37, 2  ;;  %v419_v5 = vrot.slane %v418_v3, 4 }
 0x171   :  { %v672_v23 = vrot.slane %v671_v2, 4  ;;  %v678_v7 = vsel %vm368_vm4, %v652_v56, 0.0  ;;  %v663_v50 = vadd.f32 %v662_v53, %v661_v52  ;;  %v670_v1 = vadd.f32 %v669_v10, %v668_v8 }
 0x172   :  { %v679_v9 = vrot.slane %v678_v7, 4  ;;  %v401_v56 = vmax.f32 %v399_v37, %v400_v42  ;;  %v420_v28 = vmax.f32 %v418_v3, %v419_v5 }
 0x173   :  { %v673_v47 = vadd.f32 %v672_v23, %v671_v2  ;;  %v713_v14 = vsub.f32 0.0, %v663_v50  ;;  %v714_v15 = vsub.f32 0.0, %v670_v1  ;;  %v1928_v2 = vshrl.u32 %v721_v51, 7 }
 0x174   :  { %v680_v11 = vadd.f32 %v679_v9, %v678_v7  ;;  %v402_v52 = vrot.slane %v401_v56, 1  ;;  %v421_v23 = vrot.slane %v420_v28, 2 }
 0x175   :  { %v674_v59 = vrot.slane %v673_v47, 2  ;;  %vm849_vm15 = vcmp.lt.f32.partialorder %v713_v14, %v848_v55  ;;  %vm850_vm0 = vcmp.lt.f32.partialorder %v714_v15, %v848_v55  ;;  %v731_v33 = vsel %vm723_vm5, %v1928_v2, 4 }
 0x176   :  { %v681_v12 = vrot.slane %v680_v11, 2  ;;  %v1900_v21 = vsel %vm849_vm15, 1.0, %v1579_v49  ;;  %v1902_v26 = vsel %vm850_vm0, 1.0, %v1579_v49  ;;  %v403_v7 = vmax.f32 %v401_v56, %v402_v52 }
 0x177   :  { %v675_v13 = vadd.f32 %v674_v59, %v673_v47  ;;  %v1437_v29 = vadd.f32 %v1902_v26, %v1900_v21  ;;  %v739_v53 = vsel %vm368_vm4, %v731_v33, 2147483647  ;;  %v732_v10 = vsel %vm724_vm6, %v1928_v2, 4 }
 0x178   :  { %v682_v16 = vadd.f32 %v681_v12, %v680_v11  ;;  %1511 = vmatmul.msk.bf16.vlgmr.msrb.gmra.mxu2 %vm260_vm3, %v1862_v54  ;;  %v422_v11 = vmax.f32 %v420_v28, %v421_v23  ;;  %v740_v50 = vrot.slane %v739_v53, 4  ;;  %v749_v1 = vsel %vm368_vm4, %v732_v10, 2147483647 }
 0x179   :  { %v676_v45 = vrot.slane %v675_v13, 1  ;;  %v750_v61 = vrot.slane %v749_v1, 4  ;;  %v734_v63 = vsel %vm726_vm8, %v1928_v2, 4 }
 0x17a   :  { %v683_v46 = vrot.slane %v682_v16, 1  ;;  %v423_v43 = vrot.slane %v422_v11, 1  ;;  %vm741_vm5 = vcmp.lt.s32.totalorder %v739_v53, %v740_v50  ;;  %v769_v3 = vsel %vm368_vm4, %v734_v63, 2147483647 }
 0x17b   :  { %v677_v19 = vadd.f32 %v676_v45, %v675_v13  ;;  %1512 = vmatmul.msk.bf16.vlgmr.msrb.gmra.mxu3 %vm260_vm3, %v1862_v54  ;;  %v339_v54 = vadd.f32 %v1769_v4, %v1737_v6  ;;  %v412_v4 = vrot.slane %v411_v41, 4  ;;  %vm727_vm3 = vcmp.eq.f32.partialorder %v326_v36, %v403_v7 }
 0x17c   :  { %v684_v20 = vadd.f32 %v683_v46, %v682_v16  ;;  %v735_v12 = vsel %vm727_vm3, %v1928_v2, 4  ;;  %v424_v44 = vmax.f32 %v422_v11, %v423_v43  ;;  %v742_v62 = vsel %vm741_vm5, %v739_v53, %v740_v50 }
 0x17d   :  { %v715_v27 = vsub.f32 0.0, %v677_v19  ;;  %v404_v38 = vsel %vm368_vm4, %v339_v54, -inf  ;;  %v413_v22 = vmax.f32 %v411_v41, %v412_v4  ;;  %v779_v14 = vsel %vm368_vm4, %v735_v12, 2147483647 }
 0x17e   :  { %v716_v60 = vsub.f32 0.0, %v684_v20  ;;  %v405_v18 = vrot.slane %v404_v38, 4  ;;  %vm751_vm6 = vcmp.lt.s32.totalorder %v749_v1, %v750_v61  ;;  %v780_v16 = vrot.slane %v779_v14, 4 }
 0x17f   :  { %vm851_vm1 = vcmp.lt.f32.partialorder %v715_v27, %v848_v55  ;;  %v414_v8 = vrot.slane %v413_v22, 2  ;;  %v743_v45 = vrot.slane %v742_v62, 2  ;;  %v752_v46 = vsel %vm751_vm6, %v749_v1, %v750_v61 }
 0x180   :  { %vm852_vm2 = vcmp.lt.f32.partialorder %v716_v60, %v848_v55  ;;  %v1910_v30 = vsel %vm851_vm1, 1.0, %v1579_v49  ;;  %v406_v57 = vmax.f32 %v404_v38, %v405_v18  ;;  %vm730_vm11 = vcmp.eq.f32.partialorder %v365_v40, %v424_v44 }
 0x181   :  { %v1438_v31 = vadd.f32 %v1910_v30, %v1437_v29  ;;  %v1913_v34 = vsel %vm852_vm2, 1.0, %v1579_v49  ;;  %v415_v9 = vmax.f32 %v413_v22, %v414_v8  ;;  %v733_v49 = vsel %vm725_vm7, %v1928_v2, 4 }
 0x182   :  { %v407_v48 = vrot.slane %v406_v57, 2  ;;  %v753_v29 = vrot.slane %v752_v46, 2  ;;  %vm781_vm12 = vcmp.lt.s32.totalorder %v779_v14, %v780_v16  ;;  %vm744_vm14 = vcmp.lt.s32.totalorder %v742_v62, %v743_v45 }
 0x183   :  { %v1439_v35 = vadd.f32 %v1913_v34, %v1438_v31  ;;  %v416_v59 = vrot.slane %v415_v9, 1  ;;  %v738_v31 = vsel %vm730_vm11, %v1928_v2, 4  ;;  %v782_v38 = vsel %vm781_vm12, %v779_v14, %v780_v16 }
 0x184   :  { %v408_v58 = vmax.f32 %v406_v57, %v407_v48  ;;  %v809_v24 = vsel %vm368_vm4, %v738_v31, 2147483647  ;;  %v745_v57 = vsel %vm744_vm14, %v742_v62, %v743_v45  ;;  %vm754_vm7 = vcmp.lt.s32.totalorder %v752_v46, %v753_v29 }
 0x185   :  { %1444 = vadd.xlane.f32.xlu1 %v1439_v35  ;;  %v417_v13 = vmax.f32 %v415_v9, %v416_v59  ;;  %v783_v42 = vrot.slane %v782_v38, 2  ;;  %v810_v4 = vrot.slane %v809_v24, 4  ;;  %v755_v56 = vsel %vm754_vm7, %v752_v46, %v753_v29 }
 0x186   :  { %v409_v6 = vrot.slane %v408_v58, 1  ;;  %v746_v28 = vrot.slane %v745_v57, 1 }
 0x187   :  { %vm729_vm10 = vcmp.eq.f32.partialorder %v352_v39, %v417_v13  ;;  %vm784_vm0 = vcmp.lt.s32.totalorder %v782_v38, %v783_v42  ;;  %vm811_vm1 = vcmp.lt.s32.totalorder %v809_v24, %v810_v4 }
 0x188   :  { %v410_v47 = vmax.f32 %v408_v58, %v409_v6  ;;  %v737_v20 = vsel %vm729_vm10, %v1928_v2, 4  ;;  %v770_v58 = vrot.slane %v769_v3, 4  ;;  %v756_v6 = vrot.slane %v755_v56, 1 }
 0x189   :  { %v799_v36 = vsel %vm368_vm4, %v737_v20, 2147483647  ;;  %v812_v11 = vsel %vm811_vm1, %v809_v24, %v810_v4 }
 0x18a   :  { %vm728_vm9 = vcmp.eq.f32.partialorder %v339_v54, %v410_v47  ;;  %v759_v54 = vsel %vm368_vm4, %v733_v49, 2147483647  ;;  %v800_v37 = vrot.slane %v799_v36, 4  ;;  %vm771_vm3 = vcmp.lt.s32.totalorder %v769_v3, %v770_v58 }
 0x18b   :  { %v736_v55 = vsel %vm728_vm9, %v1928_v2, 4  ;;  %v760_v41 = vrot.slane %v759_v54, 4  ;;  %vm747_vm9 = vcmp.lt.s32.totalorder %v745_v57, %v746_v28  ;;  %v785_v47 = vsel %vm784_vm0, %v782_v38, %v783_v42 }
 0x18c   :  { %v789_v15 = vsel %vm368_vm4, %v736_v55, 2147483647  ;;  %vm801_vm8 = vcmp.lt.s32.totalorder %v799_v36, %v800_v37  ;;  %vm757_vm5 = vcmp.lt.s32.totalorder %v755_v56, %v756_v6  ;;  %v1974_v61 = vsel %vm771_vm3, %v769_v3, %v770_v58 }
 0x18d   :  { %v790_v19 = vrot.slane %v789_v15, 4  ;;  %vm761_vm15 = vcmp.lt.s32.totalorder %v759_v54, %v760_v41  ;;  %v802_v7 = vsel %vm801_vm8, %v799_v36, %v800_v37  ;;  %v748_v12 = vsel %vm747_vm9, %v745_v57, %v746_v28 }
 0x18e   :  { %v1970_v10 = vsel %vm761_vm15, %v759_v54, %v760_v41  ;;  %v803_v59 = vrot.slane %v802_v7, 2  ;;  %v813_v13 = vrot.slane %v812_v11, 2  ;;  %v786_v44 = vrot.slane %v785_v47, 1 }
 0x18f   :  { %vm791_vm13 = vcmp.lt.s32.totalorder %v789_v15, %v790_v19  ;;  %v763_v62 = vrot.slane %v1970_v10, 2  ;;  %v758_v16 = vsel %vm757_vm5, %v755_v56, %v756_v6  ;;  %v773_v46 = vrot.slane %v1974_v61, 2 }
 0x190   :  { %v792_v40 = vsel %vm791_vm13, %v789_v15, %v790_v19  ;;  %vm1982_vm6 = vcmp.lt.s32.totalorder %v802_v7, %v803_v59  ;;  %vm1340_vm10 = vcmp.eq.s32.totalorder %v1928_v2, %v748_v12  ;;  %vm814_vm11 = vcmp.lt.s32.totalorder %v812_v11, %v813_v13 }
 0x191   :  { %v793_v51 = vrot.slane %v792_v40, 2  ;;  %vm1341_vm12 = vcmp.eq.s32.totalorder %v1928_v2, %v758_v16  ;;  %vm787_vm13 = vcmp.lt.s32.totalorder %v785_v47, %v786_v44  ;;  %v2005_v37 = vsel %vm1982_vm6, %v802_v7, %v803_v59 }
 0x192   :  { %v2007_v57 = vsel %vm814_vm11, %v812_v11, %v813_v13  ;;  %v2013_v3 = vsel %vm787_vm13, %v785_v47, %v786_v44  ;;  %vm764_vm7 = vcmp.lt.s32.totalorder %v1970_v10, %v763_v62  ;;  %vm2022_vm8 = vcmp.lt.s32.totalorder %v1974_v61, %v773_v46 }
 0x193   :  { %vm794_vm2 = vcmp.lt.s32.totalorder %v792_v40, %v793_v51  ;;  %v765_v47 = vsel %vm764_vm7, %v1970_v10, %v763_v62  ;;  %v806_v59 = vrot.slane %v2005_v37, 1 }
 0x194   :  { %v795_v1 = vsel %vm794_vm2, %v792_v40, %v793_v51  ;;  %vm1344_vm2 = vcmp.eq.s32.totalorder %v1928_v2, %v2013_v3 }
 0x195   :  { %v796_v45 = vrot.slane %v795_v1, 1  ;;  %vm2048_vm15 = vcmp.lt.s32.totalorder %v2005_v37, %v806_v59 }
 0x197   :  { %vm797_vm14 = vcmp.lt.s32.totalorder %v795_v1, %v796_v45 }
 0x1aa   :  { %v1949_v27 = vpop.permute.xlu2 %1070 }
 0x1dd   :  { %v1085_v60 = vpop.f32.mrf.mxu0  ;;  %v1098_v17 = vpop.f32.mrf.mxu1 }
 0x1de   :  { %v1953_v35 = vadd.f32 %v1085_v60, %v1949_v27  ;;  %v1965_v39 = vadd.f32 %v1098_v17, %v1949_v27 }
 0x1e0   :  { %v1180_v25 = vsel %vm368_vm4, %v1953_v35, -inf  ;;  %v1187_v32 = vsel %vm368_vm4, %v1965_v39, -inf  ;;  %v1348_v29 = vsel %vm1340_vm10, %v1953_v35, 0.0  ;;  %v1349_v17 = vsel %vm1341_vm12, %v1965_v39, 0.0 }
 0x1e1   :  { %v1181_v18 = vrot.slane %v1180_v25, 4  ;;  %v1188_v48 = vrot.slane %v1187_v32, 4  ;;  %v1356_v24 = vsel %vm368_vm4, %v1348_v29, 0.0  ;;  %v1363_v41 = vsel %vm368_vm4, %v1349_v17, 0.0 }
 0x1e2   :  { %v1357_v4 = vrot.slane %v1356_v24, 4  ;;  %v1364_v6 = vrot.slane %v1363_v41, 4  ;;  %vm1446_vm12 = vcmp.eq.s32.totalorder %v1928_v2, 0 }
 0x1e3   :  { %v1182_v0 = vmax.f32 %v1180_v25, %v1181_v18  ;;  %v1189_v52 = vmax.f32 %v1187_v32, %v1188_v48  ;;  %v2015_v48 = vsel %vm797_vm14, %v795_v1, %v796_v45  ;;  %v775_v45 = vsel %vm2022_vm8, %v1974_v61, %v773_v46 }
 0x1e4   :  { %v1358_v12 = vadd.f32 %v1357_v4, %v1356_v24  ;;  %vm1345_vm5 = vcmp.eq.s32.totalorder %v1928_v2, %v2015_v48 }
 0x1e5   :  { %v1183_v5 = vrot.slane %v1182_v0, 2  ;;  %v1087_v22 = vpop.f32.mrf.mxu0  ;;  %v1190_v33 = vrot.slane %v1189_v52, 2  ;;  %v1100_v23 = vpop.f32.mrf.mxu1 }
 0x1e7   :  { %v1184_v8 = vmax.f32 %v1182_v0, %v1183_v5  ;;  %v1191_v53 = vmax.f32 %v1189_v52, %v1190_v33 }
 0x1e9   :  { %v1185_v9 = vrot.slane %v1184_v8, 1  ;;  %v1192_v43 = vrot.slane %v1191_v53, 1 }
 0x1eb   :  { %v1972_v50 = vmax.f32 %v1184_v8, %v1185_v9  ;;  %v1978_v14 = vmax.f32 %v1191_v53, %v1192_v43  ;;  %v1111_v63 = vpop.f32.mrf.mxu2 }
 0x1ed   :  { %v1236_v55 = vsub.f32 %v1953_v35, %v1972_v50  ;;  %v1237_v20 = vsub.f32 %v1965_v39, %v1978_v14  ;;  %v1137_v49 = vpop.f32.mrf.mxu0  ;;  %v1150_v60 = vpop.f32.mrf.mxu1  ;;  %v2010_v39 = vadd.f32 %v1111_v63, %v1949_v27 }
 0x1ee   :  { %v1991_v31 = vadd.f32 %v1137_v49, %v1949_v27  ;;  %v1994_v36 = vadd.f32 %v1150_v60, %v1949_v27  ;;  %v1124_v25 = vpop.f32.mrf.mxu3 }
 0x1ef   :  { %v1244_v15 = vmul.f32 1.442695, %v1236_v55  ;;  %v1246_v54 = vmul.f32 1.442695, %v1237_v20  ;;  %v1194_v51 = vsel %vm368_vm4, %v2010_v39, -inf  ;;  %v2027_v23 = vadd.f32 %v1124_v25, %v1949_v27 }
 0x1f0   :  { %v1208_v38 = vsel %vm368_vm4, %v1991_v31, -inf  ;;  %v1215_v35 = vsel %vm368_vm4, %v1994_v36, -inf  ;;  %v1195_v33 = vrot.slane %v1194_v51, 4  ;;  %v1365_v20 = vadd.f32 %v1364_v6, %v1363_v41 }
 0x1f1   :  { %1545 = vpow2.f32 %v1244_v15  ;;  %v1209_v18 = vrot.slane %v1208_v38, 4  ;;  %v1216_v40 = vrot.slane %v1215_v35, 4  ;;  %v1201_v10 = vsel %vm368_vm4, %v2027_v23, -inf }
 0x1f2   :  { %1547 = vpow2.f32 %v1246_v54  ;;  %v1196_v13 = vmax.f32 %v1194_v51, %v1195_v33  ;;  %v766_v54 = vrot.slane %v765_v47, 1  ;;  %v1359_v25 = vrot.slane %v1358_v12, 2 }
 0x1f3   :  { %v1210_v0 = vmax.f32 %v1208_v38, %v1209_v18  ;;  %v1217_v32 = vmax.f32 %v1215_v35, %v1216_v40  ;;  %v1113_v11 = vpop.f32.mrf.mxu2  ;;  %v776_v38 = vrot.slane %v775_v45, 1  ;;  %v1202_v24 = vrot.slane %v1201_v10, 4 }
 0x1f4   :  { %v1197_v49 = vrot.slane %v1196_v13, 2  ;;  %v1366_v40 = vrot.slane %v1365_v20, 2  ;;  %vm767_vm0 = vcmp.lt.s32.totalorder %v765_v47, %v766_v54 }
 0x1f5   :  { %v1211_v56 = vrot.slane %v1210_v0, 2  ;;  %v1218_v22 = vrot.slane %v1217_v32, 2  ;;  %v1139_v28 = vpop.f32.mrf.mxu0  ;;  %v1152_v52 = vpop.f32.mrf.mxu1  ;;  %v1203_v51 = vmax.f32 %v1201_v10, %v1202_v24  ;;  %vm777_vm1 = vcmp.lt.s32.totalorder %v775_v45, %v776_v38 }
 0x1f6   :  { %v1126_v1 = vpop.f32.mrf.mxu3  ;;  %v1198_v17 = vmax.f32 %v1196_v13, %v1197_v49  ;;  %v1360_v28 = vadd.f32 %v1359_v25, %v1358_v12  ;;  %v1367_v6 = vadd.f32 %v1366_v40, %v1365_v20  ;;  %v816_v25 = vrot.slane %v2007_v57, 1 }
 0x1f7   :  { %v1546_v42 = vpop.eup %1545  ;;  %v1212_v9 = vmax.f32 %v1210_v0, %v1211_v56  ;;  %v1219_v53 = vmax.f32 %v1217_v32, %v1218_v22 }
 0x1f8   :  { %v1260_v5 = vsel %vm368_vm4, %v1546_v42, 0.0  ;;  %v1548_v7 = vpop.eup %1547  ;;  %v1199_v41 = vrot.slane %v1198_v17, 1  ;;  %v1361_v13 = vrot.slane %v1360_v28, 1  ;;  %vm2104_vm6 = vcmp.lt.s32.totalorder %v2007_v57, %v816_v25 }
 0x1f9   :  { %v1261_v8 = vrot.slane %v1260_v5, 4  ;;  %v1267_v55 = vsel %vm368_vm4, %v1548_v7, 0.0  ;;  %v1213_v15 = vrot.slane %v1212_v9, 1  ;;  %v1220_v16 = vrot.slane %v1219_v53, 1 }
 0x1fa   :  { %v1268_v44 = vrot.slane %v1267_v55, 4  ;;  %v2052_v58 = vmax.f32 %v1198_v17, %v1199_v41 }
 0x1fb   :  { %v1262_v43 = vadd.f32 %v1261_v8, %v1260_v5  ;;  %v2037_v60 = vmax.f32 %v1212_v9, %v1213_v15  ;;  %v2039_v29 = vmax.f32 %v1219_v53, %v1220_v16  ;;  %v1163_v5 = vpop.f32.mrf.mxu2  ;;  %v1204_v8 = vrot.slane %v1203_v51, 2 }
 0x1fc   :  { %v1269_v62 = vadd.f32 %v1268_v44, %v1267_v55  ;;  %v1238_v33 = vsub.f32 %v2010_v39, %v2052_v58  ;;  %v2057_v7 = vadd.f32 %v1163_v5, %v1949_v27  ;;  %v768_v53 = vsel %vm767_vm0, %v765_v47, %v766_v54 }
 0x1fd   :  { %v1263_v19 = vrot.slane %v1262_v43, 2  ;;  %v1240_v61 = vsub.f32 %v1991_v31, %v2037_v60  ;;  %v1241_v46 = vsub.f32 %v1994_v36, %v2039_v29  ;;  %v1205_v11 = vmax.f32 %v1203_v51, %v1204_v8 }
 0x1fe   :  { %v1270_v35 = vrot.slane %v1269_v62, 2  ;;  %v1176_v56 = vpop.f32.mrf.mxu3  ;;  %v1248_v1 = vmul.f32 1.442695, %v1238_v33  ;;  %v1222_v12 = vsel %vm368_vm4, %v2057_v7, -inf  ;;  %v1368_v16 = vrot.slane %v1367_v6, 1 }
 0x1ff   :  { %v1264_v63 = vadd.f32 %v1263_v19, %v1262_v43  ;;  %v1252_v42 = vmul.f32 1.442695, %v1240_v61  ;;  %v1254_v4 = vmul.f32 1.442695, %v1241_v46  ;;  %v778_v43 = vsel %vm777_vm1, %v775_v45, %v776_v38 }
 0x200   :  { %v1271_v32 = vadd.f32 %v1270_v35, %v1269_v62  ;;  %v2064_v55 = vadd.f32 %v1176_v56, %v1949_v27  ;;  %v1206_v44 = vrot.slane %v1205_v11, 1  ;;  %v1223_v15 = vrot.slane %v1222_v12, 4 }
 0x201   :  { %v1265_v18 = vrot.slane %v1264_v63, 1  ;;  %1549 = vpow2.f32 %v1252_v42  ;;  %vm1342_vm3 = vcmp.eq.s32.totalorder %v1928_v2, %v768_v53  ;;  %v2077_v27 = vsel %vm2048_vm15, %v2005_v37, %v806_v59 }
 0x202   :  { %v1272_v52 = vrot.slane %v1271_v32, 1  ;;  %v1229_v47 = vsel %vm368_vm4, %v2064_v55, -inf  ;;  %v1350_v45 = vsel %vm1342_vm3, %v2010_v39, 0.0  ;;  %v2070_v20 = vmax.f32 %v1205_v11, %v1206_v44 }
 0x203   :  { %v1266_v22 = vadd.f32 %v1265_v18, %v1264_v63  ;;  %v1224_v49 = vmax.f32 %v1222_v12, %v1223_v15  ;;  %v1165_v10 = vpop.f32.mrf.mxu2  ;;  %vm1343_vm9 = vcmp.eq.s32.totalorder %v1928_v2, %v778_v43  ;;  %v1230_v39 = vrot.slane %v1229_v47, 4 }
 0x204   :  { %v1273_v9 = vadd.f32 %v1272_v52, %v1271_v32  ;;  %v1362_v35 = vadd.f32 %v1361_v13, %v1360_v28  ;;  %v1239_v37 = vsub.f32 %v2027_v23, %v2070_v20  ;;  %v1369_v59 = vadd.f32 %v1368_v16, %v1367_v6 }
 0x205   :  { %1551 = vlog2.f32 %v1266_v22  ;;  %v1370_v24 = vsel %vm368_vm4, %v1350_v45, 0.0  ;;  %v1225_v18 = vrot.slane %v1224_v49, 2  ;;  %v1352_v5 = vsel %vm1344_vm2, %v1991_v31, 0.0 }
 0x206   :  { %1553 = vpow2.f32 %v1254_v4  ;;  %v1178_v62 = vpop.f32.mrf.mxu3  ;;  %v1250_v42 = vmul.f32 1.442695, %v1239_v37  ;;  %v1231_v22 = vmax.f32 %v1229_v47, %v1230_v39  ;;  %v1371_v6 = vrot.slane %v1370_v24, 4 }
 0x207   :  { %1555 = vlog2.f32 %v1273_v9  ;;  %v1550_v19 = vpop.eup %1549  ;;  %v1226_v56 = vmax.f32 %v1224_v49, %v1225_v18  ;;  %v1351_v47 = vsel %vm1343_vm9, %v2027_v23, 0.0  ;;  %vm1346_vm10 = vcmp.eq.s32.totalorder %v1928_v2, %v2077_v27 }
 0x208   :  { %1557 = vpow2.f32 %v1248_v1  ;;  %v1288_v63 = vsel %vm368_vm4, %v1550_v19, 0.0  ;;  %v1384_v1 = vsel %vm368_vm4, %v1352_v5, 0.0  ;;  %v1232_v44 = vrot.slane %v1231_v22, 2 }
 0x209   :  { %v1289_v61 = vrot.slane %v1288_v63, 4  ;;  %1559 = vpow2.f32 %v1250_v42  ;;  %v1227_v9 = vrot.slane %v1226_v56, 1  ;;  %v1372_v16 = vadd.f32 %v1371_v6, %v1370_v24 }
 0x20a   :  { %v1353_v19 = vsel %vm1345_vm5, %v1994_v36, 0.0  ;;  %v1233_v10 = vmax.f32 %v1231_v22, %v1232_v44  ;;  %v818_v5 = vsel %vm2104_vm6, %v2007_v57, %v816_v25 }
 0x20b   :  { %v1552_v54 = vpop.eup %1551  ;;  %v1290_v0 = vadd.f32 %v1289_v61, %v1288_v63  ;;  %v2096_v31 = vmax.f32 %v1226_v56, %v1227_v9  ;;  %v1391_v36 = vsel %vm368_vm4, %v1353_v19, 0.0  ;;  %v1373_v48 = vrot.slane %v1372_v16, 2 }
 0x20c   :  { %v1554_v17 = vpop.eup %1553  ;;  %v1317_v38 = vmul.f32 0.6931472, %v1552_v54  ;;  %v1385_v54 = vrot.slane %v1384_v1, 4  ;;  %vm1347_vm11 = vcmp.eq.s32.totalorder %v1928_v2, %v818_v5 }
 0x20d   :  { %v1295_v46 = vsel %vm368_vm4, %v1554_v17, 0.0  ;;  %v1556_v40 = vpop.eup %1555  ;;  %v1291_v28 = vrot.slane %v1290_v0, 2  ;;  %v1242_v49 = vsub.f32 %v2057_v7, %v2096_v31  ;;  %v1377_v17 = vsel %vm368_vm4, %v1351_v47, 0.0 }
 0x20e   :  { %v1332_v41 = vadd.f32 %v1317_v38, %v1972_v50  ;;  %v1296_v32 = vrot.slane %v1295_v46, 4  ;;  %v1558_v4 = vpop.eup %1557  ;;  %v1319_v51 = vmul.f32 0.6931472, %v1556_v40  ;;  %v1378_v24 = vrot.slane %v1377_v17, 4 }
 0x20f   :  { %v1274_v8 = vsel %vm368_vm4, %v1558_v4, 0.0  ;;  %v1292_v11 = vadd.f32 %v1291_v28, %v1290_v0  ;;  %v1560_v63 = vpop.eup %1559  ;;  %v1256_v38 = vmul.f32 1.442695, %v1242_v49  ;;  %v1392_v40 = vrot.slane %v1391_v36, 4 }
 0x210   :  { %v1297_v52 = vadd.f32 %v1296_v32, %v1295_v46  ;;  %v1333_v33 = vadd.f32 %v1319_v51, %v1978_v14  ;;  %v1275_v50 = vrot.slane %v1274_v8, 4  ;;  %v1412_v53 = vsub.f32 %v1332_v41, %v1362_v35 }
 0x211   :  { %v1293_v62 = vrot.slane %v1292_v11, 1  ;;  %v1234_v35 = vrot.slane %v1233_v10, 1  ;;  %v1281_v37 = vsel %vm368_vm4, %v1560_v63, 0.0  ;;  %1561 = vpow2.f32 %v1256_v38 }
 0x212   :  { %v1298_v12 = vrot.slane %v1297_v52, 2  ;;  %v1413_v13 = vsub.f32 %v1333_v33, %v1369_v59  ;;  %v1276_v3 = vadd.f32 %v1275_v50, %v1274_v8  ;;  %v1420_v43 = vmul.f32 %v1900_v21, %v1412_v53 }
 0x213   :  { %v1282_v46 = vrot.slane %v1281_v37, 4  ;;  %v2119_v21 = vmax.f32 %v1233_v10, %v1234_v35  ;;  %v1386_v42 = vadd.f32 %v1385_v54, %v1384_v1  ;;  %v1374_v4 = vadd.f32 %v1373_v48, %v1372_v16 }
 0x214   :  { %v1299_v15 = vadd.f32 %v1298_v12, %v1297_v52  ;;  %v1277_v45 = vrot.slane %v1276_v3, 2  ;;  %v1421_v23 = vmul.f32 %v1902_v26, %v1413_v13  ;;  %v1294_v26 = vadd.f32 %v1293_v62, %v1292_v11 }
 0x215   :  { %v1283_v0 = vadd.f32 %v1282_v46, %v1281_v37  ;;  %v1243_v32 = vsub.f32 %v2064_v55, %v2119_v21  ;;  %v1354_v51 = vsel %vm1346_vm10, %v2057_v7, 0.0  ;;  %v1379_v28 = vadd.f32 %v1378_v24, %v1377_v17 }
 0x216   :  { %v1278_v39 = vadd.f32 %v1277_v45, %v1276_v3  ;;  %v1300_v61 = vrot.slane %v1299_v15, 1  ;;  %v2123_v18 = vadd.f32 %v1421_v23, %v1420_v43  ;;  %v1393_v8 = vadd.f32 %v1392_v40, %v1391_v36 }
 0x217   :  { %v1284_v27 = vrot.slane %v1283_v0, 2  ;;  %v1258_v22 = vmul.f32 1.442695, %v1243_v32  ;;  %v1562_v52 = vpop.eup %1561  ;;  %v1398_v33 = vsel %vm368_vm4, %v1354_v51, 0.0  ;;  %v1387_v50 = vrot.slane %v1386_v42, 2 }
 0x218   :  { %v1279_v59 = vrot.slane %v1278_v39, 1  ;;  %v1301_v56 = vadd.f32 %v1300_v61, %v1299_v15  ;;  %v1302_v7 = vsel %vm368_vm4, %v1562_v52, 0.0  ;;  %v1375_v9 = vrot.slane %v1374_v4, 1 }
 0x219   :  { %v1285_v6 = vadd.f32 %v1284_v27, %v1283_v0  ;;  %v1303_v25 = vrot.slane %v1302_v7, 4  ;;  %v1380_v53 = vrot.slane %v1379_v28, 2  ;;  %v1399_v11 = vrot.slane %v1398_v33, 4 }
 0x21a   :  { %v1280_v41 = vadd.f32 %v1279_v59, %v1278_v39  ;;  %v1355_v1 = vsel %vm1347_vm11, %v2064_v55, 0.0  ;;  %v1394_v13 = vrot.slane %v1393_v8, 2  ;;  %v1388_v16 = vadd.f32 %v1387_v50, %v1386_v42 }
 0x21b   :  { %v1286_v57 = vrot.slane %v1285_v6, 1  ;;  %v1304_v44 = vadd.f32 %v1303_v25, %v1302_v7  ;;  %v1376_v19 = vadd.f32 %v1375_v9, %v1374_v4  ;;  %v1405_v49 = vsel %vm368_vm4, %v1355_v1, 0.0 }
 0x21c   :  { %1563 = vlog2.f32 %v1280_v41  ;;  %v1381_v43 = vadd.f32 %v1380_v53, %v1379_v28  ;;  %v1400_v23 = vadd.f32 %v1399_v11, %v1398_v33  ;;  %v1395_v54 = vadd.f32 %v1394_v13, %v1393_v8 }
 0x21d   :  { %1565 = vlog2.f32 %v1294_v26  ;;  %v1287_v3 = vadd.f32 %v1286_v57, %v1285_v6  ;;  %v1305_v45 = vrot.slane %v1304_v44, 2  ;;  %v1406_v35 = vrot.slane %v1405_v49, 4 }
 0x21e   :  { %1567 = vpow2.f32 %v1258_v22  ;;  %v1389_v61 = vrot.slane %v1388_v16, 1  ;;  %v1382_v46 = vrot.slane %v1381_v43, 1  ;;  %v1401_v26 = vrot.slane %v1400_v23, 2 }
 0x21f   :  { %1569 = vlog2.f32 %v1301_v56  ;;  %v1306_v39 = vadd.f32 %v1305_v45, %v1304_v44  ;;  %v1396_v24 = vrot.slane %v1395_v54, 1  ;;  %v1407_v42 = vadd.f32 %v1406_v35, %v1405_v49 }
 0x220   :  { %1571 = vlog2.f32 %v1287_v3  ;;  %v1390_v51 = vadd.f32 %v1389_v61, %v1388_v16  ;;  %v1402_v22 = vadd.f32 %v1401_v26, %v1400_v23 }
 0x221   :  { %v1307_v48 = vrot.slane %v1306_v39, 1  ;;  %v1408_v8 = vrot.slane %v1407_v42, 2  ;;  %v1397_v6 = vadd.f32 %v1396_v24, %v1395_v54 }
 0x222   :  { %v1564_v12 = vpop.eup %1563 }
 0x223   :  { %v1566_v15 = vpop.eup %1565  ;;  %v1321_v47 = vmul.f32 0.6931472, %v1564_v12  ;;  %v1308_v40 = vadd.f32 %v1307_v48, %v1306_v39  ;;  %v1409_v25 = vadd.f32 %v1408_v8, %v1407_v42 }
 0x224   :  { %v1568_v14 = vpop.eup %1567  ;;  %v1325_v17 = vmul.f32 0.6931472, %v1566_v15 }
 0x225   :  { %v1334_v10 = vadd.f32 %v1321_v47, %v2052_v58  ;;  %v1309_v62 = vsel %vm368_vm4, %v1568_v14, 0.0  ;;  %v1570_v55 = vpop.eup %1569  ;;  %1573 = vlog2.f32 %v1308_v40  ;;  %v1410_v13 = vrot.slane %v1409_v25, 1 }
 0x226   :  { %v1310_v63 = vrot.slane %v1309_v62, 4  ;;  %v1327_v37 = vmul.f32 0.6931472, %v1570_v55  ;;  %v1572_v58 = vpop.eup %1571  ;;  %v1336_v0 = vadd.f32 %v1325_v17, %v2037_v60  ;;  %v1403_v60 = vrot.slane %v1402_v22, 1 }
 0x227   :  { %v1414_v38 = vsub.f32 %v1334_v10, %v1376_v19  ;;  %v1323_v32 = vmul.f32 0.6931472, %v1572_v58  ;;  %vm1448_vm4 = vcmp.eq.s32.totalorder %v1928_v2, 1 }
 0x228   :  { %v1311_v36 = vadd.f32 %v1310_v63, %v1309_v62  ;;  %v1337_v56 = vadd.f32 %v1327_v37, %v2039_v29  ;;  %v1416_v33 = vsub.f32 %v1336_v0, %v1390_v51  ;;  %v1404_v11 = vadd.f32 %v1403_v60, %v1402_v22 }
 0x229   :  { %v1422_v59 = vmul.f32 %v1910_v30, %v1414_v38  ;;  %v1335_v27 = vadd.f32 %v1323_v32, %v2070_v20  ;;  %v1383_v30 = vadd.f32 %v1382_v46, %v1381_v43 }
 0x22a   :  { %v1312_v41 = vrot.slane %v1311_v36, 2  ;;  %v1417_v7 = vsub.f32 %v1337_v56, %v1397_v6  ;;  %v1424_v53 = vmul.f32 0.0, %v1416_v33 }
 0x22b   :  { %v1429_v4 = vadd.f32 %v2123_v18, %v1422_v59  ;;  %v1415_v52 = vsub.f32 %v1335_v27, %v1383_v30  ;;  %v1574_v18 = vpop.eup %1573 }
 0x22c   :  { %v1313_v5 = vadd.f32 %v1312_v41, %v1311_v36  ;;  %v1329_v57 = vmul.f32 0.6931472, %v1574_v18  ;;  %v1425_v1 = vmul.f32 0.0, %v1417_v7 }
 0x22d   :  { %v1423_v9 = vmul.f32 %v1913_v34, %v1415_v52  ;;  %v1411_v34 = vadd.f32 %v1410_v13, %v1409_v25 }
 0x22e   :  { %v1314_v28 = vrot.slane %v1313_v5, 1  ;;  %v1338_v20 = vadd.f32 %v1329_v57, %v2096_v31  ;;  %v1445_v31 = vpop.xlane.xlu1 %1444 }
 0x22f   :  { %v1430_v29 = vadd.f32 %v1429_v4, %v1423_v9  ;;  %v1449_v23 = vsel %vm1448_vm4, %v1445_v31, 0.0 }
 0x230   :  { %v1315_v50 = vadd.f32 %v1314_v28, %v1313_v5  ;;  %v1418_v3 = vsub.f32 %v1338_v20, %v1404_v11 }
 0x231   :  { %v1431_v12 = vadd.f32 %v1430_v29, %v1424_v53 }
 0x232   :  { %1575 = vlog2.f32 %v1315_v50  ;;  %v1426_v47 = vmul.f32 0.0, %v1418_v3 }
 0x233   :  { %v1432_v44 = vadd.f32 %v1431_v12, %v1425_v1 }
 0x235   :  { %v1433_v19 = vadd.f32 %v1432_v44, %v1426_v47 }
 0x238   :  { %v1576_v15 = vpop.eup %1575 }
 0x239   :  { %v1331_v16 = vmul.f32 0.6931472, %v1576_v15 }
 0x23b   :  { %v1339_v14 = vadd.f32 %v1331_v16, %v2119_v21 }
 0x23d   :  { %v1419_v45 = vsub.f32 %v1339_v14, %v1411_v34 }
 0x23f   :  { %v1427_v49 = vmul.f32 0.0, %v1419_v45 }
 0x241   :  { %v1434_v10 = vadd.f32 %v1433_v19, %v1427_v49 }
 0x243   :  { %1435 = vadd.xlane.f32.xlu0 %v1434_v10 }
 0x2b6   :  { %v1436_v43 = vpop.xlane.xlu0 %1435 }
 0x2b7   :  { %v1447_v62 = vsel %vm1446_vm12, %v1436_v43, 0.0 }
 0x2b8   :  { %v1450_v55 = vadd.f32 %v1449_v23, %v1447_v62 }
 0x2ba   :  { %1458 = vst [vmem:[%s2163_s10] sm:$0xff] %v1450_v55 }

</bundles_post_ra>
